<compile_context>
chip_gen: v6e
topology: v6e:2x2x1
jax: 0.10.0
libtpu: 0.0.40
codegen_flags: <defaults>
</compile_context>

<pallas_src>
import functools

import jax
import jax.numpy as jnp
from jax.experimental import pallas as pl
from jax.experimental.pallas import tpu as pltpu


def _conv_as_matmul_kernel(x_ref, w_ref, b_ref, o_ref, acc_ref):
    """One (n, k) tile of: out = x @ w + b  (x: (B, tk), w: (tk, tn))."""
    k = pl.program_id(1)

    @pl.when(k == 0)
    def _():
        acc_ref[...] = jnp.zeros_like(acc_ref)

    acc_ref[...] += jnp.dot(
        x_ref[...], w_ref[...], preferred_element_type=jnp.float32
    )

    @pl.when(k == pl.num_programs(1) - 1)
    def _():
        o_ref[...] = (acc_ref[...] + b_ref[...]).astype(o_ref.dtype)


def prepare_decoder_params(weight, bias, *, param_dtype=jnp.bfloat16):
    """One-time weight/bias re-layout (do NOT call per forward).

    weight: (N_out, C, H, W) conv weight  ->  (K, Npad) matmul weight (bf16)
    bias:   (N_out,)                      ->  (1, Npad) f32
    """
    N_out, C, H, W = weight.shape
    K = C * H * W
    Npad = ((N_out + 127) // 128) * 128          # lane-dense output width

    w_flat = weight.reshape(N_out, K).T          # (K, N_out), channel-major
    w_pad = (
        jnp.zeros((K, Npad), param_dtype)
        .at[:, :N_out]
        .set(w_flat.astype(param_dtype))
    )
    b_pad = (
        jnp.zeros((1, Npad), jnp.float32)
        .at[0, :N_out]
        .set(bias.astype(jnp.float32))
    )
    return w_pad, b_pad


@functools.partial(jax.jit, static_argnames=("n_out", "tk", "tn"))
def decoder_forward(fmap, w_pad, b_pad, *, n_out, tk=3584, tn=512):
    """fmap: (B, 512, 7, 7) NCHW; w_pad: (K, Npad) bf16; b_pad: (1, Npad) f32."""
    B, C, H, W = fmap.shape
    K = C * H * W                                # 512 * 7 * 7 = 25088
    Npad = w_pad.shape[1]
    assert w_pad.shape[0] == K
    assert K % tk == 0, "K must be divisible by the K-tile size"
    assert Npad % tn == 0, "Npad must be divisible by the N-tile size"

    # Flatten the feature map and cast to the (cheap, tiny) streaming dtype.
    x_flat = fmap.reshape(B, K).astype(w_pad.dtype)     # (B, K)

    grid = (Npad // tn, K // tk)                 # N axis parallel, K axis last

    w_bytes = K * Npad * w_pad.dtype.itemsize
    x_bytes = B * K * x_flat.dtype.itemsize
    o_bytes = B * Npad * 4
    cost = pl.CostEstimate(
        flops=2 * B * K * Npad,
        transcendentals=0,
        bytes_accessed=w_bytes + x_bytes + o_bytes + Npad * 4,
    )

    out_pad = pl.pallas_call(
        _conv_as_matmul_kernel,
        out_shape=jax.ShapeDtypeStruct((B, Npad), jnp.float32),
        grid_spec=pltpu.PrefetchScalarGridSpec(
            num_scalar_prefetch=0,
            grid=grid,
            in_specs=[
                pl.BlockSpec((B, tk), lambda n, k: (0, k)),     # x tile
                pl.BlockSpec((tk, tn), lambda n, k: (k, n)),    # w tile
                pl.BlockSpec((1, tn), lambda n, k: (0, n)),     # bias slice
            ],
            out_specs=pl.BlockSpec((B, tn), lambda n, k: (0, n)),
            scratch_shapes=[pltpu.VMEM((B, tn), jnp.float32)],
        ),
        compiler_params=pltpu.CompilerParams(
            dimension_semantics=("parallel", "arbitrary"),
            vmem_limit_bytes=32 << 20,
        ),
        cost_estimate=cost,
    )(x_flat, w_pad, b_pad)

    # y[:, :, 0, 0] of the (B, 1000, 1, 1) conv output == (B, 1000).
    return out_pad[:, :n_out]


def _reference_forward(fmap, weight, bias, dtype=jnp.bfloat16):
    # Pure-JAX reference of the same math with the same input quantization
    # (bf16 operands, f32 accumulation).
    B = fmap.shape[0]
    N_out = weight.shape[0]
    x_flat = fmap.reshape(B, -1).astype(dtype).astype(jnp.float32)
    w_flat = weight.reshape(N_out, -1).astype(dtype).astype(jnp.float32)
    return x_flat @ w_flat.T + bias[None, :].astype(jnp.float32)


if __name__ == "__main__":
    # Shapes implied by the module: Conv2d(512, 1000, kernel_size=7) applied
    # to the ResNet final feature map (B, 512, 7, 7). Small batch = 2.
    B, C, H, W, N_out = 2, 512, 7, 7, 1000

    key = jax.random.PRNGKey(0)
    k_x, k_w, k_b = jax.random.split(key, 3)

    fmap = jax.random.normal(k_x, (B, C, H, W), dtype=jnp.float32)
    # Deterministic synthetic parameters (shapes from __init__).
    fan_in = C * H * W
    weight = jax.random.normal(k_w, (N_out, C, H, W), dtype=jnp.float32) * (
        1.0 / jnp.sqrt(fan_in)
    )
    bias = jax.random.normal(k_b, (N_out,), dtype=jnp.float32) * 0.01

    # One-time weight layout / cast (hoisted out of the forward path).
    w_pad, b_pad = prepare_decoder_params(weight, bias)
    w_pad, b_pad = jax.block_until_ready((w_pad, b_pad))

    y = decoder_forward(fmap, w_pad, b_pad, n_out=N_out)
    y = jax.block_until_ready(y)

    # Exact check against a reference with matching bf16 input quantization.
    y_ref = _reference_forward(fmap, weight, bias)
    assert y.shape == (B, N_out), y.shape
    assert jnp.allclose(y, y_ref, atol=1e-3, rtol=1e-3), (
        float(jnp.max(jnp.abs(y - y_ref)))
    )

    # Sanity check against the full-f32 math (relaxed tolerance for bf16 stream).
    y_f32 = fmap.reshape(B, -1) @ weight.reshape(N_out, -1).T + bias[None, :]
    assert jnp.allclose(y, y_f32, atol=5e-2, rtol=5e-2), (
        float(jnp.max(jnp.abs(y - y_f32)))
    )

    print("KERNEL_OK")
</pallas_src>

<mosaic_0001>
module attributes {stable_mosaic.version = 11 : i64} {
  func.func @_conv_as_matmul_kernel(%arg0: i32, %arg1: i32, %arg2: memref<2x3584xbf16, #tpu.memory_space<vmem>>, %arg3: memref<3584x512xbf16, #tpu.memory_space<vmem>>, %arg4: memref<1x512xf32, #tpu.memory_space<vmem>>, %arg5: memref<2x512xf32, #tpu.memory_space<vmem>>, %arg6: memref<2x512xf32, #tpu.memory_space<vmem>>) attributes {dimension_semantics = [#tpu.dimension_semantics<parallel>, #tpu.dimension_semantics<arbitrary>], iteration_bounds = array<i64: 2, 7>, scalar_prefetch = 0 : i64, scratch_operands = 1 : i64, tpu.core_type = #tpu.core_type<tc>, window_params = [{transform_indices = @transform_0, window_bounds = array<i64: 2, 3584>}, {transform_indices = @transform_1, window_bounds = array<i64: 3584, 512>}, {transform_indices = @transform_2, window_bounds = array<i64: 1, 512>}, {transform_indices = @transform_3, window_bounds = array<i64: 2, 512>}]} {
    %c0_i32 = arith.constant 0 : i32
    %0 = arith.cmpi eq, %arg1, %c0_i32 : i32
    %1 = arith.extui %0 : i1 to i32
    %c0_i32_0 = arith.constant 0 : i32
    %2 = arith.cmpi ne, %1, %c0_i32_0 : i32
    scf.if %2 {
      %cst_9 = arith.constant 0.000000e+00 : f32
      %12 = vector.broadcast %cst_9 : f32 to vector<2x512xf32>
      %c0_10 = arith.constant 0 : index
      %c0_11 = arith.constant 0 : index
      %13 = vector.load %arg6[%c0_10, %c0_11] : memref<2x512xf32, #tpu.memory_space<vmem>>, vector<2x512xf32>
      tpu.vector_store %arg6[%c0_10, %c0_11], %12 {strides = array<i32>} : memref<2x512xf32, #tpu.memory_space<vmem>>, vector<2x512xf32>,
    } else {
    }
    %c0 = arith.constant 0 : index
    %c0_1 = arith.constant 0 : index
    %3 = vector.load %arg6[%c0, %c0_1] : memref<2x512xf32, #tpu.memory_space<vmem>>, vector<2x512xf32>
    %c0_2 = arith.constant 0 : index
    %c0_3 = arith.constant 0 : index
    %4 = vector.load %arg2[%c0_2, %c0_3] : memref<2x3584xbf16, #tpu.memory_space<vmem>>, vector<2x3584xbf16>
    %c0_4 = arith.constant 0 : index
    %c0_5 = arith.constant 0 : index
    %5 = vector.load %arg3[%c0_4, %c0_5] : memref<3584x512xbf16, #tpu.memory_space<vmem>>, vector<3584x512xbf16>
    %cst = arith.constant dense<0.000000e+00> : vector<2x512xf32>
    %6 = tpu.matmul %4, %5, %cst {dimension_numbers = #tpu.dot_dimension_numbers<[1], [0], [0], [1], [0, 0, 1, 1], [], []>} : vector<2x3584xbf16>, vector<3584x512xbf16>, vector<2x512xf32> -> vector<2x512xf32>
    %7 = arith.addf %3, %6 : vector<2x512xf32>
    %c0_6 = arith.constant 0 : index
    %c0_7 = arith.constant 0 : index
    %8 = vector.load %arg6[%c0_6, %c0_7] : memref<2x512xf32, #tpu.memory_space<vmem>>, vector<2x512xf32>
    tpu.vector_store %arg6[%c0_6, %c0_7], %7 {strides = array<i32>} : memref<2x512xf32, #tpu.memory_space<vmem>>, vector<2x512xf32>,
    %c6_i32 = arith.constant 6 : i32
    %9 = arith.cmpi eq, %arg1, %c6_i32 : i32
    %10 = arith.extui %9 : i1 to i32
    %c0_i32_8 = arith.constant 0 : i32
    %11 = arith.cmpi ne, %10, %c0_i32_8 : i32
    scf.if %11 {
      %c0_9 = arith.constant 0 : index
      %c0_10 = arith.constant 0 : index
      %12 = vector.load %arg6[%c0_9, %c0_10] : memref<2x512xf32, #tpu.memory_space<vmem>>, vector<2x512xf32>
      %c0_11 = arith.constant 0 : index
      %c0_12 = arith.constant 0 : index
      %13 = vector.load %arg4[%c0_11, %c0_12] : memref<1x512xf32, #tpu.memory_space<vmem>>, vector<1x512xf32>
      %14 = vector.broadcast %13 : vector<1x512xf32> to vector<2x512xf32>
      %15 = arith.addf %12, %14 : vector<2x512xf32>
      %c0_13 = arith.constant 0 : index
      %c0_14 = arith.constant 0 : index
      %16 = vector.load %arg5[%c0_13, %c0_14] : memref<2x512xf32, #tpu.memory_space<vmem>>, vector<2x512xf32>
      tpu.vector_store %arg5[%c0_13, %c0_14], %15 {strides = array<i32>} : memref<2x512xf32, #tpu.memory_space<vmem>>, vector<2x512xf32>,
    } else {
    }
    return
  }
  func.func @transform_0(%arg0: i32, %arg1: i32) -> (i32, i32) {
    %c0_i32 = arith.constant 0 : i32
    %c0_i32_0 = arith.constant 0 : i32
    return %c0_i32, %arg1 : i32, i32
  }
  func.func @transform_1(%arg0: i32, %arg1: i32) -> (i32, i32) {
    %c0_i32 = arith.constant 0 : i32
    return %arg1, %arg0 : i32, i32
  }
  func.func @transform_2(%arg0: i32, %arg1: i32) -> (i32, i32) {
    %c0_i32 = arith.constant 0 : i32
    %c0_i32_0 = arith.constant 0 : i32
    return %c0_i32, %arg0 : i32, i32
  }
  func.func @transform_3(%arg0: i32, %arg1: i32) -> (i32, i32) {
    %c0_i32 = arith.constant 0 : i32
    %c0_i32_0 = arith.constant 0 : i32
    return %c0_i32, %arg0 : i32, i32
  }
}

</mosaic_0001>

<bundles_post_ra>
// kernel: decoder_forward.1
= control target key start
LH: loop header
LB: loop body
LE: loop exit
PB: predicated region body
PF: predicated region fallthrough
CT: control target
= control target key end

     0   :  { %s11217_s0 = inlined_call_operand.vmem [shape: bf16[2,25088], index: 0, kind: input, shape index: {}]   ;;  %s11218_s1 = inlined_call_operand.hbm [shape: bf16[25088,1024], index: 1, kind: input, shape index: {}]   ;;  %s11219_s2 = inlined_call_operand.hbm [shape: f32[1,1024], index: 2, kind: input, shape index: {}]   ;;  %s11220_s3 = inlined_call_operand.hbm [shape: f32[2,1024], index: 3, kind: output, shape index: {}]  }
   0x1   :  { %11224 = sst [smem:[#allocation14_spill]] %s11218_s1 }
   0x2   :  { %11225 = sst [smem:[#allocation15_spill]] %s11220_s3 }
   0x3   :  { %8 = vsyncpa [#allocation4], 0 }
   0x4   :  { %10 = vsyncpa [#allocation4 + $0x1], 0 }
   0x5   :  { %11 = vsyncpa [#allocation7], 0 }
   0x6   :  { %13 = vsyncpa [#allocation7 + $0x1], 0 }
   0x7   :  { %14 = vsyncpa [#allocation5], 0 }
   0x8   :  { %16 = vsyncpa [#allocation5 + $0x1], 0  ;;  %s9795_s12 = smov 0   ;;  %s9797_s13 = smov 0  }
   0x9   :  { %s9799_s14 = smov 0   ;;  %s9801_s15 = smov 0  }
   0xa   :  { %s9803_s16 = smov 0   ;;  %s9805_s17 = smov 0  }
   0xb   :  { %s9807_s18 = smov 0   ;;  %s9809_s19 = smov 0  }
   0xc   :  { %s9811_s20 = smov 0   ;;  %s9813_s21 = smov 0  }
   0xd   :  { %s9815_s22 = smov 0  }
   0xe LB: > { %11226 = sst [smem:[#allocation12_spill]] %s9752_s19  ;;  %s31_s23 = sadd.s32 1, %s9756_s20  ;;  %s9764_s22 = sphi %s9815_s22, %s22_s22   ;;  %s9760_s21 = sphi %s9813_s21, %s11252_s21   ;;  %s9756_s20 = sphi %s9811_s20, %s11251_s20   ;;  %s9752_s19 = sphi %s9809_s19, %s11250_s19   ;;  %s9748_s18 = sphi %s9807_s18, %s11249_s18   ;;  %s9744_s17 = sphi %s9805_s17, %s11248_s17   ;;  %s9740_s16 = sphi %s9803_s16, %s11247_s16   ;;  %s9736_s15 = sphi %s9801_s15, %s11246_s15   ;;  %s9732_s14 = sphi %s9799_s14, %s11245_s14   ;;  %s9728_s13 = sphi %s9797_s13, %s11244_s13   ;;  %s9724_s12 = sphi %s9795_s12, %s11243_s12  }
   0xf   : > { %p9851_p0 = scmp.ge.s32.totalorder %s31_s23, 7  ;;  %p76_p1 = scmp.ne.s32.totalorder %s9744_s17, %s9740_s16 }
  0x10   : > { %p77_p2 = scmp.eq.s32.totalorder %s9764_s22, 0  ;;  %p8141_p4 = scmp.lt.s32.totalorder %s9764_s22, 14 }
  0x11   : > { %s11254_s23 = smov (%p9851_p0, %s31_s23), 0  ;;  %s166_s26 = sand.u32 1, %s9744_s17  }
  0x12   : > { %p78_p3 = por %p77_p2, %p76_p1  ;;  %s8122_s27 = smul.u32 7168, %s166_s26 }
  0x13   : > { %s7206_s28 = sshll.u32 %s9760_s21, 2  ;;  %s8119_s29 = smul.u32 3584, %s9756_s20 }
  0x14   : > { %p9871_p5 = pnand %p8141_p4, %p78_p3  ;;  %s170_s5 = scalar_lea.vmem [#allocation3], %s8122_s27 }
  0x15   : > { %s177_s4 = sadd.s32 %s8119_s29, %s7206_s28  ;;  %s180_s6 = sshll.u32 %s170_s5, 4  ;;  %s181_s6 = int_to_ptr.vmem [resolvable:$true] %s180_s6 }
  0x16   : > { %s7208_s7 = sshll.u32 %s177_s4, 6  ;;  %s11229_s1 = sld [smem:[#allocation14_spill]] }
  0x17   : > { %p7212_p6 = scmp.ge.s32.totalorder %s9764_s22, 1  ;;  %s167_s11 = scalar_lea.sflag [#allocation4], %s166_s26 }
  0x18   : > { %p9586_p7 = pneg %p9871_p5  ;;  %s9597_s25 = scalar_lea.vmem %s181_s6, 114688 }
  0x19   : > { %p9598_p8 = scmp.ne.s32.totalorder %s181_s6, %s9597_s25  ;;  %s9766_s3 = smov [#allocation3]  }
  0x1a   : > { %s9602_s19 = sshll.u32 %s9766_s3, 4  ;;  %s9603_s19 = int_to_ptr.vmem [resolvable:$false] %s9602_s19 }
  0x1b   : > { %p9600_p9 = pnand %p9598_p8, %p9586_p7  ;;  %s9604_s28 = scalar_lea.vmem %s9603_s19, 229376 }
  0x1c   : > { %s179_s10 = scalar_lea.hbm %s11229_s1, %s7208_s7  ;;  %p9605_p11 = scmp.lt.s32.totalorder %s181_s6, %s9603_s19 }
  0x1d   : > { %p9601_p10 = pneg %p9600_p9  ;;  %p9606_p12 = scmp.lt.s32.totalorder %s9604_s28, %s9597_s25 }
  0x1f   : > { %p9607_p13 = por %p9606_p12, %p9605_p11 }
  0x21   : > { %p9608_p1 = pnand %p9607_p13, %p9601_p10 }
  0x23   : > { %9611 = shalt.err (!%p9608_p1)
}
  0x24   : > { %s9767_s27 = smov 512   ;;  %s9768_s3 = smov 256  }
  0x25   : > { %s9769_s19 = smov 16   ;;  %p207_p3 = scmp.lt.s32.totalorder %s9764_s22, 15 }
  0x26   : > { %8133 = dma.hbm_to_vmem [thread:$0]  (!%p9871_p5), %s179_s10, 114688, %s181_s6, %s167_s11, %s9767_s27, %s9768_s3, %s9769_s19  }
  0x27   : > { %p9886_p7 = pnand %p7212_p6, %p207_p3  ;;  %s64_s26 = ssub.s32 %s9756_s20, %s11254_s23 }
  0x28   : > { %s7202_s29 = sadd.s32 4294967295, %s9764_s22   ;;  %s34_s4 = sadd.s32 1, %s9760_s21 }
  0x29   : > { %p82_p8 = scmp.ne.s32.totalorder %s9740_s16, %s9736_s15  ;;  %s11256_s4 = smov (!%p9851_p0, %s34_s4), %s9760_s21 }
  0x2a   : > { %s7203_s30 = sadd.s32 4294967294, %s9764_s22   ;;  %p83_p5 = scmp.eq.s32.totalorder %s7202_s29, 0 }
  0x2b   : > { %p36_p9 = scmp.ge.s32.totalorder %s11256_s4, 2  ;;  %s95_s5 = sadd.s32 1, %s9732_s14 }
  0x2c   : > { %p9901_p10 = por %p83_p5, %p82_p8  ;;  %p108_p6 = scmp.ne.s32.totalorder %s9728_s13, %s9724_s12 }
  0x2d   : > { %s11258_s4 = smov (%p36_p9, %s11256_s4), 0  ;;  %p102_p0 = scmp.ne.s32.totalorder %s9732_s14, %s9728_s13 }
  0x2e   : > { %11232 = sst [smem:[#allocation13_spill]] %s11258_s4  ;;  %p9914_p11 = por %p108_p6, %p83_p5 }
  0x2f   : > { %s65_s24 = ssub.s32 %s9760_s21, %s11258_s4  ;;  %p132_p12 = scmp.eq.s32.totalorder %s7202_s29, 13 }
  0x30   : > { %s66_s7 = sor.u32 %s65_s24, %s64_s26  ;;  %p93_p13 = scmp.eq.s32.totalorder %s65_s24, 0 }
  0x31   : > { %p67_p1 = scmp.eq.s32.totalorder %s66_s7, 0  ;;  %p9920_p3 = por %p132_p12, %p102_p0 }
  0x32   : > { %s9925_s9 = scalar_select %p93_p13, %s9732_s14, %s95_s5  }
  0x33   : > { %s11234_s8 = scalar_select %p9920_p3, 1, 0 }
  0x34   : > { %s11235_s10 = sadd.s32 1, %s9744_s17  ;;  %p138_p8 = scmp.eq.s32.totalorder %s7203_s30, 13 }
  0x35   : > { %s9930_s11 = scalar_select %p67_p1, %s9744_s17, %s11235_s10  }
  0x36   : > { %s190_s28 = sand.u32 1, %s9732_s14   ;;  %p104_p5 = por %p102_p0, %p77_p2 }
  0x37   : > { %s7209_s27 = sshll.u32 %s190_s28, 2  ;;  %p9938_p9 = por %p138_p8, %p108_p6 }
  0x38   : > { %s8120_s19 = sshll.u32 %s9760_s21, 6  ;;  %s194_s26 = scalar_lea.vmem [#allocation6], %s7209_s27 }
  0x39   : > { %s11236_s3 = scalar_select %p9938_p9, 1, 0 }
  0x3a   : > { %s202_s29 = sshll.u32 %s194_s26, 4  ;;  %s200_s5 = scalar_lea.hbm %s11219_s2, %s8120_s19  ;;  %s203_s29 = int_to_ptr.vmem [resolvable:$true] %s202_s29 }
  0x3b   : > { %p9948_p12 = pnand %p8141_p4, %p104_p5  ;;  %s191_s10 = scalar_lea.sflag [#allocation7], %s190_s28 }
  0x3c   : > { %s9625_s1 = scalar_lea.vmem %s203_s29, 64  ;;  %s9770_s27 = smov [#allocation6]  }
  0x3d   : > { %p9614_p2 = pneg %p9948_p12  ;;  %p9626_p6 = scmp.ne.s32.totalorder %s203_s29, %s9625_s1 }
  0x3e   : > { %s9630_s26 = sshll.u32 %s9770_s27, 4  ;;  %s9631_s26 = int_to_ptr.vmem [resolvable:$false] %s9630_s26 }
  0x3f   : > { %p9628_p0 = pnand %p9626_p6, %p9614_p2  ;;  %s9632_s4 = scalar_lea.vmem %s9631_s26, 128 }
  0x40   : > { %p9633_p1 = scmp.lt.s32.totalorder %s203_s29, %s9631_s26  ;;  %p9634_p8 = scmp.lt.s32.totalorder %s9632_s4, %s9625_s1 }
  0x41   : > { %p9629_p13 = pneg %p9628_p0 }
  0x42   : > { %p9635_p9 = por %p9634_p8, %p9633_p1 }
  0x44   : > { %p9636_p3 = pnand %p9635_p9, %p9629_p13 }
  0x46   : > { %9639 = shalt.err (!%p9636_p3)
}
  0x47   : > { %8136 = dma.hbm_to_vmem [thread:$0]  (!%p9948_p12), %s200_s5, 64, %s203_s29, %s191_s10  }
  0x48   : > { %211 = sbr.rel (%p9886_p7) target bundleno = 1236 (0x4d4), region = 32  ;;  %s213_s28 = sand.u32 (!%p9886_p7), 1, %s9740_s16  }
  0x49   : > { %s8123_s19 = smul.u32 (!%p9886_p7), 7168, %s213_s28  ;;  %s214_s24 = scalar_lea.sflag (!%p9886_p7), [#allocation4], %s213_s28 }
  0x4b   : > { %s9959_s7 = scalar_lea.vmem (!%p9886_p7), [#allocation3], %s8123_s19 }
  0x4d   : > { %9711 = dma.done.wait (%p9901_p10), %s214_s24, 114688  }
  0x4e   : > { %9713 = vsyncadd (%p9901_p10), %s214_s24, 4294852608  ;;  %s9966_s1 = sand.u32 1, %s9728_s13  }
  0x4f   : > { %s7213_s25 = sshll.u32 %s9966_s1, 2  ;;  %s223_s4 = scalar_lea.sflag [#allocation7], %s9966_s1 }
  0x50   : > { %s9970_s29 = scalar_lea.vmem [#allocation6], %s7213_s25 }
  0x51   : > { %9715 = dma.done.wait (%p9914_p11), %s223_s4, 64  }
  0x52   : > { %9717 = vsyncadd (%p9914_p11), %s223_s4, 4294967232  ;;  %s7214_s5 = sshll.u32 %s9966_s1, 3  ;;  %s258_s6 = smul.u32 28, %s9748_s18 }
  0x53   : > { %s9983_s26 = scalar_lea.vmem [#allocation8], %s7214_s5  ;;  %p7215_p7 = scmp.ne.s32.totalorder %s9748_s18, 0 }
  0x54   : > { %p259_p4 = scmp.lt.s32.totalorder %s258_s6, 195 }
  0x55   : > { %270 = sbr.rel (%p7215_p7) target bundleno = 92 (0x5c), region = 44 }
  0x56   : > { %s11260_s6 = smov (!%p259_p4, %s258_s6), 195 }
  0x57   : > { %s9981_s27 = scalar_lea.vmem %s11217_s0, %s11260_s6 }
  0x5a   : > { %v9771_v0 = vmov 0.0  }
  0x5b   : > { %271 = vst [vmem:[#allocation2] sm:$0xff] %v9771_v0 }
  0x5c PF: > { %v8237_v1 = vld [vmem:[%s9959_s7 + $0xe4] ss:$16 sps:$4 sm:$0xff]   ;;  %v8241_v3 = vld [vmem:[%s9959_s7 + $0xe0] ss:$16 sps:$4 sm:$0xff]   ;;  %v9772_v37 = vmov 1966171168   ;;  %v1181_v39 = vlaneseq }
  0x5d   : > { %v8239_v2 = vld [vmem:[%s9959_s7 + $0x2e4] ss:$16 sps:$4 sm:$0xff]   ;;  %5856 = vmatprep.subr.bf16.mxu0 %v8237_v1  ;;  %v8242_v4 = vld [vmem:[%s9959_s7 + $0x2e0] ss:$16 sps:$4 sm:$0xff]   ;;  %v1179_v38 = vunpack.c.l.s4 %v9772_v37  ;;  %v273_v53 = vld [vmem:[%s9981_s27] sm:$0xff]  ;;  %p8113_p10 = scmp.ne.s32.totalorder %s9748_s18, 6 }
  0x5e   : > { %5897 = vmatprep.subr.bf16.mxu1 %v8239_v2  ;;  %v8243_v5 = vld [vmem:[%s9959_s7 + $0xc4] ss:$16 sps:$4 sm:$0xff]   ;;  %5857 = vmatpush1.bf16.msra.mxu0 %v8241_v3  ;;  %v8247_v7 = vld [vmem:[%s9959_s7 + $0xc0] ss:$16 sps:$4 sm:$0xff]   ;;  %v10025_v44 = vshrl.u32 %v1181_v39, 7  ;;  %v1177_v2 = vcombine.high %v273_v53, %v273_v53 }
  0x5f   : > { %5898 = vmatpush1.bf16.msra.mxu1 %v8242_v4  ;;  %v8245_v6 = vld [vmem:[%s9959_s7 + $0x2c4] ss:$16 sps:$4 sm:$0xff]   ;;  %5858 = vmatprep.subr.bf16.mxu0 %v8243_v5  ;;  %v8248_v8 = vld [vmem:[%s9959_s7 + $0x2c0] ss:$16 sps:$4 sm:$0xff]   ;;  %v1180_v43 = vunpack.c.0.s8 %v1179_v38 }
  0x60   : > { %5899 = vmatprep.subr.bf16.mxu1 %v8245_v6  ;;  %v8249_v9 = vld [vmem:[%s9959_s7 + $0xa4] ss:$16 sps:$4 sm:$0xff]   ;;  %v8253_v11 = vld [vmem:[%s9959_s7 + $0xa0] ss:$16 sps:$4 sm:$0xff]  }
  0x61   : > { %v8251_v10 = vld [vmem:[%s9959_s7 + $0x2a4] ss:$16 sps:$4 sm:$0xff]   ;;  %v8254_v12 = vld [vmem:[%s9959_s7 + $0x2a0] ss:$16 sps:$4 sm:$0xff]   ;;  %v10033_v50 = vsub.s32 %v1180_v43, %v10025_v44 }
  0x62   : > { %5859 = vmatpush1.bf16.msra.mxu0 %v8247_v7  ;;  %v8255_v13 = vld [vmem:[%s9959_s7 + $0x84] ss:$16 sps:$4 sm:$0xff]   ;;  %v8259_v15 = vld [vmem:[%s9959_s7 + $0x80] ss:$16 sps:$4 sm:$0xff]  }
  0x63   : > { %5900 = vmatpush1.bf16.msra.mxu1 %v8248_v8  ;;  %5860 = vmatprep.subr.bf16.mxu0 %v8249_v9  ;;  %v8257_v14 = vld [vmem:[%s9959_s7 + $0x284] ss:$16 sps:$4 sm:$0xff]   ;;  %v8260_v16 = vld [vmem:[%s9959_s7 + $0x280] ss:$16 sps:$4 sm:$0xff]   ;;  %v1184_v55 = vrot.slane %v273_v53, %v10033_v50  ;;  %v10061_v7 = vrot.slane %v1177_v2, %v10033_v50 }
  0x64   : > { %5901 = vmatprep.subr.bf16.mxu1 %v8251_v10  ;;  %v8261_v17 = vld [vmem:[%s9959_s7 + $0x64] ss:$16 sps:$4 sm:$0xff]   ;;  %v8265_v19 = vld [vmem:[%s9959_s7 + $0x60] ss:$16 sps:$4 sm:$0xff]  }
  0x65   : > { %v8263_v18 = vld [vmem:[%s9959_s7 + $0x264] ss:$16 sps:$4 sm:$0xff]   ;;  %v8266_v20 = vld [vmem:[%s9959_s7 + $0x260] ss:$16 sps:$4 sm:$0xff]   ;;  %v1192_v59 = vcombine.high %v1184_v55, %v1184_v55 }
  0x66   : > { %5861 = vmatpush1.bf16.msra.mxu0 %v8253_v11  ;;  %v8267_v21 = vld [vmem:[%s9959_s7 + $0x44] ss:$16 sps:$4 sm:$0xff]   ;;  %v8271_v23 = vld [vmem:[%s9959_s7 + $0x40] ss:$16 sps:$4 sm:$0xff]  }
  0x67   : > { %5902 = vmatpush1.bf16.msra.mxu1 %v8254_v12  ;;  %5862 = vmatprep.subr.bf16.mxu0 %v8255_v13  ;;  %v8269_v22 = vld [vmem:[%s9959_s7 + $0x244] ss:$16 sps:$4 sm:$0xff]   ;;  %v8272_v24 = vld [vmem:[%s9959_s7 + $0x240] ss:$16 sps:$4 sm:$0xff]   ;;  %v10045_v61 = vrot.slane %v1192_v59, %v10033_v50  ;;  %v1193_v12 = vcombine.high %v10061_v7, %v10061_v7 }
  0x68   : > { %5903 = vmatprep.subr.bf16.mxu1 %v8257_v14  ;;  %v8273_v25 = vld [vmem:[%s9959_s7 + $0x24] ss:$16 sps:$4 sm:$0xff]   ;;  %v8277_v27 = vld [vmem:[%s9959_s7 + $0x20] ss:$16 sps:$4 sm:$0xff]   ;;  %v10071_v14 = vrot.slane %v1184_v55, %v10033_v50 }
  0x69   : > { %v8275_v26 = vld [vmem:[%s9959_s7 + $0x224] ss:$16 sps:$4 sm:$0xff]   ;;  %v8278_v28 = vld [vmem:[%s9959_s7 + $0x220] ss:$16 sps:$4 sm:$0xff]   ;;  %v10052_v1 = vcombine.high %v10045_v61, %v10045_v61  ;;  %5888 = vmatprep.mubr.bf16.mxu0 %v10045_v61 }
  0x6a   : > { %5863 = vmatpush1.bf16.msra.mxu0 %v8259_v15  ;;  %v8279_v29 = vld [vmem:[%s9959_s7 + $0x4] ss:$16 sps:$4 sm:$0xff]   ;;  %v8283_v31 = vld [vmem:[%s9959_s7] ss:$16 sps:$4 sm:$0xff]  }
  0x6b   : > { %5904 = vmatpush1.bf16.msra.mxu1 %v8260_v16  ;;  %5864 = vmatprep.subr.bf16.mxu0 %v8261_v17  ;;  %v8281_v30 = vld [vmem:[%s9959_s7 + $0x204] ss:$16 sps:$4 sm:$0xff]   ;;  %v8284_v32 = vld [vmem:[%s9959_s7 + $0x200] ss:$16 sps:$4 sm:$0xff]  }
  0x6c   : > { %5905 = vmatprep.subr.bf16.mxu1 %v8263_v18  ;;  %v8285_v33 = vld [vmem:[%s9959_s7 + $0x1e4] ss:$16 sps:$4 sm:$0xff]   ;;  %v8289_v35 = vld [vmem:[%s9959_s7 + $0x1e0] ss:$16 sps:$4 sm:$0xff]   ;;  %5929 = vmatprep.mubr.bf16.mxu1 %v10052_v1  ;;  %v10077_v18 = vrot.slane %v1193_v12, %v10033_v50 }
  0x6d   : > { %v8287_v34 = vld [vmem:[%s9959_s7 + $0x3e4] ss:$16 sps:$4 sm:$0xff]   ;;  %v8290_v36 = vld [vmem:[%s9959_s7 + $0x3e0] ss:$16 sps:$4 sm:$0xff]  }
  0x6e   : > { %5865 = vmatpush1.bf16.msra.mxu0 %v8265_v19  ;;  %v8291_v40 = vld [vmem:[%s9959_s7 + $0x1c4] ss:$16 sps:$4 sm:$0xff]   ;;  %v8295_v42 = vld [vmem:[%s9959_s7 + $0x1c0] ss:$16 sps:$4 sm:$0xff]   ;;  %v10081_v19 = vcombine.high %v10071_v14, %v10071_v14 }
  0x6f   : > { %5906 = vmatpush1.bf16.msra.mxu1 %v8266_v20  ;;  %5866 = vmatprep.subr.bf16.mxu0 %v8267_v21  ;;  %v8293_v41 = vld [vmem:[%s9959_s7 + $0x3c4] ss:$16 sps:$4 sm:$0xff]   ;;  %v8296_v45 = vld [vmem:[%s9959_s7 + $0x3c0] ss:$16 sps:$4 sm:$0xff]  }
  0x70   : > { %5907 = vmatprep.subr.bf16.mxu1 %v8269_v22  ;;  %v8297_v46 = vld [vmem:[%s9959_s7 + $0x1a4] ss:$16 sps:$4 sm:$0xff]   ;;  %v8301_v48 = vld [vmem:[%s9959_s7 + $0x1a0] ss:$16 sps:$4 sm:$0xff]  }
  0x71   : > { %v8299_v47 = vld [vmem:[%s9959_s7 + $0x3a4] ss:$16 sps:$4 sm:$0xff]   ;;  %v8302_v49 = vld [vmem:[%s9959_s7 + $0x3a0] ss:$16 sps:$4 sm:$0xff]  }
  0x72   : > { %5867 = vmatpush1.bf16.msra.mxu0 %v8271_v23  ;;  %v8303_v51 = vld [vmem:[%s9959_s7 + $0x184] ss:$16 sps:$4 sm:$0xff]   ;;  %v8307_v54 = vld [vmem:[%s9959_s7 + $0x180] ss:$16 sps:$4 sm:$0xff]  }
  0x73   : > { %5908 = vmatpush1.bf16.msra.mxu1 %v8272_v24  ;;  %5868 = vmatprep.subr.bf16.mxu0 %v8273_v25  ;;  %v8305_v52 = vld [vmem:[%s9959_s7 + $0x384] ss:$16 sps:$4 sm:$0xff]   ;;  %v8308_v56 = vld [vmem:[%s9959_s7 + $0x380] ss:$16 sps:$4 sm:$0xff]   ;;  %v10089_v24 = vcombine.high %v10077_v18, %v10077_v18 }
  0x74   : > { %5909 = vmatprep.subr.bf16.mxu1 %v8275_v26  ;;  %v8309_v57 = vld [vmem:[%s9959_s7 + $0x164] ss:$16 sps:$4 sm:$0xff]   ;;  %v8313_v60 = vld [vmem:[%s9959_s7 + $0x160] ss:$16 sps:$4 sm:$0xff]  }
  0x75   : > { %v8311_v58 = vld [vmem:[%s9959_s7 + $0x364] ss:$16 sps:$4 sm:$0xff]   ;;  %v8314_v62 = vld [vmem:[%s9959_s7 + $0x360] ss:$16 sps:$4 sm:$0xff]  }
  0x76   : > { %5869 = vmatpush1.bf16.msra.mxu0 %v8277_v27  ;;  %v8315_v63 = vld [vmem:[%s9959_s7 + $0x144] ss:$16 sps:$4 sm:$0xff]   ;;  %v8319_v3 = vld [vmem:[%s9959_s7 + $0x140] ss:$16 sps:$4 sm:$0xff]  }
  0x77   : > { %5910 = vmatpush1.bf16.msra.mxu1 %v8278_v28  ;;  %5870 = vmatprep.subr.bf16.mxu0 %v8279_v29  ;;  %v8317_v0 = vld [vmem:[%s9959_s7 + $0x344] ss:$16 sps:$4 sm:$0xff]   ;;  %v8320_v4 = vld [vmem:[%s9959_s7 + $0x340] ss:$16 sps:$4 sm:$0xff]  }
  0x78   : > { %5911 = vmatprep.subr.bf16.mxu1 %v8281_v30  ;;  %v8321_v5 = vld [vmem:[%s9959_s7 + $0x124] ss:$16 sps:$4 sm:$0xff]   ;;  %v8325_v8 = vld [vmem:[%s9959_s7 + $0x120] ss:$16 sps:$4 sm:$0xff]  }
  0x79   : > { %v8323_v6 = vld [vmem:[%s9959_s7 + $0x324] ss:$16 sps:$4 sm:$0xff]   ;;  %v8326_v9 = vld [vmem:[%s9959_s7 + $0x320] ss:$16 sps:$4 sm:$0xff]  }
  0x7a   : > { %5871 = vmatpush1.bf16.msra.mxu0 %v8283_v31  ;;  %v8327_v10 = vld [vmem:[%s9959_s7 + $0x104] ss:$16 sps:$4 sm:$0xff]   ;;  %v8331_v13 = vld [vmem:[%s9959_s7 + $0x100] ss:$16 sps:$4 sm:$0xff]  }
  0x7b   : > { %5912 = vmatpush1.bf16.msra.mxu1 %v8284_v32  ;;  %5872 = vmatprep.subr.bf16.mxu0 %v8285_v33  ;;  %v8329_v11 = vld [vmem:[%s9959_s7 + $0x304] ss:$16 sps:$4 sm:$0xff]   ;;  %v8332_v15 = vld [vmem:[%s9959_s7 + $0x300] ss:$16 sps:$4 sm:$0xff]  }
  0x7c   : > { %5913 = vmatprep.subr.bf16.mxu1 %v8287_v34  ;;  %v8335_v16 = vld [vmem:[%s9959_s7 + $0x4e4] ss:$16 sps:$4 sm:$0xff]   ;;  %v8333_v20 = vld [vmem:[%s9959_s7 + $0x4e0] ss:$16 sps:$4 sm:$0xff]  }
  0x7d   : > { %v8338_v17 = vld [vmem:[%s9959_s7 + $0x6e4] ss:$16 sps:$4 sm:$0xff]   ;;  %v8336_v21 = vld [vmem:[%s9959_s7 + $0x6e0] ss:$16 sps:$4 sm:$0xff]  }
  0x7e   : > { %5873 = vmatpush2.bf16.msra.mxu0 %v8289_v35  ;;  %v8341_v22 = vld [vmem:[%s9959_s7 + $0x4c4] ss:$16 sps:$4 sm:$0xff]   ;;  %v8339_v25 = vld [vmem:[%s9959_s7 + $0x4c0] ss:$16 sps:$4 sm:$0xff]  }
  0x7f   : > { %5914 = vmatpush2.bf16.msra.mxu1 %v8290_v36  ;;  %5874 = vmatprep.subr.bf16.mxu0 %v8291_v40  ;;  %v8344_v23 = vld [vmem:[%s9959_s7 + $0x6c4] ss:$16 sps:$4 sm:$0xff]   ;;  %v8342_v26 = vld [vmem:[%s9959_s7 + $0x6c0] ss:$16 sps:$4 sm:$0xff]  }
  0x80   : > { %5915 = vmatprep.subr.bf16.mxu1 %v8293_v41  ;;  %v8347_v27 = vld [vmem:[%s9959_s7 + $0x4a4] ss:$16 sps:$4 sm:$0xff]   ;;  %v8345_v29 = vld [vmem:[%s9959_s7 + $0x4a0] ss:$16 sps:$4 sm:$0xff]  }
  0x81   : > { %v8350_v28 = vld [vmem:[%s9959_s7 + $0x6a4] ss:$16 sps:$4 sm:$0xff]   ;;  %v8348_v30 = vld [vmem:[%s9959_s7 + $0x6a0] ss:$16 sps:$4 sm:$0xff]  }
  0x82   : > { %5875 = vmatpush2.bf16.msra.mxu0 %v8295_v42  ;;  %v8353_v31 = vld [vmem:[%s9959_s7 + $0x484] ss:$16 sps:$4 sm:$0xff]   ;;  %v8351_v33 = vld [vmem:[%s9959_s7 + $0x480] ss:$16 sps:$4 sm:$0xff]  }
  0x83   : > { %5916 = vmatpush2.bf16.msra.mxu1 %v8296_v45  ;;  %5876 = vmatprep.subr.bf16.mxu0 %v8297_v46  ;;  %v8356_v32 = vld [vmem:[%s9959_s7 + $0x684] ss:$16 sps:$4 sm:$0xff]   ;;  %v8354_v34 = vld [vmem:[%s9959_s7 + $0x680] ss:$16 sps:$4 sm:$0xff]  }
  0x84   : > { %5917 = vmatprep.subr.bf16.mxu1 %v8299_v47  ;;  %v8359_v35 = vld [vmem:[%s9959_s7 + $0x464] ss:$16 sps:$4 sm:$0xff]   ;;  %v8357_v37 = vld [vmem:[%s9959_s7 + $0x460] ss:$16 sps:$4 sm:$0xff]  }
  0x85   : > { %v8362_v36 = vld [vmem:[%s9959_s7 + $0x664] ss:$16 sps:$4 sm:$0xff]   ;;  %v8360_v38 = vld [vmem:[%s9959_s7 + $0x660] ss:$16 sps:$4 sm:$0xff]  }
  0x86   : > { %5877 = vmatpush2.bf16.msra.mxu0 %v8301_v48  ;;  %v8365_v39 = vld [vmem:[%s9959_s7 + $0x444] ss:$16 sps:$4 sm:$0xff]   ;;  %v8363_v41 = vld [vmem:[%s9959_s7 + $0x440] ss:$16 sps:$4 sm:$0xff]  }
  0x87   : > { %5918 = vmatpush2.bf16.msra.mxu1 %v8302_v49  ;;  %5878 = vmatprep.subr.bf16.mxu0 %v8303_v51  ;;  %v8368_v40 = vld [vmem:[%s9959_s7 + $0x644] ss:$16 sps:$4 sm:$0xff]   ;;  %v8366_v42 = vld [vmem:[%s9959_s7 + $0x640] ss:$16 sps:$4 sm:$0xff]  }
  0x88   : > { %5919 = vmatprep.subr.bf16.mxu1 %v8305_v52  ;;  %v8371_v43 = vld [vmem:[%s9959_s7 + $0x424] ss:$16 sps:$4 sm:$0xff]   ;;  %v8369_v46 = vld [vmem:[%s9959_s7 + $0x420] ss:$16 sps:$4 sm:$0xff]  }
  0x89   : > { %v8374_v45 = vld [vmem:[%s9959_s7 + $0x624] ss:$16 sps:$4 sm:$0xff]   ;;  %v8372_v47 = vld [vmem:[%s9959_s7 + $0x620] ss:$16 sps:$4 sm:$0xff]  }
  0x8a   : > { %5879 = vmatpush2.bf16.msra.mxu0 %v8307_v54  ;;  %v8377_v48 = vld [vmem:[%s9959_s7 + $0x404] ss:$16 sps:$4 sm:$0xff]   ;;  %v8375_v51 = vld [vmem:[%s9959_s7 + $0x400] ss:$16 sps:$4 sm:$0xff]  }
  0x8b   : > { %5920 = vmatpush2.bf16.msra.mxu1 %v8308_v56  ;;  %5880 = vmatprep.subr.bf16.mxu0 %v8309_v57  ;;  %v8380_v49 = vld [vmem:[%s9959_s7 + $0x604] ss:$16 sps:$4 sm:$0xff]   ;;  %v8378_v52 = vld [vmem:[%s9959_s7 + $0x600] ss:$16 sps:$4 sm:$0xff]  }
  0x8c   : > { %5921 = vmatprep.subr.bf16.mxu1 %v8311_v58  ;;  %v8383_v53 = vld [vmem:[%s9959_s7 + $0x5e4] ss:$16 sps:$4 sm:$0xff]   ;;  %v8381_v55 = vld [vmem:[%s9959_s7 + $0x5e0] ss:$16 sps:$4 sm:$0xff]  }
  0x8d   : > { %v8386_v54 = vld [vmem:[%s9959_s7 + $0x7e4] ss:$16 sps:$4 sm:$0xff]   ;;  %v8384_v56 = vld [vmem:[%s9959_s7 + $0x7e0] ss:$16 sps:$4 sm:$0xff]  }
  0x8e   : > { %5881 = vmatpush2.bf16.msra.mxu0 %v8313_v60  ;;  %v8389_v57 = vld [vmem:[%s9959_s7 + $0x5c4] ss:$16 sps:$4 sm:$0xff]   ;;  %v8387_v59 = vld [vmem:[%s9959_s7 + $0x5c0] ss:$16 sps:$4 sm:$0xff]  }
  0x8f   : > { %5922 = vmatpush2.bf16.msra.mxu1 %v8314_v62  ;;  %5882 = vmatprep.subr.bf16.mxu0 %v8315_v63  ;;  %v8392_v58 = vld [vmem:[%s9959_s7 + $0x7c4] ss:$16 sps:$4 sm:$0xff]   ;;  %v8390_v60 = vld [vmem:[%s9959_s7 + $0x7c0] ss:$16 sps:$4 sm:$0xff]  }
  0x90   : > { %5923 = vmatprep.subr.bf16.mxu1 %v8317_v0  ;;  %v8395_v62 = vld [vmem:[%s9959_s7 + $0x5a4] ss:$16 sps:$4 sm:$0xff]   ;;  %v8393_v0 = vld [vmem:[%s9959_s7 + $0x5a0] ss:$16 sps:$4 sm:$0xff]  }
  0x91   : > { %v8398_v63 = vld [vmem:[%s9959_s7 + $0x7a4] ss:$16 sps:$4 sm:$0xff]   ;;  %v8396_v2 = vld [vmem:[%s9959_s7 + $0x7a0] ss:$16 sps:$4 sm:$0xff]  }
  0x92   : > { %5883 = vmatpush2.bf16.msra.mxu0 %v8319_v3  ;;  %v8401_v3 = vld [vmem:[%s9959_s7 + $0x584] ss:$16 sps:$4 sm:$0xff]  }
  0x93   : > { %5924 = vmatpush2.bf16.msra.mxu1 %v8320_v4  ;;  %5884 = vmatprep.subr.bf16.mxu0 %v8321_v5  ;;  %v8404_v4 = vld [vmem:[%s9959_s7 + $0x784] ss:$16 sps:$4 sm:$0xff]   ;;  %v8399_v5 = vld [vmem:[%s9959_s7 + $0x580] ss:$16 sps:$4 sm:$0xff]  }
  0x94   : > { %5925 = vmatprep.subr.bf16.mxu1 %v8323_v6  ;;  %v8402_v6 = vld [vmem:[%s9959_s7 + $0x780] ss:$16 sps:$4 sm:$0xff]   ;;  %v8413_v12 = vld [vmem:[%s9959_s7 + $0x544] ss:$16 sps:$4 sm:$0xff]  }
  0x96   : > { %5885 = vmatpush2.bf16.msra.mxu0 %v8325_v8  ;;  %v8407_v8 = vld [vmem:[%s9959_s7 + $0x564] ss:$16 sps:$4 sm:$0xff]  }
  0x97   : > { %5926 = vmatpush2.bf16.msra.mxu1 %v8326_v9  ;;  %5886 = vmatprep.subr.bf16.mxu0 %v8327_v10  ;;  %v8410_v9 = vld [vmem:[%s9959_s7 + $0x764] ss:$16 sps:$4 sm:$0xff]   ;;  %v8405_v10 = vld [vmem:[%s9959_s7 + $0x560] ss:$16 sps:$4 sm:$0xff]  }
  0x98   : > { %5927 = vmatprep.subr.bf16.mxu1 %v8329_v11  ;;  %v8408_v11 = vld [vmem:[%s9959_s7 + $0x760] ss:$16 sps:$4 sm:$0xff]  }
  0x9a   : > { %5887 = vmatpush2.bf16.msra.mxu0 %v8331_v13  ;;  %v8416_v13 = vld [vmem:[%s9959_s7 + $0x744] ss:$16 sps:$4 sm:$0xff]  }
  0x9b   : > { %5928 = vmatpush2.bf16.msra.mxu1 %v8332_v15  ;;  %5938 = vmatprep.subr.bf16.mxu0 %v8335_v16  ;;  %v8411_v15 = vld [vmem:[%s9959_s7 + $0x540] ss:$16 sps:$4 sm:$0xff]  }
  0x9c   : > { %5979 = vmatprep.subr.bf16.mxu1 %v8338_v17  ;;  %v8414_v16 = vld [vmem:[%s9959_s7 + $0x740] ss:$16 sps:$4 sm:$0xff]   ;;  %v8419_v17 = vld [vmem:[%s9959_s7 + $0x524] ss:$16 sps:$4 sm:$0xff]  }
  0x9d   : > { %5889 = vmatmul.mubr.bf16.vlgmr.msra.gmra.mxu0 %v10071_v14 }
  0x9e   : > { %5930 = vmatmul.mubr.bf16.vlgmr.msra.gmra.mxu1 %v10081_v19  ;;  %5939 = vmatpush1.bf16.msra.mxu0 %v8333_v20  ;;  %v8422_v20 = vld [vmem:[%s9959_s7 + $0x724] ss:$16 sps:$4 sm:$0xff]  }
  0x9f   : > { %5980 = vmatpush1.bf16.msra.mxu1 %v8336_v21  ;;  %5940 = vmatprep.subr.bf16.mxu0 %v8341_v22  ;;  %v8417_v21 = vld [vmem:[%s9959_s7 + $0x520] ss:$16 sps:$4 sm:$0xff]  }
  0xa0   : > { %5981 = vmatprep.subr.bf16.mxu1 %v8344_v23  ;;  %5970 = vmatprep.mubr.bf16.mxu0 %v10077_v18  ;;  %v8420_v22 = vld [vmem:[%s9959_s7 + $0x720] ss:$16 sps:$4 sm:$0xff]   ;;  %v8425_v23 = vld [vmem:[%s9959_s7 + $0x504] ss:$16 sps:$4 sm:$0xff]  }
  0xa1   : > { %6011 = vmatprep.mubr.bf16.mxu1 %v10089_v24 }
  0xa2   : > { %5941 = vmatpush1.bf16.msra.mxu0 %v8339_v25  ;;  %v8428_v25 = vld [vmem:[%s9959_s7 + $0x704] ss:$16 sps:$4 sm:$0xff]  }
  0xa3   : > { %5982 = vmatpush1.bf16.msra.mxu1 %v8342_v26  ;;  %5942 = vmatprep.subr.bf16.mxu0 %v8347_v27  ;;  %v8423_v26 = vld [vmem:[%s9959_s7 + $0x500] ss:$16 sps:$4 sm:$0xff]   ;;  %v10154_v27 = vrot.slane %v10061_v7, %v10033_v50 }
  0xa4   : > { %5983 = vmatprep.subr.bf16.mxu1 %v8350_v28  ;;  %v8426_v28 = vld [vmem:[%s9959_s7 + $0x700] ss:$16 sps:$4 sm:$0xff]  }
  0xa5   : > { %v8433_v7 = vld [vmem:[%s9959_s7 + $0xae0] ss:$16 sps:$4 sm:$0xff]  }
  0xa6   : > { %5943 = vmatpush1.bf16.msra.mxu0 %v8345_v29  ;;  %v8432_v29 = vld [vmem:[%s9959_s7 + $0x8e4] ss:$16 sps:$4 sm:$0xff]  }
  0xa7   : > { %5984 = vmatpush1.bf16.msra.mxu1 %v8348_v30  ;;  %5944 = vmatprep.subr.bf16.mxu0 %v8353_v31  ;;  %v8435_v30 = vld [vmem:[%s9959_s7 + $0xae4] ss:$16 sps:$4 sm:$0xff]   ;;  %v10161_v31 = vcombine.high %v10154_v27, %v10154_v27 }
  0xa8   : > { %5985 = vmatprep.subr.bf16.mxu1 %v8356_v32  ;;  %v8430_v32 = vld [vmem:[%s9959_s7 + $0x8e0] ss:$16 sps:$4 sm:$0xff]  }
  0xaa   : > { %5945 = vmatpush1.bf16.msra.mxu0 %v8351_v33  ;;  %v10166_v33 = vld [vmem:[%s9981_s27 + $0x8] sm:$0xff] }
  0xab   : > { %5986 = vmatpush1.bf16.msra.mxu1 %v8354_v34  ;;  %5946 = vmatprep.subr.bf16.mxu0 %v8359_v35  ;;  %v8438_v34 = vld [vmem:[%s9959_s7 + $0x8c4] ss:$16 sps:$4 sm:$0xff]  }
  0xac   : > { %5987 = vmatprep.subr.bf16.mxu1 %v8362_v36  ;;  %v8441_v35 = vld [vmem:[%s9959_s7 + $0xac4] ss:$16 sps:$4 sm:$0xff]   ;;  %v10172_v36 = vrot.slane %v10166_v33, %v10033_v50 }
  0xae   : > { %5947 = vmatpush1.bf16.msra.mxu0 %v8357_v37  ;;  %v1241_v37 = vcombine.high %v10172_v36, %v10172_v36 }
  0xaf   : > { %5988 = vmatpush1.bf16.msra.mxu1 %v8360_v38  ;;  %5948 = vmatprep.subr.bf16.mxu0 %v8365_v39  ;;  %v8436_v38 = vld [vmem:[%s9959_s7 + $0x8c0] ss:$16 sps:$4 sm:$0xff]  }
  0xb0   : > { %5989 = vmatprep.subr.bf16.mxu1 %v8368_v40  ;;  %v8439_v39 = vld [vmem:[%s9959_s7 + $0xac0] ss:$16 sps:$4 sm:$0xff]   ;;  %v8444_v40 = vld [vmem:[%s9959_s7 + $0x8a4] ss:$16 sps:$4 sm:$0xff]  }
  0xb2   : > { %5949 = vmatpush1.bf16.msra.mxu0 %v8363_v41  ;;  %v8447_v41 = vld [vmem:[%s9959_s7 + $0xaa4] ss:$16 sps:$4 sm:$0xff]  }
  0xb3   : > { %5990 = vmatpush1.bf16.msra.mxu1 %v8366_v42  ;;  %5950 = vmatprep.subr.bf16.mxu0 %v8371_v43  ;;  %v10183_v42 = vrot.slane %v1241_v37, %v10033_v50  ;;  %v8508_v37 = vld [vmem:[%s9959_s7 + $0x940] ss:$16 sps:$4 sm:$0xff]  }
  0xb4   : > { %5991 = vmatprep.subr.bf16.mxu1 %v8374_v45  ;;  %v8442_v45 = vld [vmem:[%s9959_s7 + $0x8a0] ss:$16 sps:$4 sm:$0xff]  }
  0xb5   : > { %v10188_v43 = vcombine.high %v10183_v42, %v10183_v42 }
  0xb6   : > { %5951 = vmatpush1.bf16.msra.mxu0 %v8369_v46  ;;  %v8445_v46 = vld [vmem:[%s9959_s7 + $0xaa0] ss:$16 sps:$4 sm:$0xff]  }
  0xb7   : > { %5992 = vmatpush1.bf16.msra.mxu1 %v8372_v47  ;;  %5952 = vmatprep.subr.bf16.mxu0 %v8377_v48  ;;  %v8450_v47 = vld [vmem:[%s9959_s7 + $0x884] ss:$16 sps:$4 sm:$0xff]  }
  0xb8   : > { %5993 = vmatprep.subr.bf16.mxu1 %v8380_v49  ;;  %v8453_v48 = vld [vmem:[%s9959_s7 + $0xa84] ss:$16 sps:$4 sm:$0xff]   ;;  %v8448_v49 = vld [vmem:[%s9959_s7 + $0x880] ss:$16 sps:$4 sm:$0xff]  }
  0xba   : > { %5953 = vmatpush1.bf16.msra.mxu0 %v8375_v51  ;;  %v8451_v51 = vld [vmem:[%s9959_s7 + $0xa80] ss:$16 sps:$4 sm:$0xff]  }
  0xbb   : > { %5994 = vmatpush1.bf16.msra.mxu1 %v8378_v52  ;;  %5954 = vmatprep.subr.bf16.mxu0 %v8383_v53  ;;  %v8456_v52 = vld [vmem:[%s9959_s7 + $0x864] ss:$16 sps:$4 sm:$0xff]  }
  0xbc   : > { %5995 = vmatprep.subr.bf16.mxu1 %v8386_v54  ;;  %v8459_v53 = vld [vmem:[%s9959_s7 + $0xa64] ss:$16 sps:$4 sm:$0xff]   ;;  %v8454_v54 = vld [vmem:[%s9959_s7 + $0x860] ss:$16 sps:$4 sm:$0xff]  }
  0xbe   : > { %5955 = vmatpush2.bf16.msra.mxu0 %v8381_v55  ;;  %v8457_v55 = vld [vmem:[%s9959_s7 + $0xa60] ss:$16 sps:$4 sm:$0xff]  }
  0xbf   : > { %5996 = vmatpush2.bf16.msra.mxu1 %v8384_v56  ;;  %5956 = vmatprep.subr.bf16.mxu0 %v8389_v57  ;;  %v8462_v56 = vld [vmem:[%s9959_s7 + $0x844] ss:$16 sps:$4 sm:$0xff]  }
  0xc0   : > { %5997 = vmatprep.subr.bf16.mxu1 %v8392_v58  ;;  %v8465_v57 = vld [vmem:[%s9959_s7 + $0xa44] ss:$16 sps:$4 sm:$0xff]   ;;  %v8460_v58 = vld [vmem:[%s9959_s7 + $0x840] ss:$16 sps:$4 sm:$0xff]  }
  0xc2   : > { %5957 = vmatpush2.bf16.msra.mxu0 %v8387_v59  ;;  %v8463_v59 = vld [vmem:[%s9959_s7 + $0xa40] ss:$16 sps:$4 sm:$0xff]  }
  0xc3   : > { %5998 = vmatpush2.bf16.msra.mxu1 %v8390_v60  ;;  %5958 = vmatprep.subr.bf16.mxu0 %v8395_v62  ;;  %v8468_v60 = vld [vmem:[%s9959_s7 + $0x824] ss:$16 sps:$4 sm:$0xff]  }
  0xc4   : > { %5999 = vmatprep.subr.bf16.mxu1 %v8398_v63  ;;  %v8471_v62 = vld [vmem:[%s9959_s7 + $0xa24] ss:$16 sps:$4 sm:$0xff]   ;;  %v8466_v63 = vld [vmem:[%s9959_s7 + $0x820] ss:$16 sps:$4 sm:$0xff]  }
  0xc6   : > { %5959 = vmatpush2.bf16.msra.mxu0 %v8393_v0  ;;  %v8469_v0 = vld [vmem:[%s9959_s7 + $0xa20] ss:$16 sps:$4 sm:$0xff]  }
  0xc7   : > { %6000 = vmatpush2.bf16.msra.mxu1 %v8396_v2  ;;  %5960 = vmatprep.subr.bf16.mxu0 %v8401_v3  ;;  %v8474_v2 = vld [vmem:[%s9959_s7 + $0x804] ss:$16 sps:$4 sm:$0xff]  }
  0xc8   : > { %6001 = vmatprep.subr.bf16.mxu1 %v8404_v4  ;;  %v8477_v3 = vld [vmem:[%s9959_s7 + $0xa04] ss:$16 sps:$4 sm:$0xff]   ;;  %v8472_v4 = vld [vmem:[%s9959_s7 + $0x800] ss:$16 sps:$4 sm:$0xff]  }
  0xca   : > { %5961 = vmatpush2.bf16.msra.mxu0 %v8399_v5  ;;  %v8475_v5 = vld [vmem:[%s9959_s7 + $0xa00] ss:$16 sps:$4 sm:$0xff]  }
  0xcb   : > { %6002 = vmatpush2.bf16.msra.mxu1 %v8402_v6  ;;  %5962 = vmatprep.subr.bf16.mxu0 %v8407_v8  ;;  %v8480_v6 = vld [vmem:[%s9959_s7 + $0x9e4] ss:$16 sps:$4 sm:$0xff]  }
  0xcc   : > { %6003 = vmatprep.subr.bf16.mxu1 %v8410_v9  ;;  %v8483_v8 = vld [vmem:[%s9959_s7 + $0xbe4] ss:$16 sps:$4 sm:$0xff]   ;;  %v8478_v9 = vld [vmem:[%s9959_s7 + $0x9e0] ss:$16 sps:$4 sm:$0xff]  }
  0xce   : > { %5963 = vmatpush2.bf16.msra.mxu0 %v8405_v10  ;;  %v8481_v10 = vld [vmem:[%s9959_s7 + $0xbe0] ss:$16 sps:$4 sm:$0xff]  }
  0xcf   : > { %6004 = vmatpush2.bf16.msra.mxu1 %v8408_v11  ;;  %5964 = vmatprep.subr.bf16.mxu0 %v8413_v12  ;;  %v8486_v11 = vld [vmem:[%s9959_s7 + $0x9c4] ss:$16 sps:$4 sm:$0xff]  }
  0xd0   : > { %6005 = vmatprep.subr.bf16.mxu1 %v8416_v13  ;;  %v8489_v12 = vld [vmem:[%s9959_s7 + $0xbc4] ss:$16 sps:$4 sm:$0xff]   ;;  %v8484_v13 = vld [vmem:[%s9959_s7 + $0x9c0] ss:$16 sps:$4 sm:$0xff]  }
  0xd2   : > { %5965 = vmatpush2.bf16.msra.mxu0 %v8411_v15  ;;  %v8487_v15 = vld [vmem:[%s9959_s7 + $0xbc0] ss:$16 sps:$4 sm:$0xff]  }
  0xd3   : > { %6006 = vmatpush2.bf16.msra.mxu1 %v8414_v16  ;;  %5966 = vmatprep.subr.bf16.mxu0 %v8419_v17  ;;  %v8492_v16 = vld [vmem:[%s9959_s7 + $0x9a4] ss:$16 sps:$4 sm:$0xff]  }
  0xd4   : > { %6007 = vmatprep.subr.bf16.mxu1 %v8422_v20  ;;  %v8495_v17 = vld [vmem:[%s9959_s7 + $0xba4] ss:$16 sps:$4 sm:$0xff]   ;;  %v8490_v20 = vld [vmem:[%s9959_s7 + $0x9a0] ss:$16 sps:$4 sm:$0xff]  }
  0xd6   : > { %5967 = vmatpush2.bf16.msra.mxu0 %v8417_v21  ;;  %v8493_v21 = vld [vmem:[%s9959_s7 + $0xba0] ss:$16 sps:$4 sm:$0xff]  }
  0xd7   : > { %6008 = vmatpush2.bf16.msra.mxu1 %v8420_v22  ;;  %5968 = vmatprep.subr.bf16.mxu0 %v8425_v23  ;;  %v8498_v22 = vld [vmem:[%s9959_s7 + $0x984] ss:$16 sps:$4 sm:$0xff]  }
  0xd8   : > { %6009 = vmatprep.subr.bf16.mxu1 %v8428_v25  ;;  %v8501_v23 = vld [vmem:[%s9959_s7 + $0xb84] ss:$16 sps:$4 sm:$0xff]   ;;  %v8496_v25 = vld [vmem:[%s9959_s7 + $0x980] ss:$16 sps:$4 sm:$0xff]  }
  0xda   : > { %5969 = vmatpush2.bf16.msra.mxu0 %v8423_v26  ;;  %v8499_v26 = vld [vmem:[%s9959_s7 + $0xb80] ss:$16 sps:$4 sm:$0xff]  }
  0xdb   : > { %6010 = vmatpush2.bf16.msra.mxu1 %v8426_v28  ;;  %6020 = vmatprep.subr.bf16.mxu0 %v8432_v29  ;;  %v8504_v28 = vld [vmem:[%s9959_s7 + $0x964] ss:$16 sps:$4 sm:$0xff]  }
  0xdc   : > { %6061 = vmatprep.subr.bf16.mxu1 %v8435_v30  ;;  %v8507_v29 = vld [vmem:[%s9959_s7 + $0xb64] ss:$16 sps:$4 sm:$0xff]   ;;  %v8502_v30 = vld [vmem:[%s9959_s7 + $0x960] ss:$16 sps:$4 sm:$0xff]  }
  0xdd   : > { %5971 = vmatmul.mubr.bf16.vlgmr.msra.gmra.mxu0 %v10154_v27 }
  0xde   : > { %6012 = vmatmul.mubr.bf16.vlgmr.msra.gmra.mxu1 %v10161_v31  ;;  %6021 = vmatpush1.bf16.msra.mxu0 %v8430_v32  ;;  %v8505_v32 = vld [vmem:[%s9959_s7 + $0xb60] ss:$16 sps:$4 sm:$0xff]  }
  0xdf   : > { %6062 = vmatpush1.bf16.msra.mxu1 %v8433_v7  ;;  %6022 = vmatprep.subr.bf16.mxu0 %v8438_v34  ;;  %v8510_v7 = vld [vmem:[%s9959_s7 + $0x944] ss:$16 sps:$4 sm:$0xff]  }
  0xe0   : > { %6063 = vmatprep.subr.bf16.mxu1 %v8441_v35  ;;  %6052 = vmatprep.mubr.bf16.mxu0 %v10183_v42  ;;  %v8513_v34 = vld [vmem:[%s9959_s7 + $0xb44] ss:$16 sps:$4 sm:$0xff]   ;;  %v1226_v35 = vcombine.high %v10166_v33, %v10166_v33  ;;  %v8514_v33 = vld [vmem:[%s9959_s7 + $0x920] ss:$16 sps:$4 sm:$0xff]  }
  0xe1   : > { %6093 = vmatprep.mubr.bf16.mxu1 %v10188_v43 }
  0xe2   : > { %6023 = vmatpush1.bf16.msra.mxu0 %v8436_v38  ;;  %v8511_v38 = vld [vmem:[%s9959_s7 + $0xb40] ss:$16 sps:$4 sm:$0xff]  }
  0xe3   : > { %6064 = vmatpush1.bf16.msra.mxu1 %v8439_v39  ;;  %6024 = vmatprep.subr.bf16.mxu0 %v8444_v40  ;;  %v8516_v39 = vld [vmem:[%s9959_s7 + $0x924] ss:$16 sps:$4 sm:$0xff]  }
  0xe4   : > { %6065 = vmatprep.subr.bf16.mxu1 %v8447_v41  ;;  %v8519_v40 = vld [vmem:[%s9959_s7 + $0xb24] ss:$16 sps:$4 sm:$0xff]   ;;  %v10242_v41 = vrot.slane %v1226_v35, %v10033_v50  ;;  %v8577_v35 = vld [vmem:[%s9959_s7 + $0xfe0] ss:$16 sps:$4 sm:$0xff]  }
  0xe6   : > { %6025 = vmatpush1.bf16.msra.mxu0 %v8442_v45  ;;  %v8517_v45 = vld [vmem:[%s9959_s7 + $0xb20] ss:$16 sps:$4 sm:$0xff]  }
  0xe7   : > { %6066 = vmatpush1.bf16.msra.mxu1 %v8445_v46  ;;  %6026 = vmatprep.subr.bf16.mxu0 %v8450_v47  ;;  %v8522_v46 = vld [vmem:[%s9959_s7 + $0x904] ss:$16 sps:$4 sm:$0xff]  }
  0xe8   : > { %6067 = vmatprep.subr.bf16.mxu1 %v8453_v48  ;;  %v8525_v47 = vld [vmem:[%s9959_s7 + $0xb04] ss:$16 sps:$4 sm:$0xff]   ;;  %v1242_v48 = vcombine.high %v10242_v41, %v10242_v41 }
  0xea   : > { %6027 = vmatpush1.bf16.msra.mxu0 %v8448_v49  ;;  %v10252_v49 = vrot.slane %v10172_v36, %v10033_v50  ;;  %v8526_v36 = vld [vmem:[%s9959_s7 + $0xce0] ss:$16 sps:$4 sm:$0xff]  }
  0xeb   : > { %6068 = vmatpush1.bf16.msra.mxu1 %v8451_v51  ;;  %6028 = vmatprep.subr.bf16.mxu0 %v8456_v52  ;;  %v8520_v51 = vld [vmem:[%s9959_s7 + $0x900] ss:$16 sps:$4 sm:$0xff]  }
  0xec   : > { %6069 = vmatprep.subr.bf16.mxu1 %v8459_v53  ;;  %v8523_v52 = vld [vmem:[%s9959_s7 + $0xb00] ss:$16 sps:$4 sm:$0xff]   ;;  %v8528_v53 = vld [vmem:[%s9959_s7 + $0xce4] ss:$16 sps:$4 sm:$0xff]  }
  0xee   : > { %6029 = vmatpush1.bf16.msra.mxu0 %v8454_v54  ;;  %v8531_v54 = vld [vmem:[%s9959_s7 + $0xee4] ss:$16 sps:$4 sm:$0xff]  }
  0xef   : > { %6070 = vmatpush1.bf16.msra.mxu1 %v8457_v55  ;;  %6030 = vmatprep.subr.bf16.mxu0 %v8462_v56  ;;  %v10259_v55 = vrot.slane %v1242_v48, %v10033_v50  ;;  %v10263_v56 = vcombine.high %v10252_v49, %v10252_v49  ;;  %v8594_v48 = vld [vmem:[%s9959_s7 + $0xd84] ss:$16 sps:$4 sm:$0xff]  }
  0xf0   : > { %6071 = vmatprep.subr.bf16.mxu1 %v8465_v57  ;;  %v8529_v57 = vld [vmem:[%s9959_s7 + $0xee0] ss:$16 sps:$4 sm:$0xff]  }
  0xf2   : > { %6031 = vmatpush1.bf16.msra.mxu0 %v8460_v58  ;;  %v8534_v58 = vld [vmem:[%s9959_s7 + $0xcc4] ss:$16 sps:$4 sm:$0xff]  }
  0xf3   : > { %6072 = vmatpush1.bf16.msra.mxu1 %v8463_v59  ;;  %6032 = vmatprep.subr.bf16.mxu0 %v8468_v60  ;;  %v8537_v59 = vld [vmem:[%s9959_s7 + $0xec4] ss:$16 sps:$4 sm:$0xff]   ;;  %v10271_v60 = vcombine.high %v10259_v55, %v10259_v55 }
  0xf4   : > { %6073 = vmatprep.subr.bf16.mxu1 %v8471_v62  ;;  %v8532_v62 = vld [vmem:[%s9959_s7 + $0xcc0] ss:$16 sps:$4 sm:$0xff]  }
  0xf6   : > { %6033 = vmatpush1.bf16.msra.mxu0 %v8466_v63  ;;  %v8535_v63 = vld [vmem:[%s9959_s7 + $0xec0] ss:$16 sps:$4 sm:$0xff]  }
  0xf7   : > { %6074 = vmatpush1.bf16.msra.mxu1 %v8469_v0  ;;  %6034 = vmatprep.subr.bf16.mxu0 %v8474_v2  ;;  %v8540_v0 = vld [vmem:[%s9959_s7 + $0xca4] ss:$16 sps:$4 sm:$0xff]  }
  0xf8   : > { %6075 = vmatprep.subr.bf16.mxu1 %v8477_v3  ;;  %v8543_v2 = vld [vmem:[%s9959_s7 + $0xea4] ss:$16 sps:$4 sm:$0xff]   ;;  %v8538_v3 = vld [vmem:[%s9959_s7 + $0xca0] ss:$16 sps:$4 sm:$0xff]  }
  0xfa   : > { %6035 = vmatpush1.bf16.msra.mxu0 %v8472_v4  ;;  %v8541_v4 = vld [vmem:[%s9959_s7 + $0xea0] ss:$16 sps:$4 sm:$0xff]  }
  0xfb   : > { %6076 = vmatpush1.bf16.msra.mxu1 %v8475_v5  ;;  %6036 = vmatprep.subr.bf16.mxu0 %v8480_v6  ;;  %v8546_v5 = vld [vmem:[%s9959_s7 + $0xc84] ss:$16 sps:$4 sm:$0xff]  }
  0xfc   : > { %6077 = vmatprep.subr.bf16.mxu1 %v8483_v8  ;;  %v8549_v6 = vld [vmem:[%s9959_s7 + $0xe84] ss:$16 sps:$4 sm:$0xff]   ;;  %v8544_v8 = vld [vmem:[%s9959_s7 + $0xc80] ss:$16 sps:$4 sm:$0xff]  }
  0xfe   : > { %6037 = vmatpush2.bf16.msra.mxu0 %v8478_v9  ;;  %v8547_v9 = vld [vmem:[%s9959_s7 + $0xe80] ss:$16 sps:$4 sm:$0xff]  }
  0xff   : > { %6078 = vmatpush2.bf16.msra.mxu1 %v8481_v10  ;;  %6038 = vmatprep.subr.bf16.mxu0 %v8486_v11  ;;  %v8552_v10 = vld [vmem:[%s9959_s7 + $0xc64] ss:$16 sps:$4 sm:$0xff]  }
 0x100   : > { %6079 = vmatprep.subr.bf16.mxu1 %v8489_v12  ;;  %v8555_v11 = vld [vmem:[%s9959_s7 + $0xe64] ss:$16 sps:$4 sm:$0xff]   ;;  %v8550_v12 = vld [vmem:[%s9959_s7 + $0xc60] ss:$16 sps:$4 sm:$0xff]  }
 0x102   : > { %6039 = vmatpush2.bf16.msra.mxu0 %v8484_v13  ;;  %v8553_v13 = vld [vmem:[%s9959_s7 + $0xe60] ss:$16 sps:$4 sm:$0xff]  }
 0x103   : > { %6080 = vmatpush2.bf16.msra.mxu1 %v8487_v15  ;;  %6040 = vmatprep.subr.bf16.mxu0 %v8492_v16  ;;  %v8558_v15 = vld [vmem:[%s9959_s7 + $0xc44] ss:$16 sps:$4 sm:$0xff]  }
 0x104   : > { %6081 = vmatprep.subr.bf16.mxu1 %v8495_v17  ;;  %v8561_v16 = vld [vmem:[%s9959_s7 + $0xe44] ss:$16 sps:$4 sm:$0xff]   ;;  %v8556_v17 = vld [vmem:[%s9959_s7 + $0xc40] ss:$16 sps:$4 sm:$0xff]  }
 0x106   : > { %6041 = vmatpush2.bf16.msra.mxu0 %v8490_v20  ;;  %v8559_v20 = vld [vmem:[%s9959_s7 + $0xe40] ss:$16 sps:$4 sm:$0xff]  }
 0x107   : > { %6082 = vmatpush2.bf16.msra.mxu1 %v8493_v21  ;;  %6042 = vmatprep.subr.bf16.mxu0 %v8498_v22  ;;  %v8564_v21 = vld [vmem:[%s9959_s7 + $0xc24] ss:$16 sps:$4 sm:$0xff]  }
 0x108   : > { %6083 = vmatprep.subr.bf16.mxu1 %v8501_v23  ;;  %v8567_v22 = vld [vmem:[%s9959_s7 + $0xe24] ss:$16 sps:$4 sm:$0xff]   ;;  %v8562_v23 = vld [vmem:[%s9959_s7 + $0xc20] ss:$16 sps:$4 sm:$0xff]  }
 0x10a   : > { %6043 = vmatpush2.bf16.msra.mxu0 %v8496_v25  ;;  %v8565_v25 = vld [vmem:[%s9959_s7 + $0xe20] ss:$16 sps:$4 sm:$0xff]  }
 0x10b   : > { %6084 = vmatpush2.bf16.msra.mxu1 %v8499_v26  ;;  %6044 = vmatprep.subr.bf16.mxu0 %v8504_v28  ;;  %v8570_v26 = vld [vmem:[%s9959_s7 + $0xc04] ss:$16 sps:$4 sm:$0xff]  }
 0x10c   : > { %6085 = vmatprep.subr.bf16.mxu1 %v8507_v29  ;;  %v8573_v28 = vld [vmem:[%s9959_s7 + $0xe04] ss:$16 sps:$4 sm:$0xff]   ;;  %v8568_v29 = vld [vmem:[%s9959_s7 + $0xc00] ss:$16 sps:$4 sm:$0xff]  }
 0x10e   : > { %6045 = vmatpush2.bf16.msra.mxu0 %v8502_v30  ;;  %v8571_v30 = vld [vmem:[%s9959_s7 + $0xe00] ss:$16 sps:$4 sm:$0xff]  }
 0x10f   : > { %6086 = vmatpush2.bf16.msra.mxu1 %v8505_v32  ;;  %6046 = vmatprep.subr.bf16.mxu0 %v8510_v7  ;;  %v8576_v32 = vld [vmem:[%s9959_s7 + $0xde4] ss:$16 sps:$4 sm:$0xff]  }
 0x110   : > { %6087 = vmatprep.subr.bf16.mxu1 %v8513_v34  ;;  %v8579_v7 = vld [vmem:[%s9959_s7 + $0xfe4] ss:$16 sps:$4 sm:$0xff]   ;;  %v8574_v34 = vld [vmem:[%s9959_s7 + $0xde0] ss:$16 sps:$4 sm:$0xff]  }
 0x112   : > { %6047 = vmatpush2.bf16.msra.mxu0 %v8508_v37  ;;  %v8582_v37 = vld [vmem:[%s9959_s7 + $0xdc4] ss:$16 sps:$4 sm:$0xff]  }
 0x113   : > { %6088 = vmatpush2.bf16.msra.mxu1 %v8511_v38  ;;  %6048 = vmatprep.subr.bf16.mxu0 %v8516_v39  ;;  %v8585_v38 = vld [vmem:[%s9959_s7 + $0xfc4] ss:$16 sps:$4 sm:$0xff]   ;;  %v8580_v39 = vld [vmem:[%s9959_s7 + $0xdc0] ss:$16 sps:$4 sm:$0xff]  }
 0x114   : > { %6089 = vmatprep.subr.bf16.mxu1 %v8519_v40  ;;  %v8583_v40 = vld [vmem:[%s9959_s7 + $0xfc0] ss:$16 sps:$4 sm:$0xff]  }
 0x116   : > { %6049 = vmatpush2.bf16.msra.mxu0 %v8514_v33  ;;  %v8588_v33 = vld [vmem:[%s9959_s7 + $0xda4] ss:$16 sps:$4 sm:$0xff]  }
 0x117   : > { %6090 = vmatpush2.bf16.msra.mxu1 %v8517_v45  ;;  %6050 = vmatprep.subr.bf16.mxu0 %v8522_v46  ;;  %v8591_v45 = vld [vmem:[%s9959_s7 + $0xfa4] ss:$16 sps:$4 sm:$0xff]   ;;  %v8586_v46 = vld [vmem:[%s9959_s7 + $0xda0] ss:$16 sps:$4 sm:$0xff]  }
 0x118   : > { %6091 = vmatprep.subr.bf16.mxu1 %v8525_v47  ;;  %v8589_v47 = vld [vmem:[%s9959_s7 + $0xfa0] ss:$16 sps:$4 sm:$0xff]  }
 0x11a   : > { %6051 = vmatpush2.bf16.msra.mxu0 %v8520_v51  ;;  %v8597_v51 = vld [vmem:[%s9959_s7 + $0xf84] ss:$16 sps:$4 sm:$0xff]  }
 0x11b   : > { %6092 = vmatpush2.bf16.msra.mxu1 %v8523_v52  ;;  %6102 = vmatprep.subr.bf16.mxu0 %v8528_v53  ;;  %v8592_v52 = vld [vmem:[%s9959_s7 + $0xd80] ss:$16 sps:$4 sm:$0xff]  }
 0x11c   : > { %6143 = vmatprep.subr.bf16.mxu1 %v8531_v54  ;;  %v8595_v53 = vld [vmem:[%s9959_s7 + $0xf80] ss:$16 sps:$4 sm:$0xff]   ;;  %v8600_v54 = vld [vmem:[%s9959_s7 + $0xd64] ss:$16 sps:$4 sm:$0xff]  }
 0x11d   : > { %6053 = vmatmul.mubr.bf16.vlgmr.msra.gmra.mxu0 %v10252_v49 }
 0x11e   : > { %6094 = vmatmul.mubr.bf16.vlgmr.msra.gmra.mxu1 %v10263_v56  ;;  %6103 = vmatpush1.bf16.msra.mxu0 %v8526_v36  ;;  %v8603_v36 = vld [vmem:[%s9959_s7 + $0xf64] ss:$16 sps:$4 sm:$0xff]  }
 0x11f   : > { %6144 = vmatpush1.bf16.msra.mxu1 %v8529_v57  ;;  %6104 = vmatprep.subr.bf16.mxu0 %v8534_v58  ;;  %v8598_v57 = vld [vmem:[%s9959_s7 + $0xd60] ss:$16 sps:$4 sm:$0xff]  }
 0x120   : > { %6145 = vmatprep.subr.bf16.mxu1 %v8537_v59  ;;  %6134 = vmatprep.mubr.bf16.mxu0 %v10259_v55  ;;  %v8601_v58 = vld [vmem:[%s9959_s7 + $0xf60] ss:$16 sps:$4 sm:$0xff]   ;;  %v8606_v59 = vld [vmem:[%s9959_s7 + $0xd44] ss:$16 sps:$4 sm:$0xff]  }
 0x121   : > { %6175 = vmatprep.mubr.bf16.mxu1 %v10271_v60 }
 0x122   : > { %6105 = vmatpush1.bf16.msra.mxu0 %v8532_v62  ;;  %v8609_v62 = vld [vmem:[%s9959_s7 + $0xf44] ss:$16 sps:$4 sm:$0xff]  }
 0x123   : > { %6146 = vmatpush1.bf16.msra.mxu1 %v8535_v63  ;;  %6106 = vmatprep.subr.bf16.mxu0 %v8540_v0  ;;  %v8604_v63 = vld [vmem:[%s9959_s7 + $0xd40] ss:$16 sps:$4 sm:$0xff]   ;;  %v10327_v0 = vld [vmem:[%s9981_s27 + $0x10] sm:$0xff] }
 0x124   : > { %6147 = vmatprep.subr.bf16.mxu1 %v8543_v2  ;;  %v8607_v2 = vld [vmem:[%s9959_s7 + $0xf40] ss:$16 sps:$4 sm:$0xff]  }
 0x126   : > { %6107 = vmatpush1.bf16.msra.mxu0 %v8538_v3  ;;  %v8612_v3 = vld [vmem:[%s9959_s7 + $0xd24] ss:$16 sps:$4 sm:$0xff]  }
 0x127   : > { %6148 = vmatpush1.bf16.msra.mxu1 %v8541_v4  ;;  %6108 = vmatprep.subr.bf16.mxu0 %v8546_v5  ;;  %v8615_v4 = vld [vmem:[%s9959_s7 + $0xf24] ss:$16 sps:$4 sm:$0xff]   ;;  %v10334_v5 = vrot.slane %v10327_v0, %v10033_v50 }
 0x128   : > { %6149 = vmatprep.subr.bf16.mxu1 %v8549_v6  ;;  %v8610_v6 = vld [vmem:[%s9959_s7 + $0xd20] ss:$16 sps:$4 sm:$0xff]  }
 0x12a   : > { %6109 = vmatpush1.bf16.msra.mxu0 %v8544_v8  ;;  %v8613_v8 = vld [vmem:[%s9959_s7 + $0xf20] ss:$16 sps:$4 sm:$0xff]  }
 0x12b   : > { %6150 = vmatpush1.bf16.msra.mxu1 %v8547_v9  ;;  %6110 = vmatprep.subr.bf16.mxu0 %v8552_v10  ;;  %v8618_v9 = vld [vmem:[%s9959_s7 + $0xd04] ss:$16 sps:$4 sm:$0xff]  }
 0x12c   : > { %6151 = vmatprep.subr.bf16.mxu1 %v8555_v11  ;;  %v8621_v10 = vld [vmem:[%s9959_s7 + $0xf04] ss:$16 sps:$4 sm:$0xff]   ;;  %v1290_v11 = vcombine.high %v10334_v5, %v10334_v5 }
 0x12e   : > { %6111 = vmatpush1.bf16.msra.mxu0 %v8550_v12  ;;  %v8616_v12 = vld [vmem:[%s9959_s7 + $0xd00] ss:$16 sps:$4 sm:$0xff]  }
 0x12f   : > { %6152 = vmatpush1.bf16.msra.mxu1 %v8553_v13  ;;  %6112 = vmatprep.subr.bf16.mxu0 %v8558_v15  ;;  %v10345_v13 = vrot.slane %v10242_v41, %v10033_v50  ;;  %v8619_v15 = vld [vmem:[%s9959_s7 + $0xf00] ss:$16 sps:$4 sm:$0xff]  }
 0x130   : > { %6153 = vmatprep.subr.bf16.mxu1 %v8561_v16  ;;  %v8625_v16 = vld [vmem:[%s9959_s7 + $0x10e4] ss:$16 sps:$4 sm:$0xff]   ;;  %v8626_v41 = vld [vmem:[%s9959_s7 + $0x12e0] ss:$16 sps:$4 sm:$0xff]  }
 0x132   : > { %6113 = vmatpush1.bf16.msra.mxu0 %v8556_v17  ;;  %v8628_v17 = vld [vmem:[%s9959_s7 + $0x12e4] ss:$16 sps:$4 sm:$0xff]  }
 0x133   : > { %6154 = vmatpush1.bf16.msra.mxu1 %v8559_v20  ;;  %6114 = vmatprep.subr.bf16.mxu0 %v8564_v21  ;;  %v10351_v20 = vrot.slane %v1290_v11, %v10033_v50  ;;  %v10355_v21 = vcombine.high %v10345_v13, %v10345_v13  ;;  %v8670_v11 = vld [vmem:[%s9959_s7 + $0x1204] ss:$16 sps:$4 sm:$0xff]  }
 0x134   : > { %6155 = vmatprep.subr.bf16.mxu1 %v8567_v22  ;;  %v8623_v22 = vld [vmem:[%s9959_s7 + $0x10e0] ss:$16 sps:$4 sm:$0xff]  }
 0x136   : > { %6115 = vmatpush1.bf16.msra.mxu0 %v8562_v23  ;;  %v8631_v23 = vld [vmem:[%s9959_s7 + $0x10c4] ss:$16 sps:$4 sm:$0xff]  }
 0x137   : > { %6156 = vmatpush1.bf16.msra.mxu1 %v8565_v25  ;;  %6116 = vmatprep.subr.bf16.mxu0 %v8570_v26  ;;  %v8634_v25 = vld [vmem:[%s9959_s7 + $0x12c4] ss:$16 sps:$4 sm:$0xff]   ;;  %v10363_v26 = vcombine.high %v10351_v20, %v10351_v20 }
 0x138   : > { %6157 = vmatprep.subr.bf16.mxu1 %v8573_v28 }
 0x13a   : > { %6117 = vmatpush1.bf16.msra.mxu0 %v8568_v29 }
 0x13b   : > { %6158 = vmatpush1.bf16.msra.mxu1 %v8571_v30  ;;  %6118 = vmatprep.subr.bf16.mxu0 %v8576_v32  ;;  %v8629_v30 = vld [vmem:[%s9959_s7 + $0x10c0] ss:$16 sps:$4 sm:$0xff]  }
 0x13c   : > { %6159 = vmatprep.subr.bf16.mxu1 %v8579_v7  ;;  %v8632_v32 = vld [vmem:[%s9959_s7 + $0x12c0] ss:$16 sps:$4 sm:$0xff]  }
 0x13e   : > { %6119 = vmatpush2.bf16.msra.mxu0 %v8574_v34 }
 0x13f   : > { %6160 = vmatpush2.bf16.msra.mxu1 %v8577_v35  ;;  %6120 = vmatprep.subr.bf16.mxu0 %v8582_v37  ;;  %v8637_v37 = vld [vmem:[%s9959_s7 + $0x10a4] ss:$16 sps:$4 sm:$0xff]  }
 0x140   : > { %6161 = vmatprep.subr.bf16.mxu1 %v8585_v38  ;;  %v8640_v38 = vld [vmem:[%s9959_s7 + $0x12a4] ss:$16 sps:$4 sm:$0xff]  }
 0x142   : > { %6121 = vmatpush2.bf16.msra.mxu0 %v8580_v39 }
 0x143   : > { %6162 = vmatpush2.bf16.msra.mxu1 %v8583_v40  ;;  %6122 = vmatprep.subr.bf16.mxu0 %v8588_v33  ;;  %v8635_v40 = vld [vmem:[%s9959_s7 + $0x10a0] ss:$16 sps:$4 sm:$0xff]  }
 0x144   : > { %6163 = vmatprep.subr.bf16.mxu1 %v8591_v45  ;;  %v8638_v33 = vld [vmem:[%s9959_s7 + $0x12a0] ss:$16 sps:$4 sm:$0xff]  }
 0x146   : > { %6123 = vmatpush2.bf16.msra.mxu0 %v8586_v46 }
 0x147   : > { %6164 = vmatpush2.bf16.msra.mxu1 %v8589_v47  ;;  %6124 = vmatprep.subr.bf16.mxu0 %v8594_v48 }
 0x148   : > { %6165 = vmatprep.subr.bf16.mxu1 %v8597_v51  ;;  %v8643_v51 = vld [vmem:[%s9959_s7 + $0x1084] ss:$16 sps:$4 sm:$0xff]  }
 0x14a   : > { %6125 = vmatpush2.bf16.msra.mxu0 %v8592_v52  ;;  %v8646_v52 = vld [vmem:[%s9959_s7 + $0x1284] ss:$16 sps:$4 sm:$0xff]  }
 0x14b   : > { %6166 = vmatpush2.bf16.msra.mxu1 %v8595_v53  ;;  %6126 = vmatprep.subr.bf16.mxu0 %v8600_v54  ;;  %v8641_v53 = vld [vmem:[%s9959_s7 + $0x1080] ss:$16 sps:$4 sm:$0xff]  }
 0x14c   : > { %6167 = vmatprep.subr.bf16.mxu1 %v8603_v36  ;;  %v8644_v54 = vld [vmem:[%s9959_s7 + $0x1280] ss:$16 sps:$4 sm:$0xff]   ;;  %v8649_v36 = vld [vmem:[%s9959_s7 + $0x1064] ss:$16 sps:$4 sm:$0xff]  }
 0x14e   : > { %6127 = vmatpush2.bf16.msra.mxu0 %v8598_v57  ;;  %v8652_v57 = vld [vmem:[%s9959_s7 + $0x1264] ss:$16 sps:$4 sm:$0xff]  }
 0x14f   : > { %6168 = vmatpush2.bf16.msra.mxu1 %v8601_v58  ;;  %6128 = vmatprep.subr.bf16.mxu0 %v8606_v59  ;;  %v8647_v58 = vld [vmem:[%s9959_s7 + $0x1060] ss:$16 sps:$4 sm:$0xff]  }
 0x150   : > { %6169 = vmatprep.subr.bf16.mxu1 %v8609_v62  ;;  %v8650_v59 = vld [vmem:[%s9959_s7 + $0x1260] ss:$16 sps:$4 sm:$0xff]   ;;  %v8655_v62 = vld [vmem:[%s9959_s7 + $0x1044] ss:$16 sps:$4 sm:$0xff]  }
 0x152   : > { %6129 = vmatpush2.bf16.msra.mxu0 %v8604_v63  ;;  %v8658_v63 = vld [vmem:[%s9959_s7 + $0x1244] ss:$16 sps:$4 sm:$0xff]  }
 0x153   : > { %6170 = vmatpush2.bf16.msra.mxu1 %v8607_v2  ;;  %6130 = vmatprep.subr.bf16.mxu0 %v8612_v3  ;;  %v8653_v2 = vld [vmem:[%s9959_s7 + $0x1040] ss:$16 sps:$4 sm:$0xff]  }
 0x154   : > { %6171 = vmatprep.subr.bf16.mxu1 %v8615_v4  ;;  %v8656_v3 = vld [vmem:[%s9959_s7 + $0x1240] ss:$16 sps:$4 sm:$0xff]   ;;  %v8661_v4 = vld [vmem:[%s9959_s7 + $0x1024] ss:$16 sps:$4 sm:$0xff]  }
 0x156   : > { %6131 = vmatpush2.bf16.msra.mxu0 %v8610_v6  ;;  %v8664_v6 = vld [vmem:[%s9959_s7 + $0x1224] ss:$16 sps:$4 sm:$0xff]  }
 0x157   : > { %6172 = vmatpush2.bf16.msra.mxu1 %v8613_v8  ;;  %6132 = vmatprep.subr.bf16.mxu0 %v8618_v9  ;;  %v8659_v8 = vld [vmem:[%s9959_s7 + $0x1020] ss:$16 sps:$4 sm:$0xff]  }
 0x158   : > { %6173 = vmatprep.subr.bf16.mxu1 %v8621_v10  ;;  %v8662_v9 = vld [vmem:[%s9959_s7 + $0x1220] ss:$16 sps:$4 sm:$0xff]   ;;  %v8667_v10 = vld [vmem:[%s9959_s7 + $0x1004] ss:$16 sps:$4 sm:$0xff]  }
 0x15a   : > { %6133 = vmatpush2.bf16.msra.mxu0 %v8616_v12  ;;  %v8665_v12 = vld [vmem:[%s9959_s7 + $0x1000] ss:$16 sps:$4 sm:$0xff]  }
 0x15b   : > { %6174 = vmatpush2.bf16.msra.mxu1 %v8619_v15  ;;  %6184 = vmatprep.subr.bf16.mxu0 %v8625_v16  ;;  %v8668_v15 = vld [vmem:[%s9959_s7 + $0x1200] ss:$16 sps:$4 sm:$0xff]   ;;  %v8673_v16 = vld [vmem:[%s9959_s7 + $0x11e4] ss:$16 sps:$4 sm:$0xff]  }
 0x15c   : > { %6225 = vmatprep.subr.bf16.mxu1 %v8628_v17  ;;  %v8676_v17 = vld [vmem:[%s9959_s7 + $0x13e4] ss:$16 sps:$4 sm:$0xff]  }
 0x15d   : > { %v5890_v28 = vpop.f32.mrf.mxu0  ;;  %6135 = vmatmul.mubr.bf16.vlgmr.msra.gmra.mxu0 %v10345_v13 }
 0x15e   : > { %v5931_v29 = vpop.f32.mrf.mxu1  ;;  %6176 = vmatmul.mubr.bf16.vlgmr.msra.gmra.mxu1 %v10355_v21  ;;  %6185 = vmatpush1.bf16.msra.mxu0 %v8623_v22  ;;  %v8671_v22 = vld [vmem:[%s9959_s7 + $0x11e0] ss:$16 sps:$4 sm:$0xff]  }
 0x15f   : > { %v10369_v7 = vadd.f32 %v5931_v29, %v5890_v28  ;;  %6226 = vmatpush1.bf16.msra.mxu1 %v8626_v41  ;;  %v5892_v34 = vpop.f32.mrf.mxu0  ;;  %6186 = vmatprep.subr.bf16.mxu0 %v8631_v23  ;;  %v8674_v41 = vld [vmem:[%s9959_s7 + $0x13e0] ss:$16 sps:$4 sm:$0xff]   ;;  %v8679_v23 = vld [vmem:[%s9959_s7 + $0x11c4] ss:$16 sps:$4 sm:$0xff]  }
 0x160   : > { %v5933_v35 = vpop.f32.mrf.mxu1  ;;  %6227 = vmatprep.subr.bf16.mxu1 %v8634_v25  ;;  %6216 = vmatprep.mubr.bf16.mxu0 %v10351_v20  ;;  %v8682_v25 = vld [vmem:[%s9959_s7 + $0x13c4] ss:$16 sps:$4 sm:$0xff]   ;;  %v8677_v28 = vld [vmem:[%s9959_s7 + $0x11c0] ss:$16 sps:$4 sm:$0xff]  }
 0x161   : > { %v10373_v39 = vadd.f32 %v5933_v35, %v5892_v34  ;;  %6257 = vmatprep.mubr.bf16.mxu1 %v10363_v26  ;;  %v5894_v45 = vpop.f32.mrf.mxu0  ;;  %v8680_v29 = vld [vmem:[%s9959_s7 + $0x13c0] ss:$16 sps:$4 sm:$0xff]  }
 0x162   : > { %v5935_v46 = vpop.f32.mrf.mxu1  ;;  %6187 = vmatpush1.bf16.msra.mxu0 %v8629_v30  ;;  %v8685_v30 = vld [vmem:[%s9959_s7 + $0x11a4] ss:$16 sps:$4 sm:$0xff]   ;;  %v8683_v34 = vld [vmem:[%s9959_s7 + $0x11a0] ss:$16 sps:$4 sm:$0xff]  }
 0x163   : > { %6228 = vmatpush1.bf16.msra.mxu1 %v8632_v32  ;;  %v5895_v47 = vpop.f32.mrf.mxu0  ;;  %6188 = vmatprep.subr.bf16.mxu0 %v8637_v37  ;;  %v8688_v32 = vld [vmem:[%s9959_s7 + $0x13a4] ss:$16 sps:$4 sm:$0xff]   ;;  %v8686_v35 = vld [vmem:[%s9959_s7 + $0x13a0] ss:$16 sps:$4 sm:$0xff]  }
 0x164   : > { %v5936_v48 = vpop.f32.mrf.mxu1  ;;  %6229 = vmatprep.subr.bf16.mxu1 %v8640_v38  ;;  %v8691_v37 = vld [vmem:[%s9959_s7 + $0x1184] ss:$16 sps:$4 sm:$0xff]   ;;  %v8695_v47 = vld [vmem:[%s9959_s7 + $0x1160] ss:$16 sps:$4 sm:$0xff]  }
 0x165   : > { %v8694_v38 = vld [vmem:[%s9959_s7 + $0x1384] ss:$16 sps:$4 sm:$0xff]   ;;  %v8698_v48 = vld [vmem:[%s9959_s7 + $0x1360] ss:$16 sps:$4 sm:$0xff]  }
 0x166   : > { %6189 = vmatpush1.bf16.msra.mxu0 %v8635_v40  ;;  %v8689_v40 = vld [vmem:[%s9959_s7 + $0x1180] ss:$16 sps:$4 sm:$0xff]   ;;  %v8697_v45 = vld [vmem:[%s9959_s7 + $0x1164] ss:$16 sps:$4 sm:$0xff]  }
 0x167   : > { %6230 = vmatpush1.bf16.msra.mxu1 %v8638_v33  ;;  %6190 = vmatprep.subr.bf16.mxu0 %v8643_v51  ;;  %v8692_v33 = vld [vmem:[%s9959_s7 + $0x1380] ss:$16 sps:$4 sm:$0xff]   ;;  %v8700_v46 = vld [vmem:[%s9959_s7 + $0x1364] ss:$16 sps:$4 sm:$0xff]  }
 0x168   : > { %6231 = vmatprep.subr.bf16.mxu1 %v8646_v52  ;;  %v8703_v51 = vld [vmem:[%s9959_s7 + $0x1144] ss:$16 sps:$4 sm:$0xff]  }
 0x169   : > { %v8706_v52 = vld [vmem:[%s9959_s7 + $0x1344] ss:$16 sps:$4 sm:$0xff]  }
 0x16a   : > { %6191 = vmatpush1.bf16.msra.mxu0 %v8641_v53  ;;  %v1275_v53 = vcombine.high %v10327_v0, %v10327_v0  ;;  %v8707_v0 = vld [vmem:[%s9959_s7 + $0x1120] ss:$16 sps:$4 sm:$0xff]  }
 0x16b   : > { %6232 = vmatpush1.bf16.msra.mxu1 %v8644_v54  ;;  %6192 = vmatprep.subr.bf16.mxu0 %v8649_v36  ;;  %v8701_v54 = vld [vmem:[%s9959_s7 + $0x1140] ss:$16 sps:$4 sm:$0xff]  }
 0x16c   : > { %6233 = vmatprep.subr.bf16.mxu1 %v8652_v57  ;;  %v8704_v36 = vld [vmem:[%s9959_s7 + $0x1340] ss:$16 sps:$4 sm:$0xff]   ;;  %v8709_v57 = vld [vmem:[%s9959_s7 + $0x1124] ss:$16 sps:$4 sm:$0xff]  }
 0x16e   : > { %6193 = vmatpush1.bf16.msra.mxu0 %v8647_v58  ;;  %v8712_v58 = vld [vmem:[%s9959_s7 + $0x1324] ss:$16 sps:$4 sm:$0xff]  }
 0x16f   : > { %6234 = vmatpush1.bf16.msra.mxu1 %v8650_v59  ;;  %6194 = vmatprep.subr.bf16.mxu0 %v8655_v62  ;;  %v10428_v59 = vrot.slane %v1275_v53, %v10033_v50  ;;  %v8710_v62 = vld [vmem:[%s9959_s7 + $0x1320] ss:$16 sps:$4 sm:$0xff]  }
 0x170   : > { %6235 = vmatprep.subr.bf16.mxu1 %v8658_v63  ;;  %v8715_v63 = vld [vmem:[%s9959_s7 + $0x1104] ss:$16 sps:$4 sm:$0xff]   ;;  %v8740_v53 = vld [vmem:[%s9959_s7 + $0x1680] ss:$16 sps:$4 sm:$0xff]  }
 0x172   : > { %6195 = vmatpush1.bf16.msra.mxu0 %v8653_v2  ;;  %v8718_v2 = vld [vmem:[%s9959_s7 + $0x1304] ss:$16 sps:$4 sm:$0xff]  }
 0x173   : > { %6236 = vmatpush1.bf16.msra.mxu1 %v8656_v3  ;;  %6196 = vmatprep.subr.bf16.mxu0 %v8661_v4  ;;  %v1291_v3 = vcombine.high %v10428_v59, %v10428_v59  ;;  %v10438_v4 = vrot.slane %v10334_v5, %v10033_v50 }
 0x174   : > { %6237 = vmatprep.subr.bf16.mxu1 %v8664_v6  ;;  %v8713_v6 = vld [vmem:[%s9959_s7 + $0x1100] ss:$16 sps:$4 sm:$0xff]  }
 0x175   : > { %v10451_v5 = vcombine.high %v10438_v4, %v10438_v4 }
 0x176   : > { %6197 = vmatpush1.bf16.msra.mxu0 %v8659_v8  ;;  %v8716_v8 = vld [vmem:[%s9959_s7 + $0x1300] ss:$16 sps:$4 sm:$0xff]  }
 0x177   : > { %6238 = vmatpush1.bf16.msra.mxu1 %v8662_v9  ;;  %6198 = vmatprep.subr.bf16.mxu0 %v8667_v10  ;;  %v8721_v9 = vld [vmem:[%s9959_s7 + $0x14e4] ss:$16 sps:$4 sm:$0xff]  }
 0x178   : > { %6239 = vmatprep.subr.bf16.mxu1 %v8670_v11  ;;  %v8724_v10 = vld [vmem:[%s9959_s7 + $0x16e4] ss:$16 sps:$4 sm:$0xff]   ;;  %v8719_v11 = vld [vmem:[%s9959_s7 + $0x14e0] ss:$16 sps:$4 sm:$0xff]  }
 0x17a   : > { %6199 = vmatpush1.bf16.msra.mxu0 %v8665_v12  ;;  %v8722_v12 = vld [vmem:[%s9959_s7 + $0x16e0] ss:$16 sps:$4 sm:$0xff]  }
 0x17b   : > { %6240 = vmatpush1.bf16.msra.mxu1 %v8668_v15  ;;  %6200 = vmatprep.subr.bf16.mxu0 %v8673_v16  ;;  %v10447_v15 = vrot.slane %v1291_v3, %v10033_v50  ;;  %v8727_v16 = vld [vmem:[%s9959_s7 + $0x14c4] ss:$16 sps:$4 sm:$0xff]  }
 0x17c   : > { %6241 = vmatprep.subr.bf16.mxu1 %v8676_v17  ;;  %v8730_v17 = vld [vmem:[%s9959_s7 + $0x16c4] ss:$16 sps:$4 sm:$0xff]  }
 0x17d   : > { %v8757_v3 = vld [vmem:[%s9959_s7 + $0x1424] ss:$16 sps:$4 sm:$0xff]  }
 0x17e   : > { %6201 = vmatpush2.bf16.msra.mxu0 %v8671_v22  ;;  %v8725_v22 = vld [vmem:[%s9959_s7 + $0x14c0] ss:$16 sps:$4 sm:$0xff]  }
 0x17f   : > { %6242 = vmatpush2.bf16.msra.mxu1 %v8674_v41  ;;  %6202 = vmatprep.subr.bf16.mxu0 %v8679_v23  ;;  %v8728_v41 = vld [vmem:[%s9959_s7 + $0x16c0] ss:$16 sps:$4 sm:$0xff]   ;;  %v10459_v23 = vcombine.high %v10447_v15, %v10447_v15 }
 0x180   : > { %6243 = vmatprep.subr.bf16.mxu1 %v8682_v25 }
 0x182   : > { %6203 = vmatpush2.bf16.msra.mxu0 %v8677_v28 }
 0x183   : > { %6244 = vmatpush2.bf16.msra.mxu1 %v8680_v29  ;;  %6204 = vmatprep.subr.bf16.mxu0 %v8685_v30 }
 0x184   : > { %6245 = vmatprep.subr.bf16.mxu1 %v8688_v32 }
 0x186   : > { %6205 = vmatpush2.bf16.msra.mxu0 %v8683_v34  ;;  %v8733_v34 = vld [vmem:[%s9959_s7 + $0x14a4] ss:$16 sps:$4 sm:$0xff]  }
 0x187   : > { %6246 = vmatpush2.bf16.msra.mxu1 %v8686_v35  ;;  %6206 = vmatprep.subr.bf16.mxu0 %v8691_v37  ;;  %v8736_v35 = vld [vmem:[%s9959_s7 + $0x16a4] ss:$16 sps:$4 sm:$0xff]  }
 0x188   : > { %6247 = vmatprep.subr.bf16.mxu1 %v8694_v38 }
 0x18a   : > { %6207 = vmatpush2.bf16.msra.mxu0 %v8689_v40  ;;  %v8731_v40 = vld [vmem:[%s9959_s7 + $0x14a0] ss:$16 sps:$4 sm:$0xff]  }
 0x18b   : > { %6248 = vmatpush2.bf16.msra.mxu1 %v8692_v33  ;;  %6208 = vmatprep.subr.bf16.mxu0 %v8697_v45  ;;  %v8734_v33 = vld [vmem:[%s9959_s7 + $0x16a0] ss:$16 sps:$4 sm:$0xff]  }
 0x18c   : > { %6249 = vmatprep.subr.bf16.mxu1 %v8700_v46 }
 0x18e   : > { %6209 = vmatpush2.bf16.msra.mxu0 %v8695_v47 }
 0x18f   : > { %6250 = vmatpush2.bf16.msra.mxu1 %v8698_v48  ;;  %6210 = vmatprep.subr.bf16.mxu0 %v8703_v51  ;;  %v8742_v51 = vld [vmem:[%s9959_s7 + $0x1684] ss:$16 sps:$4 sm:$0xff]  }
 0x190   : > { %6251 = vmatprep.subr.bf16.mxu1 %v8706_v52  ;;  %v8737_v52 = vld [vmem:[%s9959_s7 + $0x1480] ss:$16 sps:$4 sm:$0xff]  }
 0x192   : > { %6211 = vmatpush2.bf16.msra.mxu0 %v8701_v54  ;;  %v8745_v54 = vld [vmem:[%s9959_s7 + $0x1464] ss:$16 sps:$4 sm:$0xff]  }
 0x193   : > { %6252 = vmatpush2.bf16.msra.mxu1 %v8704_v36  ;;  %6212 = vmatprep.subr.bf16.mxu0 %v8709_v57  ;;  %v8748_v36 = vld [vmem:[%s9959_s7 + $0x1664] ss:$16 sps:$4 sm:$0xff]   ;;  %v8743_v57 = vld [vmem:[%s9959_s7 + $0x1460] ss:$16 sps:$4 sm:$0xff]  }
 0x194   : > { %6253 = vmatprep.subr.bf16.mxu1 %v8712_v58  ;;  %v8746_v58 = vld [vmem:[%s9959_s7 + $0x1660] ss:$16 sps:$4 sm:$0xff]  }
 0x196   : > { %6213 = vmatpush2.bf16.msra.mxu0 %v8707_v0  ;;  %v8751_v0 = vld [vmem:[%s9959_s7 + $0x1444] ss:$16 sps:$4 sm:$0xff]  }
 0x197   : > { %6254 = vmatpush2.bf16.msra.mxu1 %v8710_v62  ;;  %6214 = vmatprep.subr.bf16.mxu0 %v8715_v63  ;;  %v8754_v62 = vld [vmem:[%s9959_s7 + $0x1644] ss:$16 sps:$4 sm:$0xff]   ;;  %v8749_v63 = vld [vmem:[%s9959_s7 + $0x1440] ss:$16 sps:$4 sm:$0xff]  }
 0x198   : > { %6255 = vmatprep.subr.bf16.mxu1 %v8718_v2  ;;  %v8752_v2 = vld [vmem:[%s9959_s7 + $0x1640] ss:$16 sps:$4 sm:$0xff]  }
 0x19a   : > { %6215 = vmatpush2.bf16.msra.mxu0 %v8713_v6  ;;  %v8760_v6 = vld [vmem:[%s9959_s7 + $0x1624] ss:$16 sps:$4 sm:$0xff]  }
 0x19b   : > { %6256 = vmatpush2.bf16.msra.mxu1 %v8716_v8  ;;  %6266 = vmatprep.subr.bf16.mxu0 %v8721_v9  ;;  %v8755_v8 = vld [vmem:[%s9959_s7 + $0x1420] ss:$16 sps:$4 sm:$0xff]  }
 0x19c   : > { %6307 = vmatprep.subr.bf16.mxu1 %v8724_v10  ;;  %v8758_v9 = vld [vmem:[%s9959_s7 + $0x1620] ss:$16 sps:$4 sm:$0xff]   ;;  %v8763_v10 = vld [vmem:[%s9959_s7 + $0x1404] ss:$16 sps:$4 sm:$0xff]  }
 0x19d   : > { %v5972_v25 = vpop.f32.mrf.mxu0  ;;  %6217 = vmatmul.mubr.bf16.vlgmr.msra.gmra.mxu0 %v10438_v4 }
 0x19e   : > { %v6013_v28 = vpop.f32.mrf.mxu1  ;;  %6258 = vmatmul.mubr.bf16.vlgmr.msra.gmra.mxu1 %v10451_v5  ;;  %v5973_v29 = vadd.f32 %v5972_v25, %v10369_v7  ;;  %6267 = vmatpush1.bf16.msra.mxu0 %v8719_v11  ;;  %v8766_v11 = vld [vmem:[%s9959_s7 + $0x1604] ss:$16 sps:$4 sm:$0xff]   ;;  %v8770_v25 = vld [vmem:[%s9959_s7 + $0x17e0] ss:$16 sps:$4 sm:$0xff]  }
 0x19f   : > { %6308 = vmatpush1.bf16.msra.mxu1 %v8722_v12  ;;  %v5974_v30 = vpop.f32.mrf.mxu0  ;;  %6268 = vmatprep.subr.bf16.mxu0 %v8727_v16  ;;  %v8761_v12 = vld [vmem:[%s9959_s7 + $0x1400] ss:$16 sps:$4 sm:$0xff]  }
 0x1a0   : > { %v6015_v32 = vpop.f32.mrf.mxu1  ;;  %6309 = vmatprep.subr.bf16.mxu1 %v8730_v17  ;;  %v10466_v37 = vadd.f32 %v6013_v28, %v5973_v29  ;;  %v5975_v38 = vadd.f32 %v5974_v30, %v10373_v39  ;;  %6298 = vmatprep.mubr.bf16.mxu0 %v10447_v15  ;;  %v8739_v39 = vld [vmem:[%s9959_s7 + $0x1484] ss:$16 sps:$4 sm:$0xff]   ;;  %v8764_v16 = vld [vmem:[%s9959_s7 + $0x1600] ss:$16 sps:$4 sm:$0xff]  }
 0x1a1   : > { %6339 = vmatprep.mubr.bf16.mxu1 %v10459_v23  ;;  %v5976_v7 = vpop.f32.mrf.mxu0  ;;  %v8769_v17 = vld [vmem:[%s9959_s7 + $0x15e4] ss:$16 sps:$4 sm:$0xff]   ;;  %v8773_v30 = vld [vmem:[%s9959_s7 + $0x15c0] ss:$16 sps:$4 sm:$0xff]  }
 0x1a2   : > { %v6017_v45 = vpop.f32.mrf.mxu1  ;;  %v10473_v46 = vadd.f32 %v6015_v32, %v5975_v38  ;;  %6269 = vmatpush1.bf16.msra.mxu0 %v8725_v22  ;;  %v8772_v22 = vld [vmem:[%s9959_s7 + $0x17e4] ss:$16 sps:$4 sm:$0xff]   ;;  %v8776_v32 = vld [vmem:[%s9959_s7 + $0x17c0] ss:$16 sps:$4 sm:$0xff]  }
 0x1a3   : > { %6310 = vmatpush1.bf16.msra.mxu1 %v8728_v41  ;;  %v5977_v47 = vpop.f32.mrf.mxu0  ;;  %6270 = vmatprep.subr.bf16.mxu0 %v8733_v34  ;;  %v8767_v41 = vld [vmem:[%s9959_s7 + $0x15e0] ss:$16 sps:$4 sm:$0xff]   ;;  %v8775_v28 = vld [vmem:[%s9959_s7 + $0x15c4] ss:$16 sps:$4 sm:$0xff]  }
 0x1a4   : > { %v6018_v48 = vpop.f32.mrf.mxu1  ;;  %6311 = vmatprep.subr.bf16.mxu1 %v8736_v35  ;;  %v8778_v29 = vld [vmem:[%s9959_s7 + $0x17c4] ss:$16 sps:$4 sm:$0xff]   ;;  %v8779_v38 = vld [vmem:[%s9959_s7 + $0x15a0] ss:$16 sps:$4 sm:$0xff]  }
 0x1a5   : > { %v8781_v34 = vld [vmem:[%s9959_s7 + $0x15a4] ss:$16 sps:$4 sm:$0xff]   ;;  %v8785_v45 = vld [vmem:[%s9959_s7 + $0x1580] ss:$16 sps:$4 sm:$0xff]  }
 0x1a6   : > { %6271 = vmatpush1.bf16.msra.mxu0 %v8731_v40  ;;  %v8784_v35 = vld [vmem:[%s9959_s7 + $0x17a4] ss:$16 sps:$4 sm:$0xff]   ;;  %v8782_v40 = vld [vmem:[%s9959_s7 + $0x17a0] ss:$16 sps:$4 sm:$0xff]  }
 0x1a7   : > { %6312 = vmatpush1.bf16.msra.mxu1 %v8734_v33  ;;  %6272 = vmatprep.subr.bf16.mxu0 %v8739_v39  ;;  %v8787_v33 = vld [vmem:[%s9959_s7 + $0x1584] ss:$16 sps:$4 sm:$0xff]   ;;  %v8788_v47 = vld [vmem:[%s9959_s7 + $0x1780] ss:$16 sps:$4 sm:$0xff]  }
 0x1a8   : > { %6313 = vmatprep.subr.bf16.mxu1 %v8742_v51  ;;  %v8790_v7 = vld [vmem:[%s9959_s7 + $0x1784] ss:$16 sps:$4 sm:$0xff]   ;;  %v8791_v51 = vld [vmem:[%s9959_s7 + $0x1560] ss:$16 sps:$4 sm:$0xff]  }
 0x1a9   : > { %v8793_v48 = vld [vmem:[%s9959_s7 + $0x1564] ss:$16 sps:$4 sm:$0xff]  }
 0x1aa   : > { %6273 = vmatpush1.bf16.msra.mxu0 %v8737_v52  ;;  %v8796_v39 = vld [vmem:[%s9959_s7 + $0x1764] ss:$16 sps:$4 sm:$0xff]   ;;  %v8794_v52 = vld [vmem:[%s9959_s7 + $0x1760] ss:$16 sps:$4 sm:$0xff]  }
 0x1ab   : > { %6314 = vmatpush1.bf16.msra.mxu1 %v8740_v53  ;;  %6274 = vmatprep.subr.bf16.mxu0 %v8745_v54  ;;  %v8799_v53 = vld [vmem:[%s9959_s7 + $0x1544] ss:$16 sps:$4 sm:$0xff]  }
 0x1ac   : > { %6315 = vmatprep.subr.bf16.mxu1 %v8748_v36  ;;  %v8802_v54 = vld [vmem:[%s9959_s7 + $0x1744] ss:$16 sps:$4 sm:$0xff]   ;;  %v8797_v36 = vld [vmem:[%s9959_s7 + $0x1540] ss:$16 sps:$4 sm:$0xff]  }
 0x1ae   : > { %6275 = vmatpush1.bf16.msra.mxu0 %v8743_v57  ;;  %v8800_v57 = vld [vmem:[%s9959_s7 + $0x1740] ss:$16 sps:$4 sm:$0xff]  }
 0x1af   : > { %6316 = vmatpush1.bf16.msra.mxu1 %v8746_v58  ;;  %6276 = vmatprep.subr.bf16.mxu0 %v8751_v0  ;;  %v8805_v58 = vld [vmem:[%s9959_s7 + $0x1524] ss:$16 sps:$4 sm:$0xff]  }
 0x1b0   : > { %6317 = vmatprep.subr.bf16.mxu1 %v8754_v62  ;;  %v8808_v0 = vld [vmem:[%s9959_s7 + $0x1724] ss:$16 sps:$4 sm:$0xff]   ;;  %v10522_v62 = vld.sshfl [vmem:[%s9981_s27 + $0x18] sm:$0x33 pattern:$0x75316420] }
 0x1b2   : > { %6277 = vmatpush1.bf16.msra.mxu0 %v8749_v63  ;;  %v8803_v63 = vld [vmem:[%s9959_s7 + $0x1520] ss:$16 sps:$4 sm:$0xff]  }
 0x1b3   : > { %6318 = vmatpush1.bf16.msra.mxu1 %v8752_v2  ;;  %6278 = vmatprep.subr.bf16.mxu0 %v8757_v3  ;;  %v8806_v2 = vld [vmem:[%s9959_s7 + $0x1720] ss:$16 sps:$4 sm:$0xff]   ;;  %v8811_v3 = vld [vmem:[%s9959_s7 + $0x1504] ss:$16 sps:$4 sm:$0xff]  }
 0x1b4   : > { %6319 = vmatprep.subr.bf16.mxu1 %v8760_v6  ;;  %v8814_v6 = vld [vmem:[%s9959_s7 + $0x1704] ss:$16 sps:$4 sm:$0xff]  }
 0x1b6   : > { %6279 = vmatpush1.bf16.msra.mxu0 %v8755_v8  ;;  %v1331_v8 = vcombine.high %v10522_v62, %v10522_v62 }
 0x1b7   : > { %6320 = vmatpush1.bf16.msra.mxu1 %v8758_v9  ;;  %6280 = vmatprep.subr.bf16.mxu0 %v8763_v10  ;;  %v10532_v9 = vrot.slane %v10428_v59, %v10033_v50  ;;  %v8809_v10 = vld [vmem:[%s9959_s7 + $0x1500] ss:$16 sps:$4 sm:$0xff]  }
 0x1b8   : > { %6321 = vmatprep.subr.bf16.mxu1 %v8766_v11  ;;  %v8812_v11 = vld [vmem:[%s9959_s7 + $0x1700] ss:$16 sps:$4 sm:$0xff]  }
 0x1b9   : > { %v10545_v59 = vcombine.high %v10532_v9, %v10532_v9 }
 0x1ba   : > { %6281 = vmatpush1.bf16.msra.mxu0 %v8761_v12  ;;  %v8818_v12 = vld [vmem:[%s9959_s7 + $0x18e4] ss:$16 sps:$4 sm:$0xff]  }
 0x1bb   : > { %6322 = vmatpush1.bf16.msra.mxu1 %v8764_v16  ;;  %6282 = vmatprep.subr.bf16.mxu0 %v8769_v17  ;;  %v8821_v16 = vld [vmem:[%s9959_s7 + $0x1ae4] ss:$16 sps:$4 sm:$0xff]   ;;  %v8816_v17 = vld [vmem:[%s9959_s7 + $0x18e0] ss:$16 sps:$4 sm:$0xff]  }
 0x1bc   : > { %6323 = vmatprep.subr.bf16.mxu1 %v8772_v22  ;;  %v8819_v22 = vld [vmem:[%s9959_s7 + $0x1ae0] ss:$16 sps:$4 sm:$0xff]  }
 0x1be   : > { %6283 = vmatpush2.bf16.msra.mxu0 %v8767_v41  ;;  %v10541_v41 = vrot.slane %v1331_v8, %v10033_v50  ;;  %v8848_v8 = vld [vmem:[%s9959_s7 + $0x1844] ss:$16 sps:$4 sm:$0xff]  }
 0x1bf   : > { %6324 = vmatpush2.bf16.msra.mxu1 %v8770_v25  ;;  %6284 = vmatprep.subr.bf16.mxu0 %v8775_v28  ;;  %v8824_v25 = vld [vmem:[%s9959_s7 + $0x18c4] ss:$16 sps:$4 sm:$0xff]  }
 0x1c0   : > { %6325 = vmatprep.subr.bf16.mxu1 %v8778_v29  ;;  %v8827_v28 = vld [vmem:[%s9959_s7 + $0x1ac4] ss:$16 sps:$4 sm:$0xff]   ;;  %v8822_v29 = vld [vmem:[%s9959_s7 + $0x18c0] ss:$16 sps:$4 sm:$0xff]  }
 0x1c2   : > { %6285 = vmatpush2.bf16.msra.mxu0 %v8773_v30  ;;  %v8825_v30 = vld [vmem:[%s9959_s7 + $0x1ac0] ss:$16 sps:$4 sm:$0xff]  }
 0x1c3   : > { %6326 = vmatpush2.bf16.msra.mxu1 %v8776_v32  ;;  %6286 = vmatprep.subr.bf16.mxu0 %v8781_v34  ;;  %v10553_v32 = vcombine.high %v10541_v41, %v10541_v41 }
 0x1c4   : > { %6327 = vmatprep.subr.bf16.mxu1 %v8784_v35 }
 0x1c6   : > { %6287 = vmatpush2.bf16.msra.mxu0 %v8779_v38 }
 0x1c7   : > { %6328 = vmatpush2.bf16.msra.mxu1 %v8782_v40  ;;  %6288 = vmatprep.subr.bf16.mxu0 %v8787_v33 }
 0x1c8   : > { %6329 = vmatprep.subr.bf16.mxu1 %v8790_v7  ;;  %v8830_v7 = vld [vmem:[%s9959_s7 + $0x18a4] ss:$16 sps:$4 sm:$0xff]  }
 0x1ca   : > { %6289 = vmatpush2.bf16.msra.mxu0 %v8785_v45  ;;  %v8833_v45 = vld [vmem:[%s9959_s7 + $0x1aa4] ss:$16 sps:$4 sm:$0xff]  }
 0x1cb   : > { %6330 = vmatpush2.bf16.msra.mxu1 %v8788_v47  ;;  %6290 = vmatprep.subr.bf16.mxu0 %v8793_v48 }
 0x1cc   : > { %6331 = vmatprep.subr.bf16.mxu1 %v8796_v39  ;;  %v8828_v39 = vld [vmem:[%s9959_s7 + $0x18a0] ss:$16 sps:$4 sm:$0xff]  }
 0x1ce   : > { %6291 = vmatpush2.bf16.msra.mxu0 %v8791_v51  ;;  %v8831_v51 = vld [vmem:[%s9959_s7 + $0x1aa0] ss:$16 sps:$4 sm:$0xff]  }
 0x1cf   : > { %6332 = vmatpush2.bf16.msra.mxu1 %v8794_v52  ;;  %6292 = vmatprep.subr.bf16.mxu0 %v8799_v53 }
 0x1d0   : > { %6333 = vmatprep.subr.bf16.mxu1 %v8802_v54 }
 0x1d2   : > { %6293 = vmatpush2.bf16.msra.mxu0 %v8797_v36 }
 0x1d3   : > { %6334 = vmatpush2.bf16.msra.mxu1 %v8800_v57  ;;  %6294 = vmatprep.subr.bf16.mxu0 %v8805_v58  ;;  %v8839_v57 = vld [vmem:[%s9959_s7 + $0x1a84] ss:$16 sps:$4 sm:$0xff]   ;;  %v8834_v58 = vld [vmem:[%s9959_s7 + $0x1880] ss:$16 sps:$4 sm:$0xff]  }
 0x1d4   : > { %6335 = vmatprep.subr.bf16.mxu1 %v8808_v0  ;;  %v8837_v0 = vld [vmem:[%s9959_s7 + $0x1a80] ss:$16 sps:$4 sm:$0xff]  }
 0x1d6   : > { %6295 = vmatpush2.bf16.msra.mxu0 %v8803_v63  ;;  %v8842_v63 = vld [vmem:[%s9959_s7 + $0x1864] ss:$16 sps:$4 sm:$0xff]  }
 0x1d7   : > { %6336 = vmatpush2.bf16.msra.mxu1 %v8806_v2  ;;  %6296 = vmatprep.subr.bf16.mxu0 %v8811_v3  ;;  %v8845_v2 = vld [vmem:[%s9959_s7 + $0x1a64] ss:$16 sps:$4 sm:$0xff]   ;;  %v8840_v3 = vld [vmem:[%s9959_s7 + $0x1860] ss:$16 sps:$4 sm:$0xff]  }
 0x1d8   : > { %6337 = vmatprep.subr.bf16.mxu1 %v8814_v6  ;;  %v8843_v6 = vld [vmem:[%s9959_s7 + $0x1a60] ss:$16 sps:$4 sm:$0xff]  }
 0x1da   : > { %6297 = vmatpush2.bf16.msra.mxu0 %v8809_v10  ;;  %v8851_v10 = vld [vmem:[%s9959_s7 + $0x1a44] ss:$16 sps:$4 sm:$0xff]  }
 0x1db   : > { %6338 = vmatpush2.bf16.msra.mxu1 %v8812_v11  ;;  %6348 = vmatprep.subr.bf16.mxu0 %v8818_v12  ;;  %v8846_v11 = vld [vmem:[%s9959_s7 + $0x1840] ss:$16 sps:$4 sm:$0xff]  }
 0x1dc   : > { %6389 = vmatprep.subr.bf16.mxu1 %v8821_v16  ;;  %v8849_v12 = vld [vmem:[%s9959_s7 + $0x1a40] ss:$16 sps:$4 sm:$0xff]   ;;  %v8854_v16 = vld [vmem:[%s9959_s7 + $0x1824] ss:$16 sps:$4 sm:$0xff]  }
 0x1dd   : > { %v6054_v34 = vpop.f32.mrf.mxu0  ;;  %6299 = vmatmul.mubr.bf16.vlgmr.msra.gmra.mxu0 %v10532_v9 }
 0x1de   : > { %v6095_v35 = vpop.f32.mrf.mxu1  ;;  %6340 = vmatmul.mubr.bf16.vlgmr.msra.gmra.mxu1 %v10545_v59  ;;  %v6055_v38 = vadd.f32 %v6054_v34, %v10466_v37  ;;  %6349 = vmatpush1.bf16.msra.mxu0 %v8816_v17  ;;  %v8857_v17 = vld [vmem:[%s9959_s7 + $0x1a24] ss:$16 sps:$4 sm:$0xff]   ;;  %v8861_v34 = vld [vmem:[%s9959_s7 + $0x1a00] ss:$16 sps:$4 sm:$0xff]  }
 0x1df   : > { %6390 = vmatpush1.bf16.msra.mxu1 %v8819_v22  ;;  %v6056_v40 = vpop.f32.mrf.mxu0  ;;  %6350 = vmatprep.subr.bf16.mxu0 %v8824_v25  ;;  %v8852_v22 = vld [vmem:[%s9959_s7 + $0x1820] ss:$16 sps:$4 sm:$0xff]  }
 0x1e0   : > { %v6097_v33 = vpop.f32.mrf.mxu1  ;;  %6391 = vmatprep.subr.bf16.mxu1 %v8827_v28  ;;  %v10560_v47 = vadd.f32 %v6095_v35, %v6055_v38  ;;  %v6057_v48 = vadd.f32 %v6056_v40, %v10473_v46  ;;  %6380 = vmatprep.mubr.bf16.mxu0 %v10541_v41  ;;  %v8836_v46 = vld [vmem:[%s9959_s7 + $0x1884] ss:$16 sps:$4 sm:$0xff]   ;;  %v8855_v25 = vld [vmem:[%s9959_s7 + $0x1a20] ss:$16 sps:$4 sm:$0xff]  }
 0x1e1   : > { %6421 = vmatprep.mubr.bf16.mxu1 %v10553_v32  ;;  %v6058_v37 = vpop.f32.mrf.mxu0  ;;  %v8860_v28 = vld [vmem:[%s9959_s7 + $0x1804] ss:$16 sps:$4 sm:$0xff]   ;;  %v8864_v40 = vld [vmem:[%s9959_s7 + $0x19e0] ss:$16 sps:$4 sm:$0xff]  }
 0x1e2   : > { %v6099_v52 = vpop.f32.mrf.mxu1  ;;  %v10567_v53 = vadd.f32 %v6097_v33, %v6057_v48  ;;  %6351 = vmatpush1.bf16.msra.mxu0 %v8822_v29  ;;  %v8863_v29 = vld [vmem:[%s9959_s7 + $0x1a04] ss:$16 sps:$4 sm:$0xff]   ;;  %v8867_v33 = vld [vmem:[%s9959_s7 + $0x1be0] ss:$16 sps:$4 sm:$0xff]  }
 0x1e3   : > { %6392 = vmatpush1.bf16.msra.mxu1 %v8825_v30  ;;  %v6059_v54 = vpop.f32.mrf.mxu0  ;;  %6352 = vmatprep.subr.bf16.mxu0 %v8830_v7  ;;  %v8858_v30 = vld [vmem:[%s9959_s7 + $0x1800] ss:$16 sps:$4 sm:$0xff]   ;;  %v8866_v35 = vld [vmem:[%s9959_s7 + $0x19e4] ss:$16 sps:$4 sm:$0xff]  }
 0x1e4   : > { %v6100_v36 = vpop.f32.mrf.mxu1  ;;  %6393 = vmatprep.subr.bf16.mxu1 %v8833_v45  ;;  %v8869_v38 = vld [vmem:[%s9959_s7 + $0x1be4] ss:$16 sps:$4 sm:$0xff]   ;;  %v8870_v48 = vld [vmem:[%s9959_s7 + $0x19c0] ss:$16 sps:$4 sm:$0xff]  }
 0x1e5   : > { %v8872_v7 = vld [vmem:[%s9959_s7 + $0x19c4] ss:$16 sps:$4 sm:$0xff]   ;;  %v8876_v52 = vld [vmem:[%s9959_s7 + $0x19a0] ss:$16 sps:$4 sm:$0xff]  }
 0x1e6   : > { %6353 = vmatpush1.bf16.msra.mxu0 %v8828_v39  ;;  %v8875_v45 = vld [vmem:[%s9959_s7 + $0x1bc4] ss:$16 sps:$4 sm:$0xff]   ;;  %v8873_v39 = vld [vmem:[%s9959_s7 + $0x1bc0] ss:$16 sps:$4 sm:$0xff]  }
 0x1e7   : > { %6394 = vmatpush1.bf16.msra.mxu1 %v8831_v51  ;;  %6354 = vmatprep.subr.bf16.mxu0 %v8836_v46  ;;  %v8878_v51 = vld [vmem:[%s9959_s7 + $0x19a4] ss:$16 sps:$4 sm:$0xff]   ;;  %v8879_v54 = vld [vmem:[%s9959_s7 + $0x1ba0] ss:$16 sps:$4 sm:$0xff]  }
 0x1e8   : > { %6395 = vmatprep.subr.bf16.mxu1 %v8839_v57  ;;  %v8881_v37 = vld [vmem:[%s9959_s7 + $0x1ba4] ss:$16 sps:$4 sm:$0xff]   ;;  %v8882_v57 = vld [vmem:[%s9959_s7 + $0x1980] ss:$16 sps:$4 sm:$0xff]  }
 0x1e9   : > { %v8884_v36 = vld [vmem:[%s9959_s7 + $0x1984] ss:$16 sps:$4 sm:$0xff]  }
 0x1ea   : > { %6355 = vmatpush1.bf16.msra.mxu0 %v8834_v58  ;;  %v8887_v46 = vld [vmem:[%s9959_s7 + $0x1b84] ss:$16 sps:$4 sm:$0xff]   ;;  %v8885_v58 = vld [vmem:[%s9959_s7 + $0x1b80] ss:$16 sps:$4 sm:$0xff]  }
 0x1eb   : > { %6396 = vmatpush1.bf16.msra.mxu1 %v8837_v0  ;;  %6356 = vmatprep.subr.bf16.mxu0 %v8842_v63  ;;  %v8890_v0 = vld [vmem:[%s9959_s7 + $0x1964] ss:$16 sps:$4 sm:$0xff]  }
 0x1ec   : > { %6397 = vmatprep.subr.bf16.mxu1 %v8845_v2  ;;  %v8893_v63 = vld [vmem:[%s9959_s7 + $0x1b64] ss:$16 sps:$4 sm:$0xff]   ;;  %v8888_v2 = vld [vmem:[%s9959_s7 + $0x1960] ss:$16 sps:$4 sm:$0xff]  }
 0x1ee   : > { %6357 = vmatpush1.bf16.msra.mxu0 %v8840_v3  ;;  %v8891_v3 = vld [vmem:[%s9959_s7 + $0x1b60] ss:$16 sps:$4 sm:$0xff]  }
 0x1ef   : > { %6398 = vmatpush1.bf16.msra.mxu1 %v8843_v6  ;;  %6358 = vmatprep.subr.bf16.mxu0 %v8848_v8  ;;  %v8896_v6 = vld [vmem:[%s9959_s7 + $0x1944] ss:$16 sps:$4 sm:$0xff]  }
 0x1f0   : > { %6399 = vmatprep.subr.bf16.mxu1 %v8851_v10  ;;  %v8899_v8 = vld [vmem:[%s9959_s7 + $0x1b44] ss:$16 sps:$4 sm:$0xff]   ;;  %v8894_v10 = vld [vmem:[%s9959_s7 + $0x1940] ss:$16 sps:$4 sm:$0xff]  }
 0x1f2   : > { %6359 = vmatpush1.bf16.msra.mxu0 %v8846_v11  ;;  %v8897_v11 = vld [vmem:[%s9959_s7 + $0x1b40] ss:$16 sps:$4 sm:$0xff]  }
 0x1f3   : > { %6400 = vmatpush1.bf16.msra.mxu1 %v8849_v12  ;;  %6360 = vmatprep.subr.bf16.mxu0 %v8854_v16  ;;  %v8902_v12 = vld [vmem:[%s9959_s7 + $0x1924] ss:$16 sps:$4 sm:$0xff]  }
 0x1f4   : > { %6401 = vmatprep.subr.bf16.mxu1 %v8857_v17  ;;  %v8905_v16 = vld [vmem:[%s9959_s7 + $0x1b24] ss:$16 sps:$4 sm:$0xff]   ;;  %v8900_v17 = vld [vmem:[%s9959_s7 + $0x1920] ss:$16 sps:$4 sm:$0xff]  }
 0x1f6   : > { %6361 = vmatpush1.bf16.msra.mxu0 %v8852_v22  ;;  %v8903_v22 = vld [vmem:[%s9959_s7 + $0x1b20] ss:$16 sps:$4 sm:$0xff]  }
 0x1f7   : > { %6402 = vmatpush1.bf16.msra.mxu1 %v8855_v25  ;;  %6362 = vmatprep.subr.bf16.mxu0 %v8860_v28  ;;  %v8908_v25 = vld [vmem:[%s9959_s7 + $0x1904] ss:$16 sps:$4 sm:$0xff]  }
 0x1f8   : > { %6403 = vmatprep.subr.bf16.mxu1 %v8863_v29  ;;  %v8911_v28 = vld [vmem:[%s9959_s7 + $0x1b04] ss:$16 sps:$4 sm:$0xff]   ;;  %v10621_v29 = vrot.slane %v10522_v62, %v10033_v50  ;;  %v8920_v50 = vld [vmem:[%s9959_s7 + $0xcc] ss:$16 sps:$4 sm:$0xff]  }
 0x1f9   : > { %v8923_v62 = vld [vmem:[%s9959_s7 + $0x2cc] ss:$16 sps:$4 sm:$0xff]  }
 0x1fa   : > { %6363 = vmatpush1.bf16.msra.mxu0 %v8858_v30  ;;  %v8906_v30 = vld [vmem:[%s9959_s7 + $0x1900] ss:$16 sps:$4 sm:$0xff]  }
 0x1fb   : > { %6404 = vmatpush1.bf16.msra.mxu1 %v8861_v34  ;;  %6364 = vmatprep.subr.bf16.mxu0 %v8866_v35  ;;  %v8909_v34 = vld [vmem:[%s9959_s7 + $0x1b00] ss:$16 sps:$4 sm:$0xff]   ;;  %v8914_v35 = vld [vmem:[%s9959_s7 + $0xec] ss:$16 sps:$4 sm:$0xff]  }
 0x1fc   : > { %6405 = vmatprep.subr.bf16.mxu1 %v8869_v38  ;;  %v8917_v38 = vld [vmem:[%s9959_s7 + $0x2ec] ss:$16 sps:$4 sm:$0xff]  }
 0x1fe   : > { %6365 = vmatpush2.bf16.msra.mxu0 %v8864_v40  ;;  %v8912_v40 = vld [vmem:[%s9959_s7 + $0xe8] ss:$16 sps:$4 sm:$0xff]  }
 0x1ff   : > { %6406 = vmatpush2.bf16.msra.mxu1 %v8867_v33  ;;  %6366 = vmatprep.subr.bf16.mxu0 %v8872_v7  ;;  %v8915_v33 = vld [vmem:[%s9959_s7 + $0x2e8] ss:$16 sps:$4 sm:$0xff]   ;;  %v10631_v7 = vcombine.high %v10621_v29, %v10621_v29 }
 0x200   : > { %6407 = vmatprep.subr.bf16.mxu1 %v8875_v45  ;;  %v8918_v45 = vld [vmem:[%s9959_s7 + $0xc8] ss:$16 sps:$4 sm:$0xff]  }
 0x202   : > { %6367 = vmatpush2.bf16.msra.mxu0 %v8870_v48  ;;  %v8921_v48 = vld [vmem:[%s9959_s7 + $0x2c8] ss:$16 sps:$4 sm:$0xff]  }
 0x203   : > { %6408 = vmatpush2.bf16.msra.mxu1 %v8873_v39  ;;  %6368 = vmatprep.subr.bf16.mxu0 %v8878_v51 }
 0x204   : > { %6409 = vmatprep.subr.bf16.mxu1 %v8881_v37 }
 0x206   : > { %6369 = vmatpush2.bf16.msra.mxu0 %v8876_v52 }
 0x207   : > { %6410 = vmatpush2.bf16.msra.mxu1 %v8879_v54  ;;  %6370 = vmatprep.subr.bf16.mxu0 %v8884_v36  ;;  %v8926_v36 = vld [vmem:[%s9959_s7 + $0xac] ss:$16 sps:$4 sm:$0xff]  }
 0x208   : > { %6411 = vmatprep.subr.bf16.mxu1 %v8887_v46  ;;  %v8929_v46 = vld [vmem:[%s9959_s7 + $0x2ac] ss:$16 sps:$4 sm:$0xff]  }
 0x20a   : > { %6371 = vmatpush2.bf16.msra.mxu0 %v8882_v57 }
 0x20b   : > { %6412 = vmatpush2.bf16.msra.mxu1 %v8885_v58  ;;  %6372 = vmatprep.subr.bf16.mxu0 %v8890_v0  ;;  %v8924_v0 = vld [vmem:[%s9959_s7 + $0xa8] ss:$16 sps:$4 sm:$0xff]  }
 0x20c   : > { %6413 = vmatprep.subr.bf16.mxu1 %v8893_v63  ;;  %v8927_v63 = vld [vmem:[%s9959_s7 + $0x2a8] ss:$16 sps:$4 sm:$0xff]  }
 0x20e   : > { %6373 = vmatpush2.bf16.msra.mxu0 %v8888_v2 }
 0x20f   : > { %6414 = vmatpush2.bf16.msra.mxu1 %v8891_v3  ;;  %6374 = vmatprep.subr.bf16.mxu0 %v8896_v6 }
 0x210   : > { %6415 = vmatprep.subr.bf16.mxu1 %v8899_v8 }
 0x212   : > { %6375 = vmatpush2.bf16.msra.mxu0 %v8894_v10  ;;  %v8933_v10 = vld [vmem:[%s9959_s7 + $0x288] ss:$16 sps:$4 sm:$0xff]  }
 0x213   : > { %6416 = vmatpush2.bf16.msra.mxu1 %v8897_v11  ;;  %6376 = vmatprep.subr.bf16.mxu0 %v8902_v12  ;;  %v8938_v11 = vld [vmem:[%s9959_s7 + $0x6c] ss:$16 sps:$4 sm:$0xff]  }
 0x214   : > { %6417 = vmatprep.subr.bf16.mxu1 %v8905_v16  ;;  %v8941_v12 = vld [vmem:[%s9959_s7 + $0x26c] ss:$16 sps:$4 sm:$0xff]   ;;  %v8936_v16 = vld [vmem:[%s9959_s7 + $0x68] ss:$16 sps:$4 sm:$0xff]  }
 0x216   : > { %6377 = vmatpush2.bf16.msra.mxu0 %v8900_v17  ;;  %v8939_v17 = vld [vmem:[%s9959_s7 + $0x268] ss:$16 sps:$4 sm:$0xff]  }
 0x217   : > { %6418 = vmatpush2.bf16.msra.mxu1 %v8903_v22  ;;  %6378 = vmatprep.subr.bf16.mxu0 %v8908_v25  ;;  %v8944_v22 = vld [vmem:[%s9959_s7 + $0x4c] ss:$16 sps:$4 sm:$0xff]  }
 0x218   : > { %6419 = vmatprep.subr.bf16.mxu1 %v8911_v28  ;;  %v8947_v25 = vld [vmem:[%s9959_s7 + $0x24c] ss:$16 sps:$4 sm:$0xff]   ;;  %v8942_v28 = vld [vmem:[%s9959_s7 + $0x48] ss:$16 sps:$4 sm:$0xff]  }
 0x21a   : > { %6379 = vmatpush2.bf16.msra.mxu0 %v8906_v30  ;;  %v8945_v30 = vld [vmem:[%s9959_s7 + $0x248] ss:$16 sps:$4 sm:$0xff]  }
 0x21b   : > { %6420 = vmatpush2.bf16.msra.mxu1 %v8909_v34  ;;  %6430 = vmatprep.subr.bf16.mxu0 %v8914_v35  ;;  %v8950_v34 = vld [vmem:[%s9959_s7 + $0x2c] ss:$16 sps:$4 sm:$0xff]  }
 0x21c   : > { %6471 = vmatprep.subr.bf16.mxu1 %v8917_v38  ;;  %v8953_v35 = vld [vmem:[%s9959_s7 + $0x22c] ss:$16 sps:$4 sm:$0xff]   ;;  %v8948_v38 = vld [vmem:[%s9959_s7 + $0x28] ss:$16 sps:$4 sm:$0xff]  }
 0x21d   : > { %v6136_v39 = vpop.f32.mrf.mxu0  ;;  %6381 = vmatmul.mubr.bf16.vlgmr.msra.gmra.mxu0 %v10621_v29 }
 0x21e   : > { %v6177_v51 = vpop.f32.mrf.mxu1  ;;  %6422 = vmatmul.mubr.bf16.vlgmr.msra.gmra.mxu1 %v10631_v7  ;;  %v6137_v37 = vadd.f32 %v6136_v39, %v10560_v47  ;;  %6431 = vmatpush1.bf16.msra.mxu0 %v8912_v40  ;;  %v8951_v40 = vld [vmem:[%s9959_s7 + $0x228] ss:$16 sps:$4 sm:$0xff]   ;;  %v8965_v39 = vld [vmem:[%s9959_s7 + $0x3ec] ss:$16 sps:$4 sm:$0xff]  }
 0x21f   : > { %6472 = vmatpush1.bf16.msra.mxu1 %v8915_v33  ;;  %v6138_v52 = vpop.f32.mrf.mxu0  ;;  %6432 = vmatprep.subr.bf16.mxu0 %v8920_v50  ;;  %v8956_v33 = vld [vmem:[%s9959_s7 + $0xc] ss:$16 sps:$4 sm:$0xff]  }
 0x220   : > { %v6179_v54 = vpop.f32.mrf.mxu1  ;;  %6473 = vmatprep.subr.bf16.mxu1 %v8923_v62  ;;  %v10642_v57 = vadd.f32 %v6177_v51, %v6137_v37  ;;  %v6139_v58 = vadd.f32 %v6138_v52, %v10567_v53  ;;  %6462 = vmatprep.mubr.bf16.mxu0 %v10045_v61  ;;  %v8932_v53 = vld [vmem:[%s9959_s7 + $0x8c] ss:$16 sps:$4 sm:$0xff]   ;;  %v8954_v62 = vld [vmem:[%s9959_s7 + $0x8] ss:$16 sps:$4 sm:$0xff]  }
 0x221   : > { %6503 = vmatprep.mubr.bf16.mxu1 %v10052_v1  ;;  %v6140_v47 = vpop.f32.mrf.mxu0  ;;  %v8935_v61 = vld [vmem:[%s9959_s7 + $0x28c] ss:$16 sps:$4 sm:$0xff]   ;;  %v8930_v1 = vld [vmem:[%s9959_s7 + $0x88] ss:$16 sps:$4 sm:$0xff]  }
 0x222   : > { %v6181_v2 = vpop.f32.mrf.mxu1  ;;  %v10649_v3 = vadd.f32 %v6179_v54, %v6139_v58  ;;  %6433 = vmatpush1.bf16.msra.mxu0 %v8918_v45  ;;  %v8959_v50 = vld [vmem:[%s9959_s7 + $0x20c] ss:$16 sps:$4 sm:$0xff]   ;;  %v8957_v45 = vld [vmem:[%s9959_s7 + $0x208] ss:$16 sps:$4 sm:$0xff]  }
 0x223   : > { %6474 = vmatpush1.bf16.msra.mxu1 %v8921_v48  ;;  %v6141_v6 = vpop.f32.mrf.mxu0  ;;  %6434 = vmatprep.subr.bf16.mxu0 %v8926_v36  ;;  %v8962_v48 = vld [vmem:[%s9959_s7 + $0x1ec] ss:$16 sps:$4 sm:$0xff]   ;;  %v8960_v51 = vld [vmem:[%s9959_s7 + $0x1e8] ss:$16 sps:$4 sm:$0xff]  }
 0x224   : > { %v6182_v8 = vpop.f32.mrf.mxu1  ;;  %6475 = vmatprep.subr.bf16.mxu1 %v8929_v46  ;;  %v8963_v37 = vld [vmem:[%s9959_s7 + $0x3e8] ss:$16 sps:$4 sm:$0xff]   ;;  %v8968_v52 = vld [vmem:[%s9959_s7 + $0x1cc] ss:$16 sps:$4 sm:$0xff]  }
 0x225   : > { %v8971_v54 = vld [vmem:[%s9959_s7 + $0x3cc] ss:$16 sps:$4 sm:$0xff]   ;;  %v8966_v36 = vld [vmem:[%s9959_s7 + $0x1c8] ss:$16 sps:$4 sm:$0xff]  }
 0x226   : > { %6435 = vmatpush1.bf16.msra.mxu0 %v8924_v0  ;;  %v8969_v46 = vld [vmem:[%s9959_s7 + $0x3c8] ss:$16 sps:$4 sm:$0xff]   ;;  %v8974_v58 = vld [vmem:[%s9959_s7 + $0x1ac] ss:$16 sps:$4 sm:$0xff]  }
 0x227   : > { %6476 = vmatpush1.bf16.msra.mxu1 %v8927_v63  ;;  %6436 = vmatprep.subr.bf16.mxu0 %v8932_v53  ;;  %v8977_v0 = vld [vmem:[%s9959_s7 + $0x3ac] ss:$16 sps:$4 sm:$0xff]   ;;  %v8972_v63 = vld [vmem:[%s9959_s7 + $0x1a8] ss:$16 sps:$4 sm:$0xff]  }
 0x228   : > { %6477 = vmatprep.subr.bf16.mxu1 %v8935_v61  ;;  %v8975_v47 = vld [vmem:[%s9959_s7 + $0x3a8] ss:$16 sps:$4 sm:$0xff]   ;;  %v8980_v2 = vld [vmem:[%s9959_s7 + $0x18c] ss:$16 sps:$4 sm:$0xff]  }
 0x229   : > { %v8983_v6 = vld [vmem:[%s9959_s7 + $0x38c] ss:$16 sps:$4 sm:$0xff]   ;;  %v8978_v8 = vld [vmem:[%s9959_s7 + $0x188] ss:$16 sps:$4 sm:$0xff]  }
 0x22a   : > { %6437 = vmatpush1.bf16.msra.mxu0 %v8930_v1  ;;  %v8981_v53 = vld [vmem:[%s9959_s7 + $0x388] ss:$16 sps:$4 sm:$0xff]   ;;  %v8986_v61 = vld [vmem:[%s9959_s7 + $0x16c] ss:$16 sps:$4 sm:$0xff]  }
 0x22b   : > { %6478 = vmatpush1.bf16.msra.mxu1 %v8933_v10  ;;  %6438 = vmatprep.subr.bf16.mxu0 %v8938_v11  ;;  %v8989_v1 = vld [vmem:[%s9959_s7 + $0x36c] ss:$16 sps:$4 sm:$0xff]   ;;  %v8984_v10 = vld [vmem:[%s9959_s7 + $0x168] ss:$16 sps:$4 sm:$0xff]  }
 0x22c   : > { %6479 = vmatprep.subr.bf16.mxu1 %v8941_v12  ;;  %v8987_v11 = vld [vmem:[%s9959_s7 + $0x368] ss:$16 sps:$4 sm:$0xff]   ;;  %v8992_v12 = vld [vmem:[%s9959_s7 + $0x14c] ss:$16 sps:$4 sm:$0xff]  }
 0x22e   : > { %6439 = vmatpush1.bf16.msra.mxu0 %v8936_v16  ;;  %v8995_v16 = vld [vmem:[%s9959_s7 + $0x34c] ss:$16 sps:$4 sm:$0xff]  }
 0x22f   : > { %6480 = vmatpush1.bf16.msra.mxu1 %v8939_v17  ;;  %6440 = vmatprep.subr.bf16.mxu0 %v8944_v22  ;;  %v8990_v17 = vld [vmem:[%s9959_s7 + $0x148] ss:$16 sps:$4 sm:$0xff]  }
 0x230   : > { %6481 = vmatprep.subr.bf16.mxu1 %v8947_v25  ;;  %v8993_v22 = vld [vmem:[%s9959_s7 + $0x348] ss:$16 sps:$4 sm:$0xff]   ;;  %v8998_v25 = vld [vmem:[%s9959_s7 + $0x12c] ss:$16 sps:$4 sm:$0xff]  }
 0x232   : > { %6441 = vmatpush1.bf16.msra.mxu0 %v8942_v28  ;;  %v9001_v28 = vld [vmem:[%s9959_s7 + $0x32c] ss:$16 sps:$4 sm:$0xff]  }
 0x233   : > { %6482 = vmatpush1.bf16.msra.mxu1 %v8945_v30  ;;  %6442 = vmatprep.subr.bf16.mxu0 %v8950_v34  ;;  %v8996_v30 = vld [vmem:[%s9959_s7 + $0x128] ss:$16 sps:$4 sm:$0xff]  }
 0x234   : > { %6483 = vmatprep.subr.bf16.mxu1 %v8953_v35  ;;  %v8999_v34 = vld [vmem:[%s9959_s7 + $0x328] ss:$16 sps:$4 sm:$0xff]   ;;  %v9004_v35 = vld [vmem:[%s9959_s7 + $0x10c] ss:$16 sps:$4 sm:$0xff]  }
 0x236   : > { %6443 = vmatpush1.bf16.msra.mxu0 %v8948_v38  ;;  %v9007_v38 = vld [vmem:[%s9959_s7 + $0x30c] ss:$16 sps:$4 sm:$0xff]  }
 0x237   : > { %6484 = vmatpush1.bf16.msra.mxu1 %v8951_v40  ;;  %6444 = vmatprep.subr.bf16.mxu0 %v8956_v33  ;;  %v9002_v40 = vld [vmem:[%s9959_s7 + $0x108] ss:$16 sps:$4 sm:$0xff]  }
 0x238   : > { %6485 = vmatprep.subr.bf16.mxu1 %v8959_v50  ;;  %v9005_v33 = vld [vmem:[%s9959_s7 + $0x308] ss:$16 sps:$4 sm:$0xff]   ;;  %v9010_v50 = vld [vmem:[%s9959_s7 + $0x4ec] ss:$16 sps:$4 sm:$0xff]  }
 0x23a   : > { %6445 = vmatpush1.bf16.msra.mxu0 %v8954_v62  ;;  %v9013_v62 = vld [vmem:[%s9959_s7 + $0x6ec] ss:$16 sps:$4 sm:$0xff]  }
 0x23b   : > { %6486 = vmatpush1.bf16.msra.mxu1 %v8957_v45  ;;  %6446 = vmatprep.subr.bf16.mxu0 %v8962_v48  ;;  %v9008_v45 = vld [vmem:[%s9959_s7 + $0x4e8] ss:$16 sps:$4 sm:$0xff]  }
 0x23c   : > { %6487 = vmatprep.subr.bf16.mxu1 %v8965_v39  ;;  %v9011_v48 = vld [vmem:[%s9959_s7 + $0x6e8] ss:$16 sps:$4 sm:$0xff]   ;;  %v9016_v39 = vld [vmem:[%s9959_s7 + $0x4cc] ss:$16 sps:$4 sm:$0xff]  }
 0x23e   : > { %6447 = vmatpush2.bf16.msra.mxu0 %v8960_v51  ;;  %v9019_v51 = vld [vmem:[%s9959_s7 + $0x6cc] ss:$16 sps:$4 sm:$0xff]  }
 0x23f   : > { %6488 = vmatpush2.bf16.msra.mxu1 %v8963_v37  ;;  %6448 = vmatprep.subr.bf16.mxu0 %v8968_v52 }
 0x240   : > { %6489 = vmatprep.subr.bf16.mxu1 %v8971_v54 }
 0x242   : > { %6449 = vmatpush2.bf16.msra.mxu0 %v8966_v36  ;;  %v9014_v36 = vld [vmem:[%s9959_s7 + $0x4c8] ss:$16 sps:$4 sm:$0xff]  }
 0x243   : > { %6490 = vmatpush2.bf16.msra.mxu1 %v8969_v46  ;;  %6450 = vmatprep.subr.bf16.mxu0 %v8974_v58  ;;  %v9017_v46 = vld [vmem:[%s9959_s7 + $0x6c8] ss:$16 sps:$4 sm:$0xff]  }
 0x244   : > { %6491 = vmatprep.subr.bf16.mxu1 %v8977_v0 }
 0x246   : > { %6451 = vmatpush2.bf16.msra.mxu0 %v8972_v63  ;;  %v9022_v63 = vld [vmem:[%s9959_s7 + $0x4ac] ss:$16 sps:$4 sm:$0xff]  }
 0x247   : > { %6492 = vmatpush2.bf16.msra.mxu1 %v8975_v47  ;;  %6452 = vmatprep.subr.bf16.mxu0 %v8980_v2  ;;  %v9025_v47 = vld [vmem:[%s9959_s7 + $0x6ac] ss:$16 sps:$4 sm:$0xff]  }
 0x248   : > { %6493 = vmatprep.subr.bf16.mxu1 %v8983_v6 }
 0x24a   : > { %6453 = vmatpush2.bf16.msra.mxu0 %v8978_v8  ;;  %v9020_v8 = vld [vmem:[%s9959_s7 + $0x4a8] ss:$16 sps:$4 sm:$0xff]  }
 0x24b   : > { %6494 = vmatpush2.bf16.msra.mxu1 %v8981_v53  ;;  %6454 = vmatprep.subr.bf16.mxu0 %v8986_v61  ;;  %v9023_v53 = vld [vmem:[%s9959_s7 + $0x6a8] ss:$16 sps:$4 sm:$0xff]  }
 0x24c   : > { %6495 = vmatprep.subr.bf16.mxu1 %v8989_v1 }
 0x24e   : > { %6455 = vmatpush2.bf16.msra.mxu0 %v8984_v10  ;;  %v9029_v10 = vld [vmem:[%s9959_s7 + $0x688] ss:$16 sps:$4 sm:$0xff]  }
 0x24f   : > { %6496 = vmatpush2.bf16.msra.mxu1 %v8987_v11  ;;  %6456 = vmatprep.subr.bf16.mxu0 %v8992_v12  ;;  %v9034_v11 = vld [vmem:[%s9959_s7 + $0x46c] ss:$16 sps:$4 sm:$0xff]  }
 0x250   : > { %6497 = vmatprep.subr.bf16.mxu1 %v8995_v16  ;;  %v9037_v12 = vld [vmem:[%s9959_s7 + $0x66c] ss:$16 sps:$4 sm:$0xff]   ;;  %v9032_v16 = vld [vmem:[%s9959_s7 + $0x468] ss:$16 sps:$4 sm:$0xff]  }
 0x252   : > { %6457 = vmatpush2.bf16.msra.mxu0 %v8990_v17  ;;  %v9035_v17 = vld [vmem:[%s9959_s7 + $0x668] ss:$16 sps:$4 sm:$0xff]  }
 0x253   : > { %6498 = vmatpush2.bf16.msra.mxu1 %v8993_v22  ;;  %6458 = vmatprep.subr.bf16.mxu0 %v8998_v25  ;;  %v9040_v22 = vld [vmem:[%s9959_s7 + $0x44c] ss:$16 sps:$4 sm:$0xff]  }
 0x254   : > { %6499 = vmatprep.subr.bf16.mxu1 %v9001_v28  ;;  %v9043_v25 = vld [vmem:[%s9959_s7 + $0x64c] ss:$16 sps:$4 sm:$0xff]   ;;  %v9038_v28 = vld [vmem:[%s9959_s7 + $0x448] ss:$16 sps:$4 sm:$0xff]  }
 0x256   : > { %6459 = vmatpush2.bf16.msra.mxu0 %v8996_v30  ;;  %v9041_v30 = vld [vmem:[%s9959_s7 + $0x648] ss:$16 sps:$4 sm:$0xff]  }
 0x257   : > { %6500 = vmatpush2.bf16.msra.mxu1 %v8999_v34  ;;  %6460 = vmatprep.subr.bf16.mxu0 %v9004_v35  ;;  %v9046_v34 = vld [vmem:[%s9959_s7 + $0x42c] ss:$16 sps:$4 sm:$0xff]  }
 0x258   : > { %6501 = vmatprep.subr.bf16.mxu1 %v9007_v38  ;;  %v9049_v35 = vld [vmem:[%s9959_s7 + $0x62c] ss:$16 sps:$4 sm:$0xff]   ;;  %v9044_v38 = vld [vmem:[%s9959_s7 + $0x428] ss:$16 sps:$4 sm:$0xff]  }
 0x25a   : > { %6461 = vmatpush2.bf16.msra.mxu0 %v9002_v40  ;;  %v9047_v40 = vld [vmem:[%s9959_s7 + $0x628] ss:$16 sps:$4 sm:$0xff]  }
 0x25b   : > { %6502 = vmatpush2.bf16.msra.mxu1 %v9005_v33  ;;  %6512 = vmatprep.subr.bf16.mxu0 %v9010_v50  ;;  %v9052_v33 = vld [vmem:[%s9959_s7 + $0x40c] ss:$16 sps:$4 sm:$0xff]  }
 0x25c   : > { %6553 = vmatprep.subr.bf16.mxu1 %v9013_v62  ;;  %v9055_v50 = vld [vmem:[%s9959_s7 + $0x60c] ss:$16 sps:$4 sm:$0xff]   ;;  %v9050_v62 = vld [vmem:[%s9959_s7 + $0x408] ss:$16 sps:$4 sm:$0xff]  }
 0x25d   : > { %v6218_v37 = vpop.f32.mrf.mxu0  ;;  %6463 = vmatmul.mubr.bf16.vlgmr.msra.gmra.mxu0 %v10071_v14 }
 0x25e   : > { %v6259_v52 = vpop.f32.mrf.mxu1  ;;  %6504 = vmatmul.mubr.bf16.vlgmr.msra.gmra.mxu1 %v10081_v19  ;;  %v6219_v54 = vadd.f32 %v6218_v37, %v10642_v57  ;;  %6513 = vmatpush1.bf16.msra.mxu0 %v9008_v45  ;;  %v9053_v45 = vld [vmem:[%s9959_s7 + $0x608] ss:$16 sps:$4 sm:$0xff]  }
 0x25f   : > { %6554 = vmatpush1.bf16.msra.mxu1 %v9011_v48  ;;  %v6220_v58 = vpop.f32.mrf.mxu0  ;;  %6514 = vmatprep.subr.bf16.mxu0 %v9016_v39  ;;  %v9058_v48 = vld [vmem:[%s9959_s7 + $0x5ec] ss:$16 sps:$4 sm:$0xff]   ;;  %v9059_v37 = vld [vmem:[%s9959_s7 + $0x7e8] ss:$16 sps:$4 sm:$0xff]  }
 0x260   : > { %v6261_v0 = vpop.f32.mrf.mxu1  ;;  %6555 = vmatprep.subr.bf16.mxu1 %v9019_v51  ;;  %v10716_v2 = vadd.f32 %v6259_v52, %v6219_v54  ;;  %v6221_v14 = vadd.f32 %v6220_v58, %v10649_v3  ;;  %6544 = vmatprep.mubr.bf16.mxu0 %v10077_v18  ;;  %v9028_v18 = vld [vmem:[%s9959_s7 + $0x48c] ss:$16 sps:$4 sm:$0xff]   ;;  %v9026_v3 = vld [vmem:[%s9959_s7 + $0x488] ss:$16 sps:$4 sm:$0xff]  }
 0x261   : > { %6585 = vmatprep.mubr.bf16.mxu1 %v10089_v24  ;;  %v6222_v19 = vpop.f32.mrf.mxu0  ;;  %v9031_v24 = vld [vmem:[%s9959_s7 + $0x68c] ss:$16 sps:$4 sm:$0xff]   ;;  %v9056_v51 = vld [vmem:[%s9959_s7 + $0x5e8] ss:$16 sps:$4 sm:$0xff]  }
 0x262   : > { %v6263_v57 = vpop.f32.mrf.mxu1  ;;  %v10721_v6 = vadd.f32 %v6261_v0, %v6221_v14  ;;  %6515 = vmatpush1.bf16.msra.mxu0 %v9014_v36  ;;  %v9061_v39 = vld [vmem:[%s9959_s7 + $0x7ec] ss:$16 sps:$4 sm:$0xff]   ;;  %v9062_v36 = vld [vmem:[%s9959_s7 + $0x5c8] ss:$16 sps:$4 sm:$0xff]  }
 0x263   : > { %6556 = vmatpush1.bf16.msra.mxu1 %v9017_v46  ;;  %v6223_v61 = vpop.f32.mrf.mxu0  ;;  %6516 = vmatprep.subr.bf16.mxu0 %v9022_v63  ;;  %v9064_v52 = vld [vmem:[%s9959_s7 + $0x5cc] ss:$16 sps:$4 sm:$0xff]   ;;  %v9065_v46 = vld [vmem:[%s9959_s7 + $0x7c8] ss:$16 sps:$4 sm:$0xff]  }
 0x264   : > { %v6264_v1 = vpop.f32.mrf.mxu1  ;;  %6557 = vmatprep.subr.bf16.mxu1 %v9025_v47  ;;  %v9067_v54 = vld [vmem:[%s9959_s7 + $0x7cc] ss:$16 sps:$4 sm:$0xff]   ;;  %v9068_v63 = vld [vmem:[%s9959_s7 + $0x5a8] ss:$16 sps:$4 sm:$0xff]  }
 0x265   : > { %v9070_v58 = vld [vmem:[%s9959_s7 + $0x5ac] ss:$16 sps:$4 sm:$0xff]   ;;  %v9071_v47 = vld [vmem:[%s9959_s7 + $0x7a8] ss:$16 sps:$4 sm:$0xff]  }
 0x266   : > { %6517 = vmatpush1.bf16.msra.mxu0 %v9020_v8  ;;  %v9073_v0 = vld [vmem:[%s9959_s7 + $0x7ac] ss:$16 sps:$4 sm:$0xff]   ;;  %v9074_v57 = vld [vmem:[%s9959_s7 + $0x588] ss:$16 sps:$4 sm:$0xff]  }
 0x267   : > { %6558 = vmatpush1.bf16.msra.mxu1 %v9023_v53  ;;  %6518 = vmatprep.subr.bf16.mxu0 %v9028_v18  ;;  %v9076_v14 = vld [vmem:[%s9959_s7 + $0x58c] ss:$16 sps:$4 sm:$0xff]   ;;  %v9077_v8 = vld [vmem:[%s9959_s7 + $0x788] ss:$16 sps:$4 sm:$0xff]  }
 0x268   : > { %6559 = vmatprep.subr.bf16.mxu1 %v9031_v24  ;;  %v9079_v19 = vld [vmem:[%s9959_s7 + $0x78c] ss:$16 sps:$4 sm:$0xff]   ;;  %v9080_v1 = vld [vmem:[%s9959_s7 + $0x568] ss:$16 sps:$4 sm:$0xff]  }
 0x269   : > { %v9082_v53 = vld [vmem:[%s9959_s7 + $0x56c] ss:$16 sps:$4 sm:$0xff]   ;;  %v9083_v18 = vld [vmem:[%s9959_s7 + $0x768] ss:$16 sps:$4 sm:$0xff]  }
 0x26a   : > { %6519 = vmatpush1.bf16.msra.mxu0 %v9026_v3  ;;  %v9085_v61 = vld [vmem:[%s9959_s7 + $0x76c] ss:$16 sps:$4 sm:$0xff]  }
 0x26b   : > { %6560 = vmatpush1.bf16.msra.mxu1 %v9029_v10  ;;  %6520 = vmatprep.subr.bf16.mxu0 %v9034_v11  ;;  %v9088_v24 = vld [vmem:[%s9959_s7 + $0x54c] ss:$16 sps:$4 sm:$0xff]   ;;  %v9086_v10 = vld [vmem:[%s9959_s7 + $0x548] ss:$16 sps:$4 sm:$0xff]  }
 0x26c   : > { %6561 = vmatprep.subr.bf16.mxu1 %v9037_v12  ;;  %v9091_v3 = vld [vmem:[%s9959_s7 + $0x74c] ss:$16 sps:$4 sm:$0xff]   ;;  %v9089_v11 = vld [vmem:[%s9959_s7 + $0x748] ss:$16 sps:$4 sm:$0xff]  }
 0x26d   : > { %v9094_v12 = vld [vmem:[%s9959_s7 + $0x52c] ss:$16 sps:$4 sm:$0xff]  }
 0x26e   : > { %6521 = vmatpush1.bf16.msra.mxu0 %v9032_v16  ;;  %v9097_v16 = vld [vmem:[%s9959_s7 + $0x72c] ss:$16 sps:$4 sm:$0xff]  }
 0x26f   : > { %6562 = vmatpush1.bf16.msra.mxu1 %v9035_v17  ;;  %6522 = vmatprep.subr.bf16.mxu0 %v9040_v22  ;;  %v9092_v17 = vld [vmem:[%s9959_s7 + $0x528] ss:$16 sps:$4 sm:$0xff]  }
 0x270   : > { %6563 = vmatprep.subr.bf16.mxu1 %v9043_v25  ;;  %v9095_v22 = vld [vmem:[%s9959_s7 + $0x728] ss:$16 sps:$4 sm:$0xff]   ;;  %v9100_v25 = vld [vmem:[%s9959_s7 + $0x50c] ss:$16 sps:$4 sm:$0xff]  }
 0x272   : > { %6523 = vmatpush1.bf16.msra.mxu0 %v9038_v28  ;;  %v9103_v28 = vld [vmem:[%s9959_s7 + $0x70c] ss:$16 sps:$4 sm:$0xff]  }
 0x273   : > { %6564 = vmatpush1.bf16.msra.mxu1 %v9041_v30  ;;  %6524 = vmatprep.subr.bf16.mxu0 %v9046_v34  ;;  %v9098_v30 = vld [vmem:[%s9959_s7 + $0x508] ss:$16 sps:$4 sm:$0xff]  }
 0x274   : > { %6565 = vmatprep.subr.bf16.mxu1 %v9049_v35  ;;  %v9101_v34 = vld [vmem:[%s9959_s7 + $0x708] ss:$16 sps:$4 sm:$0xff]   ;;  %v9106_v35 = vld [vmem:[%s9959_s7 + $0x8ec] ss:$16 sps:$4 sm:$0xff]  }
 0x276   : > { %6525 = vmatpush1.bf16.msra.mxu0 %v9044_v38  ;;  %v9109_v38 = vld [vmem:[%s9959_s7 + $0xaec] ss:$16 sps:$4 sm:$0xff]  }
 0x277   : > { %6566 = vmatpush1.bf16.msra.mxu1 %v9047_v40  ;;  %6526 = vmatprep.subr.bf16.mxu0 %v9052_v33  ;;  %v9104_v40 = vld [vmem:[%s9959_s7 + $0x8e8] ss:$16 sps:$4 sm:$0xff]  }
 0x278   : > { %6567 = vmatprep.subr.bf16.mxu1 %v9055_v50  ;;  %v9107_v33 = vld [vmem:[%s9959_s7 + $0xae8] ss:$16 sps:$4 sm:$0xff]   ;;  %v9112_v50 = vld [vmem:[%s9959_s7 + $0x8cc] ss:$16 sps:$4 sm:$0xff]  }
 0x27a   : > { %6527 = vmatpush1.bf16.msra.mxu0 %v9050_v62  ;;  %v9115_v62 = vld [vmem:[%s9959_s7 + $0xacc] ss:$16 sps:$4 sm:$0xff]  }
 0x27b   : > { %6568 = vmatpush1.bf16.msra.mxu1 %v9053_v45  ;;  %6528 = vmatprep.subr.bf16.mxu0 %v9058_v48 }
 0x27c   : > { %6569 = vmatprep.subr.bf16.mxu1 %v9061_v39 }
 0x27e   : > { %6529 = vmatpush2.bf16.msra.mxu0 %v9056_v51  ;;  %v9110_v51 = vld [vmem:[%s9959_s7 + $0x8c8] ss:$16 sps:$4 sm:$0xff]  }
 0x27f   : > { %6570 = vmatpush2.bf16.msra.mxu1 %v9059_v37  ;;  %6530 = vmatprep.subr.bf16.mxu0 %v9064_v52  ;;  %v9113_v37 = vld [vmem:[%s9959_s7 + $0xac8] ss:$16 sps:$4 sm:$0xff]  }
 0x280   : > { %6571 = vmatprep.subr.bf16.mxu1 %v9067_v54 }
 0x282   : > { %6531 = vmatpush2.bf16.msra.mxu0 %v9062_v36  ;;  %v9118_v36 = vld [vmem:[%s9959_s7 + $0x8ac] ss:$16 sps:$4 sm:$0xff]  }
 0x283   : > { %6572 = vmatpush2.bf16.msra.mxu1 %v9065_v46  ;;  %6532 = vmatprep.subr.bf16.mxu0 %v9070_v58  ;;  %v9121_v46 = vld [vmem:[%s9959_s7 + $0xaac] ss:$16 sps:$4 sm:$0xff]  }
 0x284   : > { %6573 = vmatprep.subr.bf16.mxu1 %v9073_v0 }
 0x286   : > { %6533 = vmatpush2.bf16.msra.mxu0 %v9068_v63  ;;  %v9116_v63 = vld [vmem:[%s9959_s7 + $0x8a8] ss:$16 sps:$4 sm:$0xff]  }
 0x287   : > { %6574 = vmatpush2.bf16.msra.mxu1 %v9071_v47  ;;  %6534 = vmatprep.subr.bf16.mxu0 %v9076_v14  ;;  %v9119_v47 = vld [vmem:[%s9959_s7 + $0xaa8] ss:$16 sps:$4 sm:$0xff]  }
 0x288   : > { %6575 = vmatprep.subr.bf16.mxu1 %v9079_v19 }
 0x28a   : > { %6535 = vmatpush2.bf16.msra.mxu0 %v9074_v57  ;;  %v9125_v57 = vld [vmem:[%s9959_s7 + $0xa88] ss:$16 sps:$4 sm:$0xff]  }
 0x28b   : > { %6576 = vmatpush2.bf16.msra.mxu1 %v9077_v8  ;;  %6536 = vmatprep.subr.bf16.mxu0 %v9082_v53  ;;  %v9130_v8 = vld [vmem:[%s9959_s7 + $0x86c] ss:$16 sps:$4 sm:$0xff]  }
 0x28c   : > { %6577 = vmatprep.subr.bf16.mxu1 %v9085_v61  ;;  %v9133_v53 = vld [vmem:[%s9959_s7 + $0xa6c] ss:$16 sps:$4 sm:$0xff]   ;;  %v9128_v61 = vld [vmem:[%s9959_s7 + $0x868] ss:$16 sps:$4 sm:$0xff]  }
 0x28e   : > { %6537 = vmatpush2.bf16.msra.mxu0 %v9080_v1  ;;  %v9131_v1 = vld [vmem:[%s9959_s7 + $0xa68] ss:$16 sps:$4 sm:$0xff]  }
 0x28f   : > { %6578 = vmatpush2.bf16.msra.mxu1 %v9083_v18  ;;  %6538 = vmatprep.subr.bf16.mxu0 %v9088_v24  ;;  %v9136_v18 = vld [vmem:[%s9959_s7 + $0x84c] ss:$16 sps:$4 sm:$0xff]  }
 0x290   : > { %6579 = vmatprep.subr.bf16.mxu1 %v9091_v3  ;;  %v9139_v24 = vld [vmem:[%s9959_s7 + $0xa4c] ss:$16 sps:$4 sm:$0xff]   ;;  %v9134_v3 = vld [vmem:[%s9959_s7 + $0x848] ss:$16 sps:$4 sm:$0xff]  }
 0x292   : > { %6539 = vmatpush2.bf16.msra.mxu0 %v9086_v10  ;;  %v9137_v10 = vld [vmem:[%s9959_s7 + $0xa48] ss:$16 sps:$4 sm:$0xff]  }
 0x293   : > { %6580 = vmatpush2.bf16.msra.mxu1 %v9089_v11  ;;  %6540 = vmatprep.subr.bf16.mxu0 %v9094_v12  ;;  %v9142_v11 = vld [vmem:[%s9959_s7 + $0x82c] ss:$16 sps:$4 sm:$0xff]  }
 0x294   : > { %6581 = vmatprep.subr.bf16.mxu1 %v9097_v16  ;;  %v9145_v12 = vld [vmem:[%s9959_s7 + $0xa2c] ss:$16 sps:$4 sm:$0xff]   ;;  %v9140_v16 = vld [vmem:[%s9959_s7 + $0x828] ss:$16 sps:$4 sm:$0xff]  }
 0x296   : > { %6541 = vmatpush2.bf16.msra.mxu0 %v9092_v17  ;;  %v9143_v17 = vld [vmem:[%s9959_s7 + $0xa28] ss:$16 sps:$4 sm:$0xff]  }
 0x297   : > { %6582 = vmatpush2.bf16.msra.mxu1 %v9095_v22  ;;  %6542 = vmatprep.subr.bf16.mxu0 %v9100_v25  ;;  %v9148_v22 = vld [vmem:[%s9959_s7 + $0x80c] ss:$16 sps:$4 sm:$0xff]  }
 0x298   : > { %6583 = vmatprep.subr.bf16.mxu1 %v9103_v28  ;;  %v9151_v25 = vld [vmem:[%s9959_s7 + $0xa0c] ss:$16 sps:$4 sm:$0xff]   ;;  %v9146_v28 = vld [vmem:[%s9959_s7 + $0x808] ss:$16 sps:$4 sm:$0xff]  }
 0x29a   : > { %6543 = vmatpush2.bf16.msra.mxu0 %v9098_v30  ;;  %v9149_v30 = vld [vmem:[%s9959_s7 + $0xa08] ss:$16 sps:$4 sm:$0xff]  }
 0x29b   : > { %6584 = vmatpush2.bf16.msra.mxu1 %v9101_v34  ;;  %6594 = vmatprep.subr.bf16.mxu0 %v9106_v35  ;;  %v9154_v34 = vld [vmem:[%s9959_s7 + $0x9ec] ss:$16 sps:$4 sm:$0xff]  }
 0x29c   : > { %6635 = vmatprep.subr.bf16.mxu1 %v9109_v38  ;;  %v9157_v35 = vld [vmem:[%s9959_s7 + $0xbec] ss:$16 sps:$4 sm:$0xff]   ;;  %v9152_v38 = vld [vmem:[%s9959_s7 + $0x9e8] ss:$16 sps:$4 sm:$0xff]  }
 0x29d   : > { %v6300_v45 = vpop.f32.mrf.mxu0  ;;  %6545 = vmatmul.mubr.bf16.vlgmr.msra.gmra.mxu0 %v10154_v27 }
 0x29e   : > { %v6341_v48 = vpop.f32.mrf.mxu1  ;;  %6586 = vmatmul.mubr.bf16.vlgmr.msra.gmra.mxu1 %v10161_v31  ;;  %v6301_v39 = vadd.f32 %v6300_v45, %v10716_v2  ;;  %6595 = vmatpush1.bf16.msra.mxu0 %v9104_v40  ;;  %v9155_v40 = vld [vmem:[%s9959_s7 + $0xbe8] ss:$16 sps:$4 sm:$0xff]  }
 0x29f   : > { %6636 = vmatpush1.bf16.msra.mxu1 %v9107_v33  ;;  %v6302_v52 = vpop.f32.mrf.mxu0  ;;  %6596 = vmatprep.subr.bf16.mxu0 %v9112_v50  ;;  %v9160_v33 = vld [vmem:[%s9959_s7 + $0x9cc] ss:$16 sps:$4 sm:$0xff]   ;;  %v9161_v45 = vld [vmem:[%s9959_s7 + $0xbc8] ss:$16 sps:$4 sm:$0xff]  }
 0x2a0   : > { %v6343_v54 = vpop.f32.mrf.mxu1  ;;  %6637 = vmatprep.subr.bf16.mxu1 %v9115_v62  ;;  %v10790_v58 = vadd.f32 %v6341_v48, %v6301_v39  ;;  %v6303_v27 = vadd.f32 %v6302_v52, %v10721_v6  ;;  %6626 = vmatprep.mubr.bf16.mxu0 %v10183_v42  ;;  %v9124_v42 = vld [vmem:[%s9959_s7 + $0x88c] ss:$16 sps:$4 sm:$0xff]   ;;  %v9122_v6 = vld [vmem:[%s9959_s7 + $0x888] ss:$16 sps:$4 sm:$0xff]  }
 0x2a1   : > { %6667 = vmatprep.mubr.bf16.mxu1 %v10188_v43  ;;  %v6304_v31 = vpop.f32.mrf.mxu0  ;;  %v9127_v43 = vld [vmem:[%s9959_s7 + $0xa8c] ss:$16 sps:$4 sm:$0xff]   ;;  %v9158_v62 = vld [vmem:[%s9959_s7 + $0x9c8] ss:$16 sps:$4 sm:$0xff]  }
 0x2a2   : > { %v6345_v2 = vpop.f32.mrf.mxu1  ;;  %v10795_v0 = vadd.f32 %v6343_v54, %v6303_v27  ;;  %6597 = vmatpush1.bf16.msra.mxu0 %v9110_v51  ;;  %v9163_v50 = vld [vmem:[%s9959_s7 + $0xbcc] ss:$16 sps:$4 sm:$0xff]   ;;  %v9164_v51 = vld [vmem:[%s9959_s7 + $0x9a8] ss:$16 sps:$4 sm:$0xff]  }
 0x2a3   : > { %6638 = vmatpush1.bf16.msra.mxu1 %v9113_v37  ;;  %v6305_v14 = vpop.f32.mrf.mxu0  ;;  %6598 = vmatprep.subr.bf16.mxu0 %v9118_v36  ;;  %v9166_v48 = vld [vmem:[%s9959_s7 + $0x9ac] ss:$16 sps:$4 sm:$0xff]   ;;  %v9167_v37 = vld [vmem:[%s9959_s7 + $0xba8] ss:$16 sps:$4 sm:$0xff]  }
 0x2a4   : > { %v6346_v19 = vpop.f32.mrf.mxu1  ;;  %6639 = vmatprep.subr.bf16.mxu1 %v9121_v46  ;;  %v9169_v39 = vld [vmem:[%s9959_s7 + $0xbac] ss:$16 sps:$4 sm:$0xff]   ;;  %v9170_v36 = vld [vmem:[%s9959_s7 + $0x988] ss:$16 sps:$4 sm:$0xff]  }
 0x2a5   : > { %v9172_v52 = vld [vmem:[%s9959_s7 + $0x98c] ss:$16 sps:$4 sm:$0xff]   ;;  %v9173_v46 = vld [vmem:[%s9959_s7 + $0xb88] ss:$16 sps:$4 sm:$0xff]  }
 0x2a6   : > { %6599 = vmatpush1.bf16.msra.mxu0 %v9116_v63  ;;  %v9175_v54 = vld [vmem:[%s9959_s7 + $0xb8c] ss:$16 sps:$4 sm:$0xff]   ;;  %v9176_v2 = vld [vmem:[%s9959_s7 + $0x968] ss:$16 sps:$4 sm:$0xff]  }
 0x2a7   : > { %6640 = vmatpush1.bf16.msra.mxu1 %v9119_v47  ;;  %6600 = vmatprep.subr.bf16.mxu0 %v9124_v42  ;;  %v9178_v27 = vld [vmem:[%s9959_s7 + $0x96c] ss:$16 sps:$4 sm:$0xff]   ;;  %v9179_v63 = vld [vmem:[%s9959_s7 + $0xb68] ss:$16 sps:$4 sm:$0xff]  }
 0x2a8   : > { %6641 = vmatprep.subr.bf16.mxu1 %v9127_v43  ;;  %v9181_v31 = vld [vmem:[%s9959_s7 + $0xb6c] ss:$16 sps:$4 sm:$0xff]   ;;  %v9182_v19 = vld [vmem:[%s9959_s7 + $0x948] ss:$16 sps:$4 sm:$0xff]  }
 0x2a9   : > { %v9184_v47 = vld [vmem:[%s9959_s7 + $0x94c] ss:$16 sps:$4 sm:$0xff]   ;;  %v9185_v42 = vld [vmem:[%s9959_s7 + $0xb48] ss:$16 sps:$4 sm:$0xff]  }
 0x2aa   : > { %6601 = vmatpush1.bf16.msra.mxu0 %v9122_v6  ;;  %v9187_v14 = vld [vmem:[%s9959_s7 + $0xb4c] ss:$16 sps:$4 sm:$0xff]  }
 0x2ab   : > { %6642 = vmatpush1.bf16.msra.mxu1 %v9125_v57  ;;  %6602 = vmatprep.subr.bf16.mxu0 %v9130_v8  ;;  %v9190_v43 = vld [vmem:[%s9959_s7 + $0x92c] ss:$16 sps:$4 sm:$0xff]   ;;  %v9188_v57 = vld [vmem:[%s9959_s7 + $0x928] ss:$16 sps:$4 sm:$0xff]  }
 0x2ac   : > { %6643 = vmatprep.subr.bf16.mxu1 %v9133_v53  ;;  %v9193_v6 = vld [vmem:[%s9959_s7 + $0xb2c] ss:$16 sps:$4 sm:$0xff]   ;;  %v9191_v8 = vld [vmem:[%s9959_s7 + $0xb28] ss:$16 sps:$4 sm:$0xff]  }
 0x2ad   : > { %v9196_v53 = vld [vmem:[%s9959_s7 + $0x90c] ss:$16 sps:$4 sm:$0xff]  }
 0x2ae   : > { %6603 = vmatpush1.bf16.msra.mxu0 %v9128_v61  ;;  %v9199_v61 = vld [vmem:[%s9959_s7 + $0xb0c] ss:$16 sps:$4 sm:$0xff]  }
 0x2af   : > { %6644 = vmatpush1.bf16.msra.mxu1 %v9131_v1  ;;  %6604 = vmatprep.subr.bf16.mxu0 %v9136_v18  ;;  %v9194_v1 = vld [vmem:[%s9959_s7 + $0x908] ss:$16 sps:$4 sm:$0xff]  }
 0x2b0   : > { %6645 = vmatprep.subr.bf16.mxu1 %v9139_v24  ;;  %v9197_v18 = vld [vmem:[%s9959_s7 + $0xb08] ss:$16 sps:$4 sm:$0xff]   ;;  %v9202_v24 = vld [vmem:[%s9959_s7 + $0xcec] ss:$16 sps:$4 sm:$0xff]  }
 0x2b2   : > { %6605 = vmatpush1.bf16.msra.mxu0 %v9134_v3  ;;  %v9205_v3 = vld [vmem:[%s9959_s7 + $0xeec] ss:$16 sps:$4 sm:$0xff]  }
 0x2b3   : > { %6646 = vmatpush1.bf16.msra.mxu1 %v9137_v10  ;;  %6606 = vmatprep.subr.bf16.mxu0 %v9142_v11  ;;  %v9200_v10 = vld [vmem:[%s9959_s7 + $0xce8] ss:$16 sps:$4 sm:$0xff]  }
 0x2b4   : > { %6647 = vmatprep.subr.bf16.mxu1 %v9145_v12  ;;  %v9203_v11 = vld [vmem:[%s9959_s7 + $0xee8] ss:$16 sps:$4 sm:$0xff]   ;;  %v9208_v12 = vld [vmem:[%s9959_s7 + $0xccc] ss:$16 sps:$4 sm:$0xff]  }
 0x2b6   : > { %6607 = vmatpush1.bf16.msra.mxu0 %v9140_v16  ;;  %v9211_v16 = vld [vmem:[%s9959_s7 + $0xecc] ss:$16 sps:$4 sm:$0xff]  }
 0x2b7   : > { %6648 = vmatpush1.bf16.msra.mxu1 %v9143_v17  ;;  %6608 = vmatprep.subr.bf16.mxu0 %v9148_v22 }
 0x2b8   : > { %6649 = vmatprep.subr.bf16.mxu1 %v9151_v25 }
 0x2ba   : > { %6609 = vmatpush1.bf16.msra.mxu0 %v9146_v28  ;;  %v9206_v28 = vld [vmem:[%s9959_s7 + $0xcc8] ss:$16 sps:$4 sm:$0xff]  }
 0x2bb   : > { %6650 = vmatpush1.bf16.msra.mxu1 %v9149_v30  ;;  %6610 = vmatprep.subr.bf16.mxu0 %v9154_v34  ;;  %v9209_v30 = vld [vmem:[%s9959_s7 + $0xec8] ss:$16 sps:$4 sm:$0xff]  }
 0x2bc   : > { %6651 = vmatprep.subr.bf16.mxu1 %v9157_v35 }
 0x2be   : > { %6611 = vmatpush2.bf16.msra.mxu0 %v9152_v38  ;;  %v9214_v38 = vld [vmem:[%s9959_s7 + $0xcac] ss:$16 sps:$4 sm:$0xff]  }
 0x2bf   : > { %6652 = vmatpush2.bf16.msra.mxu1 %v9155_v40  ;;  %6612 = vmatprep.subr.bf16.mxu0 %v9160_v33  ;;  %v9217_v40 = vld [vmem:[%s9959_s7 + $0xeac] ss:$16 sps:$4 sm:$0xff]  }
 0x2c0   : > { %6653 = vmatprep.subr.bf16.mxu1 %v9163_v50 }
 0x2c2   : > { %6613 = vmatpush2.bf16.msra.mxu0 %v9158_v62  ;;  %v9212_v62 = vld [vmem:[%s9959_s7 + $0xca8] ss:$16 sps:$4 sm:$0xff]  }
 0x2c3   : > { %6654 = vmatpush2.bf16.msra.mxu1 %v9161_v45  ;;  %6614 = vmatprep.subr.bf16.mxu0 %v9166_v48  ;;  %v9215_v45 = vld [vmem:[%s9959_s7 + $0xea8] ss:$16 sps:$4 sm:$0xff]  }
 0x2c4   : > { %6655 = vmatprep.subr.bf16.mxu1 %v9169_v39 }
 0x2c6   : > { %6615 = vmatpush2.bf16.msra.mxu0 %v9164_v51  ;;  %v9218_v51 = vld [vmem:[%s9959_s7 + $0xc88] ss:$16 sps:$4 sm:$0xff]  }
 0x2c7   : > { %6656 = vmatpush2.bf16.msra.mxu1 %v9167_v37  ;;  %6616 = vmatprep.subr.bf16.mxu0 %v9172_v52  ;;  %v9221_v37 = vld [vmem:[%s9959_s7 + $0xe88] ss:$16 sps:$4 sm:$0xff]   ;;  %v9226_v52 = vld [vmem:[%s9959_s7 + $0xc6c] ss:$16 sps:$4 sm:$0xff]  }
 0x2c8   : > { %6657 = vmatprep.subr.bf16.mxu1 %v9175_v54  ;;  %v9229_v54 = vld [vmem:[%s9959_s7 + $0xe6c] ss:$16 sps:$4 sm:$0xff]  }
 0x2ca   : > { %6617 = vmatpush2.bf16.msra.mxu0 %v9170_v36  ;;  %v9224_v36 = vld [vmem:[%s9959_s7 + $0xc68] ss:$16 sps:$4 sm:$0xff]  }
 0x2cb   : > { %6658 = vmatpush2.bf16.msra.mxu1 %v9173_v46  ;;  %6618 = vmatprep.subr.bf16.mxu0 %v9178_v27  ;;  %v9227_v46 = vld [vmem:[%s9959_s7 + $0xe68] ss:$16 sps:$4 sm:$0xff]   ;;  %v9232_v27 = vld [vmem:[%s9959_s7 + $0xc4c] ss:$16 sps:$4 sm:$0xff]  }
 0x2cc   : > { %6659 = vmatprep.subr.bf16.mxu1 %v9181_v31  ;;  %v9235_v31 = vld [vmem:[%s9959_s7 + $0xe4c] ss:$16 sps:$4 sm:$0xff]  }
 0x2ce   : > { %6619 = vmatpush2.bf16.msra.mxu0 %v9176_v2  ;;  %v9230_v2 = vld [vmem:[%s9959_s7 + $0xc48] ss:$16 sps:$4 sm:$0xff]  }
 0x2cf   : > { %6660 = vmatpush2.bf16.msra.mxu1 %v9179_v63  ;;  %6620 = vmatprep.subr.bf16.mxu0 %v9184_v47  ;;  %v9233_v63 = vld [vmem:[%s9959_s7 + $0xe48] ss:$16 sps:$4 sm:$0xff]   ;;  %v9238_v47 = vld [vmem:[%s9959_s7 + $0xc2c] ss:$16 sps:$4 sm:$0xff]  }
 0x2d0   : > { %6661 = vmatprep.subr.bf16.mxu1 %v9187_v14  ;;  %v9241_v14 = vld [vmem:[%s9959_s7 + $0xe2c] ss:$16 sps:$4 sm:$0xff]  }
 0x2d2   : > { %6621 = vmatpush2.bf16.msra.mxu0 %v9182_v19  ;;  %v9236_v19 = vld [vmem:[%s9959_s7 + $0xc28] ss:$16 sps:$4 sm:$0xff]  }
 0x2d3   : > { %6662 = vmatpush2.bf16.msra.mxu1 %v9185_v42  ;;  %6622 = vmatprep.subr.bf16.mxu0 %v9190_v43  ;;  %v9239_v42 = vld [vmem:[%s9959_s7 + $0xe28] ss:$16 sps:$4 sm:$0xff]   ;;  %v9244_v43 = vld [vmem:[%s9959_s7 + $0xc0c] ss:$16 sps:$4 sm:$0xff]  }
 0x2d4   : > { %6663 = vmatprep.subr.bf16.mxu1 %v9193_v6  ;;  %v9247_v6 = vld [vmem:[%s9959_s7 + $0xe0c] ss:$16 sps:$4 sm:$0xff]  }
 0x2d6   : > { %6623 = vmatpush2.bf16.msra.mxu0 %v9188_v57  ;;  %v9242_v57 = vld [vmem:[%s9959_s7 + $0xc08] ss:$16 sps:$4 sm:$0xff]  }
 0x2d7   : > { %6664 = vmatpush2.bf16.msra.mxu1 %v9191_v8  ;;  %6624 = vmatprep.subr.bf16.mxu0 %v9196_v53  ;;  %v9245_v8 = vld [vmem:[%s9959_s7 + $0xe08] ss:$16 sps:$4 sm:$0xff]   ;;  %v9250_v53 = vld [vmem:[%s9959_s7 + $0xdec] ss:$16 sps:$4 sm:$0xff]  }
 0x2d8   : > { %6665 = vmatprep.subr.bf16.mxu1 %v9199_v61  ;;  %v9253_v61 = vld [vmem:[%s9959_s7 + $0xfec] ss:$16 sps:$4 sm:$0xff]  }
 0x2da   : > { %6625 = vmatpush2.bf16.msra.mxu0 %v9194_v1  ;;  %v9248_v1 = vld [vmem:[%s9959_s7 + $0xde8] ss:$16 sps:$4 sm:$0xff]  }
 0x2db   : > { %6666 = vmatpush2.bf16.msra.mxu1 %v9197_v18  ;;  %6676 = vmatprep.subr.bf16.mxu0 %v9202_v24  ;;  %v9251_v18 = vld [vmem:[%s9959_s7 + $0xfe8] ss:$16 sps:$4 sm:$0xff]   ;;  %v9256_v24 = vld [vmem:[%s9959_s7 + $0xdcc] ss:$16 sps:$4 sm:$0xff]  }
 0x2dc   : > { %6717 = vmatprep.subr.bf16.mxu1 %v9205_v3  ;;  %v9259_v3 = vld [vmem:[%s9959_s7 + $0xfcc] ss:$16 sps:$4 sm:$0xff]  }
 0x2dd   : > { %v6382_v17 = vpop.f32.mrf.mxu0  ;;  %6627 = vmatmul.mubr.bf16.vlgmr.msra.gmra.mxu0 %v10252_v49 }
 0x2de   : > { %v6423_v22 = vpop.f32.mrf.mxu1  ;;  %6668 = vmatmul.mubr.bf16.vlgmr.msra.gmra.mxu1 %v10263_v56  ;;  %v6383_v25 = vadd.f32 %v6382_v17, %v10790_v58  ;;  %6677 = vmatpush1.bf16.msra.mxu0 %v9200_v10  ;;  %v9254_v10 = vld [vmem:[%s9959_s7 + $0xdc8] ss:$16 sps:$4 sm:$0xff]  }
 0x2df   : > { %6718 = vmatpush1.bf16.msra.mxu1 %v9203_v11  ;;  %v6384_v34 = vpop.f32.mrf.mxu0  ;;  %6678 = vmatprep.subr.bf16.mxu0 %v9208_v12  ;;  %v9257_v11 = vld [vmem:[%s9959_s7 + $0xfc8] ss:$16 sps:$4 sm:$0xff]   ;;  %v9262_v12 = vld [vmem:[%s9959_s7 + $0xdac] ss:$16 sps:$4 sm:$0xff]  }
 0x2e0   : > { %v6425_v35 = vpop.f32.mrf.mxu1  ;;  %6719 = vmatprep.subr.bf16.mxu1 %v9211_v16  ;;  %v10864_v33 = vadd.f32 %v6423_v22, %v6383_v25  ;;  %v6385_v49 = vadd.f32 %v6384_v34, %v10795_v0  ;;  %6708 = vmatprep.mubr.bf16.mxu0 %v10259_v55  ;;  %v9220_v55 = vld [vmem:[%s9959_s7 + $0xc8c] ss:$16 sps:$4 sm:$0xff]   ;;  %v9260_v17 = vld [vmem:[%s9959_s7 + $0xda8] ss:$16 sps:$4 sm:$0xff]  }
 0x2e1   : > { %6749 = vmatprep.mubr.bf16.mxu1 %v10271_v60  ;;  %v6386_v56 = vpop.f32.mrf.mxu0  ;;  %v9223_v60 = vld [vmem:[%s9959_s7 + $0xe8c] ss:$16 sps:$4 sm:$0xff]   ;;  %v9263_v22 = vld [vmem:[%s9959_s7 + $0xfa8] ss:$16 sps:$4 sm:$0xff]  }
 0x2e2   : > { %v6427_v58 = vpop.f32.mrf.mxu1  ;;  %v10869_v50 = vadd.f32 %v6425_v35, %v6385_v49  ;;  %6679 = vmatpush1.bf16.msra.mxu0 %v9206_v28  ;;  %v9265_v16 = vld [vmem:[%s9959_s7 + $0xfac] ss:$16 sps:$4 sm:$0xff]   ;;  %v9269_v34 = vld [vmem:[%s9959_s7 + $0xf88] ss:$16 sps:$4 sm:$0xff]  }
 0x2e3   : > { %6720 = vmatpush1.bf16.msra.mxu1 %v9209_v30  ;;  %v6387_v48 = vpop.f32.mrf.mxu0  ;;  %6680 = vmatprep.subr.bf16.mxu0 %v9214_v38  ;;  %v9268_v25 = vld [vmem:[%s9959_s7 + $0xd8c] ss:$16 sps:$4 sm:$0xff]   ;;  %v9266_v30 = vld [vmem:[%s9959_s7 + $0xd88] ss:$16 sps:$4 sm:$0xff]  }
 0x2e4   : > { %v6428_v39 = vpop.f32.mrf.mxu1  ;;  %6721 = vmatprep.subr.bf16.mxu1 %v9217_v40  ;;  %v7008_v0 = vcombine.low %v10864_v33, %v10869_v50  ;;  %v9271_v28 = vld [vmem:[%s9959_s7 + $0xf8c] ss:$16 sps:$4 sm:$0xff]   ;;  %v9272_v40 = vld [vmem:[%s9959_s7 + $0xd68] ss:$16 sps:$4 sm:$0xff]  }
 0x2e5   : > { %v9274_v35 = vld [vmem:[%s9959_s7 + $0xd6c] ss:$16 sps:$4 sm:$0xff]   ;;  %v9275_v49 = vld [vmem:[%s9959_s7 + $0xf68] ss:$16 sps:$4 sm:$0xff]  }
 0x2e6   : > { %6681 = vmatpush1.bf16.msra.mxu0 %v9212_v62  ;;  %v9277_v38 = vld [vmem:[%s9959_s7 + $0xf6c] ss:$16 sps:$4 sm:$0xff]   ;;  %v9278_v62 = vld [vmem:[%s9959_s7 + $0xd48] ss:$16 sps:$4 sm:$0xff]  }
 0x2e7   : > { %6722 = vmatpush1.bf16.msra.mxu1 %v9215_v45  ;;  %6682 = vmatprep.subr.bf16.mxu0 %v9220_v55  ;;  %v9280_v56 = vld [vmem:[%s9959_s7 + $0xd4c] ss:$16 sps:$4 sm:$0xff]   ;;  %v9281_v45 = vld [vmem:[%s9959_s7 + $0xf48] ss:$16 sps:$4 sm:$0xff]  }
 0x2e8   : > { %6723 = vmatprep.subr.bf16.mxu1 %v9223_v60  ;;  %v9283_v58 = vld [vmem:[%s9959_s7 + $0xf4c] ss:$16 sps:$4 sm:$0xff]   ;;  %v9284_v55 = vld [vmem:[%s9959_s7 + $0xd28] ss:$16 sps:$4 sm:$0xff]  }
 0x2e9   : > { %v9286_v48 = vld [vmem:[%s9959_s7 + $0xd2c] ss:$16 sps:$4 sm:$0xff]   ;;  %v9287_v60 = vld [vmem:[%s9959_s7 + $0xf28] ss:$16 sps:$4 sm:$0xff]  }
 0x2ea   : > { %6683 = vmatpush1.bf16.msra.mxu0 %v9218_v51  ;;  %v9289_v39 = vld [vmem:[%s9959_s7 + $0xf2c] ss:$16 sps:$4 sm:$0xff]  }
 0x2eb   : > { %6724 = vmatpush1.bf16.msra.mxu1 %v9221_v37  ;;  %6684 = vmatprep.subr.bf16.mxu0 %v9226_v52  ;;  %v9292_v51 = vld [vmem:[%s9959_s7 + $0xd0c] ss:$16 sps:$4 sm:$0xff]   ;;  %v9290_v52 = vld [vmem:[%s9959_s7 + $0xd08] ss:$16 sps:$4 sm:$0xff]  }
 0x2ec   : > { %6725 = vmatprep.subr.bf16.mxu1 %v9229_v54  ;;  %v9295_v37 = vld [vmem:[%s9959_s7 + $0xf0c] ss:$16 sps:$4 sm:$0xff]   ;;  %v9293_v54 = vld [vmem:[%s9959_s7 + $0xf08] ss:$16 sps:$4 sm:$0xff]  }
 0x2ee   : > { %6685 = vmatpush1.bf16.msra.mxu0 %v9224_v36  ;;  %v9298_v36 = vld [vmem:[%s9959_s7 + $0x10ec] ss:$16 sps:$4 sm:$0xff]  }
 0x2ef   : > { %6726 = vmatpush1.bf16.msra.mxu1 %v9227_v46  ;;  %6686 = vmatprep.subr.bf16.mxu0 %v9232_v27  ;;  %v9301_v46 = vld [vmem:[%s9959_s7 + $0x12ec] ss:$16 sps:$4 sm:$0xff]   ;;  %v9296_v27 = vld [vmem:[%s9959_s7 + $0x10e8] ss:$16 sps:$4 sm:$0xff]  }
 0x2f0   : > { %6727 = vmatprep.subr.bf16.mxu1 %v9235_v31  ;;  %v9299_v31 = vld [vmem:[%s9959_s7 + $0x12e8] ss:$16 sps:$4 sm:$0xff]  }
 0x2f2   : > { %6687 = vmatpush1.bf16.msra.mxu0 %v9230_v2  ;;  %v9304_v2 = vld [vmem:[%s9959_s7 + $0x10cc] ss:$16 sps:$4 sm:$0xff]  }
 0x2f3   : > { %6728 = vmatpush1.bf16.msra.mxu1 %v9233_v63  ;;  %6688 = vmatprep.subr.bf16.mxu0 %v9238_v47  ;;  %v9307_v63 = vld [vmem:[%s9959_s7 + $0x12cc] ss:$16 sps:$4 sm:$0xff]  }
 0x2f4   : > { %6729 = vmatprep.subr.bf16.mxu1 %v9241_v14 }
 0x2f6   : > { %6689 = vmatpush1.bf16.msra.mxu0 %v9236_v19 }
 0x2f7   : > { %6730 = vmatpush1.bf16.msra.mxu1 %v9239_v42  ;;  %6690 = vmatprep.subr.bf16.mxu0 %v9244_v43  ;;  %v9302_v42 = vld [vmem:[%s9959_s7 + $0x10c8] ss:$16 sps:$4 sm:$0xff]  }
 0x2f8   : > { %6731 = vmatprep.subr.bf16.mxu1 %v9247_v6  ;;  %v9305_v43 = vld [vmem:[%s9959_s7 + $0x12c8] ss:$16 sps:$4 sm:$0xff]  }
 0x2fa   : > { %6691 = vmatpush1.bf16.msra.mxu0 %v9242_v57 }
 0x2fb   : > { %6732 = vmatpush1.bf16.msra.mxu1 %v9245_v8  ;;  %6692 = vmatprep.subr.bf16.mxu0 %v9250_v53  ;;  %v9310_v8 = vld [vmem:[%s9959_s7 + $0x10ac] ss:$16 sps:$4 sm:$0xff]  }
 0x2fc   : > { %6733 = vmatprep.subr.bf16.mxu1 %v9253_v61  ;;  %v9313_v53 = vld [vmem:[%s9959_s7 + $0x12ac] ss:$16 sps:$4 sm:$0xff]  }
 0x2fe   : > { %6693 = vmatpush2.bf16.msra.mxu0 %v9248_v1  ;;  %v9308_v1 = vld [vmem:[%s9959_s7 + $0x10a8] ss:$16 sps:$4 sm:$0xff]  }
 0x2ff   : > { %6734 = vmatpush2.bf16.msra.mxu1 %v9251_v18  ;;  %6694 = vmatprep.subr.bf16.mxu0 %v9256_v24  ;;  %v9311_v18 = vld [vmem:[%s9959_s7 + $0x12a8] ss:$16 sps:$4 sm:$0xff]  }
 0x300   : > { %6735 = vmatprep.subr.bf16.mxu1 %v9259_v3 }
 0x302   : > { %6695 = vmatpush2.bf16.msra.mxu0 %v9254_v10  ;;  %v9316_v10 = vld [vmem:[%s9959_s7 + $0x108c] ss:$16 sps:$4 sm:$0xff]  }
 0x303   : > { %6736 = vmatpush2.bf16.msra.mxu1 %v9257_v11  ;;  %6696 = vmatprep.subr.bf16.mxu0 %v9262_v12  ;;  %v9317_v11 = vld [vmem:[%s9959_s7 + $0x1288] ss:$16 sps:$4 sm:$0xff]   ;;  %v9322_v12 = vld [vmem:[%s9959_s7 + $0x106c] ss:$16 sps:$4 sm:$0xff]  }
 0x304   : > { %6737 = vmatprep.subr.bf16.mxu1 %v9265_v16  ;;  %v9325_v16 = vld [vmem:[%s9959_s7 + $0x126c] ss:$16 sps:$4 sm:$0xff]  }
 0x306   : > { %6697 = vmatpush2.bf16.msra.mxu0 %v9260_v17  ;;  %v9320_v17 = vld [vmem:[%s9959_s7 + $0x1068] ss:$16 sps:$4 sm:$0xff]  }
 0x307   : > { %6738 = vmatpush2.bf16.msra.mxu1 %v9263_v22  ;;  %6698 = vmatprep.subr.bf16.mxu0 %v9268_v25  ;;  %v9323_v22 = vld [vmem:[%s9959_s7 + $0x1268] ss:$16 sps:$4 sm:$0xff]   ;;  %v9328_v25 = vld [vmem:[%s9959_s7 + $0x104c] ss:$16 sps:$4 sm:$0xff]  }
 0x308   : > { %6739 = vmatprep.subr.bf16.mxu1 %v9271_v28  ;;  %v9331_v28 = vld [vmem:[%s9959_s7 + $0x124c] ss:$16 sps:$4 sm:$0xff]  }
 0x30a   : > { %6699 = vmatpush2.bf16.msra.mxu0 %v9266_v30  ;;  %v9326_v30 = vld [vmem:[%s9959_s7 + $0x1048] ss:$16 sps:$4 sm:$0xff]  }
 0x30b   : > { %6740 = vmatpush2.bf16.msra.mxu1 %v9269_v34  ;;  %6700 = vmatprep.subr.bf16.mxu0 %v9274_v35  ;;  %v9329_v34 = vld [vmem:[%s9959_s7 + $0x1248] ss:$16 sps:$4 sm:$0xff]   ;;  %v9334_v35 = vld [vmem:[%s9959_s7 + $0x102c] ss:$16 sps:$4 sm:$0xff]  }
 0x30c   : > { %6741 = vmatprep.subr.bf16.mxu1 %v9277_v38  ;;  %v9337_v38 = vld [vmem:[%s9959_s7 + $0x122c] ss:$16 sps:$4 sm:$0xff]  }
 0x30e   : > { %6701 = vmatpush2.bf16.msra.mxu0 %v9272_v40  ;;  %v9332_v40 = vld [vmem:[%s9959_s7 + $0x1028] ss:$16 sps:$4 sm:$0xff]  }
 0x30f   : > { %6742 = vmatpush2.bf16.msra.mxu1 %v9275_v49  ;;  %6702 = vmatprep.subr.bf16.mxu0 %v9280_v56  ;;  %v9335_v49 = vld [vmem:[%s9959_s7 + $0x1228] ss:$16 sps:$4 sm:$0xff]   ;;  %v9340_v56 = vld [vmem:[%s9959_s7 + $0x100c] ss:$16 sps:$4 sm:$0xff]  }
 0x310   : > { %6743 = vmatprep.subr.bf16.mxu1 %v9283_v58  ;;  %v9343_v58 = vld [vmem:[%s9959_s7 + $0x120c] ss:$16 sps:$4 sm:$0xff]  }
 0x312   : > { %6703 = vmatpush2.bf16.msra.mxu0 %v9278_v62  ;;  %v9338_v62 = vld [vmem:[%s9959_s7 + $0x1008] ss:$16 sps:$4 sm:$0xff]  }
 0x313   : > { %6744 = vmatpush2.bf16.msra.mxu1 %v9281_v45  ;;  %6704 = vmatprep.subr.bf16.mxu0 %v9286_v48  ;;  %v9341_v45 = vld [vmem:[%s9959_s7 + $0x1208] ss:$16 sps:$4 sm:$0xff]   ;;  %v9346_v48 = vld [vmem:[%s9959_s7 + $0x11ec] ss:$16 sps:$4 sm:$0xff]  }
 0x314   : > { %6745 = vmatprep.subr.bf16.mxu1 %v9289_v39  ;;  %v9349_v39 = vld [vmem:[%s9959_s7 + $0x13ec] ss:$16 sps:$4 sm:$0xff]  }
 0x316   : > { %6705 = vmatpush2.bf16.msra.mxu0 %v9284_v55  ;;  %v9344_v55 = vld [vmem:[%s9959_s7 + $0x11e8] ss:$16 sps:$4 sm:$0xff]  }
 0x317   : > { %6746 = vmatpush2.bf16.msra.mxu1 %v9287_v60  ;;  %6706 = vmatprep.subr.bf16.mxu0 %v9292_v51  ;;  %v9347_v60 = vld [vmem:[%s9959_s7 + $0x13e8] ss:$16 sps:$4 sm:$0xff]   ;;  %v9352_v51 = vld [vmem:[%s9959_s7 + $0x11cc] ss:$16 sps:$4 sm:$0xff]  }
 0x318   : > { %6747 = vmatprep.subr.bf16.mxu1 %v9295_v37  ;;  %v9355_v37 = vld [vmem:[%s9959_s7 + $0x13cc] ss:$16 sps:$4 sm:$0xff]  }
 0x31a   : > { %6707 = vmatpush2.bf16.msra.mxu0 %v9290_v52  ;;  %v9350_v52 = vld [vmem:[%s9959_s7 + $0x11c8] ss:$16 sps:$4 sm:$0xff]  }
 0x31b   : > { %6748 = vmatpush2.bf16.msra.mxu1 %v9293_v54  ;;  %6758 = vmatprep.subr.bf16.mxu0 %v9298_v36  ;;  %v9353_v54 = vld [vmem:[%s9959_s7 + $0x13c8] ss:$16 sps:$4 sm:$0xff]   ;;  %v9358_v36 = vld [vmem:[%s9959_s7 + $0x11ac] ss:$16 sps:$4 sm:$0xff]  }
 0x31c   : > { %6799 = vmatprep.subr.bf16.mxu1 %v9301_v46  ;;  %v9361_v46 = vld [vmem:[%s9959_s7 + $0x13ac] ss:$16 sps:$4 sm:$0xff]  }
 0x31d   : > { %v6464_v47 = vpop.f32.mrf.mxu0  ;;  %6709 = vmatmul.mubr.bf16.vlgmr.msra.gmra.mxu0 %v10345_v13 }
 0x31e   : > { %v6505_v14 = vpop.f32.mrf.mxu1  ;;  %6750 = vmatmul.mubr.bf16.vlgmr.msra.gmra.mxu1 %v10355_v21  ;;  %6759 = vmatpush1.bf16.msra.mxu0 %v9296_v27  ;;  %v9356_v27 = vld [vmem:[%s9959_s7 + $0x11a8] ss:$16 sps:$4 sm:$0xff]  }
 0x31f   : > { %v10935_v19 = vadd.f32 %v6505_v14, %v6464_v47  ;;  %6800 = vmatpush1.bf16.msra.mxu1 %v9299_v31  ;;  %v6466_v6 = vpop.f32.mrf.mxu0  ;;  %6760 = vmatprep.subr.bf16.mxu0 %v9304_v2  ;;  %v9359_v31 = vld [vmem:[%s9959_s7 + $0x13a8] ss:$16 sps:$4 sm:$0xff]   ;;  %v9364_v2 = vld [vmem:[%s9959_s7 + $0x118c] ss:$16 sps:$4 sm:$0xff]  }
 0x320   : > { %v6507_v57 = vpop.f32.mrf.mxu1  ;;  %6801 = vmatprep.subr.bf16.mxu1 %v9307_v63  ;;  %6790 = vmatprep.mubr.bf16.mxu0 %v10351_v20  ;;  %v9319_v20 = vld [vmem:[%s9959_s7 + $0x128c] ss:$16 sps:$4 sm:$0xff]   ;;  %v9362_v47 = vld [vmem:[%s9959_s7 + $0x1188] ss:$16 sps:$4 sm:$0xff]  }
 0x321   : > { %v10941_v61 = vadd.f32 %v6507_v57, %v6466_v6  ;;  %6831 = vmatprep.mubr.bf16.mxu1 %v10363_v26  ;;  %v6468_v13 = vpop.f32.mrf.mxu0  ;;  %v9314_v26 = vld [vmem:[%s9959_s7 + $0x1088] ss:$16 sps:$4 sm:$0xff]   ;;  %v9367_v63 = vld [vmem:[%s9959_s7 + $0x138c] ss:$16 sps:$4 sm:$0xff]  }
 0x322   : > { %v6509_v21 = vpop.f32.mrf.mxu1  ;;  %6761 = vmatpush1.bf16.msra.mxu0 %v9302_v42  ;;  %v9365_v14 = vld [vmem:[%s9959_s7 + $0x1388] ss:$16 sps:$4 sm:$0xff]   ;;  %v9370_v42 = vld [vmem:[%s9959_s7 + $0x116c] ss:$16 sps:$4 sm:$0xff]  }
 0x323   : > { %6802 = vmatpush1.bf16.msra.mxu1 %v9305_v43  ;;  %v6469_v24 = vpop.f32.mrf.mxu0  ;;  %6762 = vmatprep.subr.bf16.mxu0 %v9310_v8  ;;  %v9373_v43 = vld [vmem:[%s9959_s7 + $0x136c] ss:$16 sps:$4 sm:$0xff]   ;;  %v9368_v6 = vld [vmem:[%s9959_s7 + $0x1168] ss:$16 sps:$4 sm:$0xff]  }
 0x324   : > { %v6510_v3 = vpop.f32.mrf.mxu1  ;;  %6803 = vmatprep.subr.bf16.mxu1 %v9313_v53  ;;  %v9371_v57 = vld [vmem:[%s9959_s7 + $0x1368] ss:$16 sps:$4 sm:$0xff]   ;;  %v9376_v8 = vld [vmem:[%s9959_s7 + $0x114c] ss:$16 sps:$4 sm:$0xff]  }
 0x325   : > { %v9379_v53 = vld [vmem:[%s9959_s7 + $0x134c] ss:$16 sps:$4 sm:$0xff]   ;;  %v9374_v13 = vld [vmem:[%s9959_s7 + $0x1148] ss:$16 sps:$4 sm:$0xff]  }
 0x326   : > { %6763 = vmatpush1.bf16.msra.mxu0 %v9308_v1  ;;  %v9377_v21 = vld [vmem:[%s9959_s7 + $0x1348] ss:$16 sps:$4 sm:$0xff]   ;;  %v9382_v1 = vld [vmem:[%s9959_s7 + $0x112c] ss:$16 sps:$4 sm:$0xff]  }
 0x327   : > { %6804 = vmatpush1.bf16.msra.mxu1 %v9311_v18  ;;  %6764 = vmatprep.subr.bf16.mxu0 %v9316_v10  ;;  %v9385_v18 = vld [vmem:[%s9959_s7 + $0x132c] ss:$16 sps:$4 sm:$0xff]   ;;  %v9380_v24 = vld [vmem:[%s9959_s7 + $0x1128] ss:$16 sps:$4 sm:$0xff]  }
 0x328   : > { %6805 = vmatprep.subr.bf16.mxu1 %v9319_v20  ;;  %v9383_v3 = vld [vmem:[%s9959_s7 + $0x1328] ss:$16 sps:$4 sm:$0xff]   ;;  %v9388_v10 = vld [vmem:[%s9959_s7 + $0x110c] ss:$16 sps:$4 sm:$0xff]  }
 0x329   : > { %v9391_v20 = vld [vmem:[%s9959_s7 + $0x130c] ss:$16 sps:$4 sm:$0xff]  }
 0x32a   : > { %6765 = vmatpush1.bf16.msra.mxu0 %v9314_v26  ;;  %v9386_v26 = vld [vmem:[%s9959_s7 + $0x1108] ss:$16 sps:$4 sm:$0xff]  }
 0x32b   : > { %6806 = vmatpush1.bf16.msra.mxu1 %v9317_v11  ;;  %6766 = vmatprep.subr.bf16.mxu0 %v9322_v12  ;;  %v9389_v11 = vld [vmem:[%s9959_s7 + $0x1308] ss:$16 sps:$4 sm:$0xff]   ;;  %v9394_v12 = vld [vmem:[%s9959_s7 + $0x14ec] ss:$16 sps:$4 sm:$0xff]  }
 0x32c   : > { %6807 = vmatprep.subr.bf16.mxu1 %v9325_v16  ;;  %v9397_v16 = vld [vmem:[%s9959_s7 + $0x16ec] ss:$16 sps:$4 sm:$0xff]  }
 0x32e   : > { %6767 = vmatpush1.bf16.msra.mxu0 %v9320_v17  ;;  %v9392_v17 = vld [vmem:[%s9959_s7 + $0x14e8] ss:$16 sps:$4 sm:$0xff]  }
 0x32f   : > { %6808 = vmatpush1.bf16.msra.mxu1 %v9323_v22  ;;  %6768 = vmatprep.subr.bf16.mxu0 %v9328_v25  ;;  %v9395_v22 = vld [vmem:[%s9959_s7 + $0x16e8] ss:$16 sps:$4 sm:$0xff]   ;;  %v9400_v25 = vld [vmem:[%s9959_s7 + $0x14cc] ss:$16 sps:$4 sm:$0xff]  }
 0x330   : > { %6809 = vmatprep.subr.bf16.mxu1 %v9331_v28  ;;  %v9403_v28 = vld [vmem:[%s9959_s7 + $0x16cc] ss:$16 sps:$4 sm:$0xff]  }
 0x332   : > { %6769 = vmatpush1.bf16.msra.mxu0 %v9326_v30 }
 0x333   : > { %6810 = vmatpush1.bf16.msra.mxu1 %v9329_v34  ;;  %6770 = vmatprep.subr.bf16.mxu0 %v9334_v35 }
 0x334   : > { %6811 = vmatprep.subr.bf16.mxu1 %v9337_v38  ;;  %v9398_v38 = vld [vmem:[%s9959_s7 + $0x14c8] ss:$16 sps:$4 sm:$0xff]  }
 0x336   : > { %6771 = vmatpush1.bf16.msra.mxu0 %v9332_v40  ;;  %v9401_v40 = vld [vmem:[%s9959_s7 + $0x16c8] ss:$16 sps:$4 sm:$0xff]  }
 0x337   : > { %6812 = vmatpush1.bf16.msra.mxu1 %v9335_v49  ;;  %6772 = vmatprep.subr.bf16.mxu0 %v9340_v56 }
 0x338   : > { %6813 = vmatprep.subr.bf16.mxu1 %v9343_v58  ;;  %v9406_v58 = vld [vmem:[%s9959_s7 + $0x14ac] ss:$16 sps:$4 sm:$0xff]  }
 0x33a   : > { %6773 = vmatpush1.bf16.msra.mxu0 %v9338_v62  ;;  %v9409_v62 = vld [vmem:[%s9959_s7 + $0x16ac] ss:$16 sps:$4 sm:$0xff]  }
 0x33b   : > { %6814 = vmatpush1.bf16.msra.mxu1 %v9341_v45  ;;  %6774 = vmatprep.subr.bf16.mxu0 %v9346_v48 }
 0x33c   : > { %6815 = vmatprep.subr.bf16.mxu1 %v9349_v39  ;;  %v9404_v39 = vld [vmem:[%s9959_s7 + $0x14a8] ss:$16 sps:$4 sm:$0xff]  }
 0x33e   : > { %6775 = vmatpush2.bf16.msra.mxu0 %v9344_v55  ;;  %v9407_v55 = vld [vmem:[%s9959_s7 + $0x16a8] ss:$16 sps:$4 sm:$0xff]  }
 0x33f   : > { %6816 = vmatpush2.bf16.msra.mxu1 %v9347_v60  ;;  %6776 = vmatprep.subr.bf16.mxu0 %v9352_v51 }
 0x340   : > { %6817 = vmatprep.subr.bf16.mxu1 %v9355_v37  ;;  %v9413_v37 = vld [vmem:[%s9959_s7 + $0x1688] ss:$16 sps:$4 sm:$0xff]  }
 0x342   : > { %6777 = vmatpush2.bf16.msra.mxu0 %v9350_v52  ;;  %v9418_v52 = vld [vmem:[%s9959_s7 + $0x146c] ss:$16 sps:$4 sm:$0xff]  }
 0x343   : > { %6818 = vmatpush2.bf16.msra.mxu1 %v9353_v54  ;;  %6778 = vmatprep.subr.bf16.mxu0 %v9358_v36  ;;  %v9421_v54 = vld [vmem:[%s9959_s7 + $0x166c] ss:$16 sps:$4 sm:$0xff]   ;;  %v9416_v36 = vld [vmem:[%s9959_s7 + $0x1468] ss:$16 sps:$4 sm:$0xff]  }
 0x344   : > { %6819 = vmatprep.subr.bf16.mxu1 %v9361_v46  ;;  %v9419_v46 = vld [vmem:[%s9959_s7 + $0x1668] ss:$16 sps:$4 sm:$0xff]  }
 0x346   : > { %6779 = vmatpush2.bf16.msra.mxu0 %v9356_v27  ;;  %v9424_v27 = vld [vmem:[%s9959_s7 + $0x144c] ss:$16 sps:$4 sm:$0xff]  }
 0x347   : > { %6820 = vmatpush2.bf16.msra.mxu1 %v9359_v31  ;;  %6780 = vmatprep.subr.bf16.mxu0 %v9364_v2  ;;  %v9427_v31 = vld [vmem:[%s9959_s7 + $0x164c] ss:$16 sps:$4 sm:$0xff]   ;;  %v9422_v2 = vld [vmem:[%s9959_s7 + $0x1448] ss:$16 sps:$4 sm:$0xff]  }
 0x348   : > { %6821 = vmatprep.subr.bf16.mxu1 %v9367_v63  ;;  %v9425_v63 = vld [vmem:[%s9959_s7 + $0x1648] ss:$16 sps:$4 sm:$0xff]  }
 0x34a   : > { %6781 = vmatpush2.bf16.msra.mxu0 %v9362_v47  ;;  %v9430_v47 = vld [vmem:[%s9959_s7 + $0x142c] ss:$16 sps:$4 sm:$0xff]  }
 0x34b   : > { %6822 = vmatpush2.bf16.msra.mxu1 %v9365_v14  ;;  %6782 = vmatprep.subr.bf16.mxu0 %v9370_v42  ;;  %v9433_v14 = vld [vmem:[%s9959_s7 + $0x162c] ss:$16 sps:$4 sm:$0xff]   ;;  %v9428_v42 = vld [vmem:[%s9959_s7 + $0x1428] ss:$16 sps:$4 sm:$0xff]  }
 0x34c   : > { %6823 = vmatprep.subr.bf16.mxu1 %v9373_v43  ;;  %v9431_v43 = vld [vmem:[%s9959_s7 + $0x1628] ss:$16 sps:$4 sm:$0xff]  }
 0x34e   : > { %6783 = vmatpush2.bf16.msra.mxu0 %v9368_v6  ;;  %v9436_v6 = vld [vmem:[%s9959_s7 + $0x140c] ss:$16 sps:$4 sm:$0xff]  }
 0x34f   : > { %6824 = vmatpush2.bf16.msra.mxu1 %v9371_v57  ;;  %6784 = vmatprep.subr.bf16.mxu0 %v9376_v8  ;;  %v9439_v57 = vld [vmem:[%s9959_s7 + $0x160c] ss:$16 sps:$4 sm:$0xff]   ;;  %v9434_v8 = vld [vmem:[%s9959_s7 + $0x1408] ss:$16 sps:$4 sm:$0xff]  }
 0x350   : > { %6825 = vmatprep.subr.bf16.mxu1 %v9379_v53  ;;  %v9437_v53 = vld [vmem:[%s9959_s7 + $0x1608] ss:$16 sps:$4 sm:$0xff]  }
 0x352   : > { %6785 = vmatpush2.bf16.msra.mxu0 %v9374_v13  ;;  %v9442_v13 = vld [vmem:[%s9959_s7 + $0x15ec] ss:$16 sps:$4 sm:$0xff]  }
 0x353   : > { %6826 = vmatpush2.bf16.msra.mxu1 %v9377_v21  ;;  %6786 = vmatprep.subr.bf16.mxu0 %v9382_v1  ;;  %v9445_v21 = vld [vmem:[%s9959_s7 + $0x17ec] ss:$16 sps:$4 sm:$0xff]   ;;  %v9440_v1 = vld [vmem:[%s9959_s7 + $0x15e8] ss:$16 sps:$4 sm:$0xff]  }
 0x354   : > { %6827 = vmatprep.subr.bf16.mxu1 %v9385_v18  ;;  %v9443_v18 = vld [vmem:[%s9959_s7 + $0x17e8] ss:$16 sps:$4 sm:$0xff]  }
 0x356   : > { %6787 = vmatpush2.bf16.msra.mxu0 %v9380_v24  ;;  %v9448_v24 = vld [vmem:[%s9959_s7 + $0x15cc] ss:$16 sps:$4 sm:$0xff]  }
 0x357   : > { %6828 = vmatpush2.bf16.msra.mxu1 %v9383_v3  ;;  %6788 = vmatprep.subr.bf16.mxu0 %v9388_v10  ;;  %v9451_v3 = vld [vmem:[%s9959_s7 + $0x17cc] ss:$16 sps:$4 sm:$0xff]   ;;  %v9446_v10 = vld [vmem:[%s9959_s7 + $0x15c8] ss:$16 sps:$4 sm:$0xff]  }
 0x358   : > { %6829 = vmatprep.subr.bf16.mxu1 %v9391_v20  ;;  %v9449_v20 = vld [vmem:[%s9959_s7 + $0x17c8] ss:$16 sps:$4 sm:$0xff]  }
 0x35a   : > { %6789 = vmatpush2.bf16.msra.mxu0 %v9386_v26  ;;  %v9454_v26 = vld [vmem:[%s9959_s7 + $0x15ac] ss:$16 sps:$4 sm:$0xff]  }
 0x35b   : > { %6830 = vmatpush2.bf16.msra.mxu1 %v9389_v11  ;;  %6840 = vmatprep.subr.bf16.mxu0 %v9394_v12  ;;  %v9457_v11 = vld [vmem:[%s9959_s7 + $0x17ac] ss:$16 sps:$4 sm:$0xff]   ;;  %v9452_v12 = vld [vmem:[%s9959_s7 + $0x15a8] ss:$16 sps:$4 sm:$0xff]  }
 0x35c   : > { %6881 = vmatprep.subr.bf16.mxu1 %v9397_v16  ;;  %v9455_v16 = vld [vmem:[%s9959_s7 + $0x17a8] ss:$16 sps:$4 sm:$0xff]  }
 0x35d   : > { %v6546_v30 = vpop.f32.mrf.mxu0  ;;  %6791 = vmatmul.mubr.bf16.vlgmr.msra.gmra.mxu0 %v10438_v4 }
 0x35e   : > { %v6587_v34 = vpop.f32.mrf.mxu1  ;;  %6832 = vmatmul.mubr.bf16.vlgmr.msra.gmra.mxu1 %v10451_v5  ;;  %v6547_v35 = vadd.f32 %v6546_v30, %v10935_v19  ;;  %6841 = vmatpush1.bf16.msra.mxu0 %v9392_v17  ;;  %v9460_v17 = vld [vmem:[%s9959_s7 + $0x158c] ss:$16 sps:$4 sm:$0xff]  }
 0x35f   : > { %6882 = vmatpush1.bf16.msra.mxu1 %v9395_v22  ;;  %v6548_v49 = vpop.f32.mrf.mxu0  ;;  %6842 = vmatprep.subr.bf16.mxu0 %v9400_v25  ;;  %v9463_v22 = vld [vmem:[%s9959_s7 + $0x178c] ss:$16 sps:$4 sm:$0xff]   ;;  %v9458_v25 = vld [vmem:[%s9959_s7 + $0x1588] ss:$16 sps:$4 sm:$0xff]  }
 0x360   : > { %v6589_v56 = vpop.f32.mrf.mxu1  ;;  %6883 = vmatprep.subr.bf16.mxu1 %v9403_v28  ;;  %v11012_v45 = vadd.f32 %v6587_v34, %v6547_v35  ;;  %v6549_v4 = vadd.f32 %v6548_v49, %v10941_v61  ;;  %6872 = vmatprep.mubr.bf16.mxu0 %v10447_v15  ;;  %v9412_v15 = vld [vmem:[%s9959_s7 + $0x148c] ss:$16 sps:$4 sm:$0xff]   ;;  %v9410_v61 = vld [vmem:[%s9959_s7 + $0x1488] ss:$16 sps:$4 sm:$0xff]  }
 0x361   : > { %6913 = vmatprep.mubr.bf16.mxu1 %v10459_v23  ;;  %v6550_v5 = vpop.f32.mrf.mxu0  ;;  %v9415_v23 = vld [vmem:[%s9959_s7 + $0x168c] ss:$16 sps:$4 sm:$0xff]   ;;  %v9461_v28 = vld [vmem:[%s9959_s7 + $0x1788] ss:$16 sps:$4 sm:$0xff]  }
 0x362   : > { %v6591_v19 = vpop.f32.mrf.mxu1  ;;  %v11017_v48 = vadd.f32 %v6589_v56, %v6549_v4  ;;  %6843 = vmatpush1.bf16.msra.mxu0 %v9398_v38  ;;  %v9466_v30 = vld [vmem:[%s9959_s7 + $0x156c] ss:$16 sps:$4 sm:$0xff]   ;;  %v9464_v35 = vld [vmem:[%s9959_s7 + $0x1568] ss:$16 sps:$4 sm:$0xff]  }
 0x363   : > { %6884 = vmatpush1.bf16.msra.mxu1 %v9401_v40  ;;  %v6551_v60 = vpop.f32.mrf.mxu0  ;;  %6844 = vmatprep.subr.bf16.mxu0 %v9406_v58  ;;  %v9469_v34 = vld [vmem:[%s9959_s7 + $0x176c] ss:$16 sps:$4 sm:$0xff]   ;;  %v9467_v38 = vld [vmem:[%s9959_s7 + $0x1768] ss:$16 sps:$4 sm:$0xff]  }
 0x364   : > { %v6592_v51 = vpop.f32.mrf.mxu1  ;;  %6885 = vmatprep.subr.bf16.mxu1 %v9409_v62  ;;  %v9472_v40 = vld [vmem:[%s9959_s7 + $0x154c] ss:$16 sps:$4 sm:$0xff]   ;;  %v9470_v56 = vld [vmem:[%s9959_s7 + $0x1548] ss:$16 sps:$4 sm:$0xff]  }
 0x365   : > { %v9475_v49 = vld [vmem:[%s9959_s7 + $0x174c] ss:$16 sps:$4 sm:$0xff]   ;;  %v9473_v58 = vld [vmem:[%s9959_s7 + $0x1748] ss:$16 sps:$4 sm:$0xff]  }
 0x366   : > { %6845 = vmatpush1.bf16.msra.mxu0 %v9404_v39  ;;  %v9478_v62 = vld [vmem:[%s9959_s7 + $0x152c] ss:$16 sps:$4 sm:$0xff]   ;;  %v9476_v5 = vld [vmem:[%s9959_s7 + $0x1528] ss:$16 sps:$4 sm:$0xff]  }
 0x367   : > { %6886 = vmatpush1.bf16.msra.mxu1 %v9407_v55  ;;  %6846 = vmatprep.subr.bf16.mxu0 %v9412_v15  ;;  %v9481_v4 = vld [vmem:[%s9959_s7 + $0x172c] ss:$16 sps:$4 sm:$0xff]   ;;  %v9479_v19 = vld [vmem:[%s9959_s7 + $0x1728] ss:$16 sps:$4 sm:$0xff]  }
 0x368   : > { %6887 = vmatprep.subr.bf16.mxu1 %v9415_v23  ;;  %v9484_v39 = vld [vmem:[%s9959_s7 + $0x150c] ss:$16 sps:$4 sm:$0xff]   ;;  %v9482_v60 = vld [vmem:[%s9959_s7 + $0x1508] ss:$16 sps:$4 sm:$0xff]  }
 0x369   : > { %v9487_v55 = vld [vmem:[%s9959_s7 + $0x170c] ss:$16 sps:$4 sm:$0xff]   ;;  %v9485_v51 = vld [vmem:[%s9959_s7 + $0x1708] ss:$16 sps:$4 sm:$0xff]  }
 0x36a   : > { %6847 = vmatpush1.bf16.msra.mxu0 %v9410_v61  ;;  %v9490_v15 = vld [vmem:[%s9959_s7 + $0x18ec] ss:$16 sps:$4 sm:$0xff]   ;;  %v9488_v61 = vld [vmem:[%s9959_s7 + $0x18e8] ss:$16 sps:$4 sm:$0xff]  }
 0x36b   : > { %6888 = vmatpush1.bf16.msra.mxu1 %v9413_v37  ;;  %6848 = vmatprep.subr.bf16.mxu0 %v9418_v52  ;;  %v9493_v23 = vld [vmem:[%s9959_s7 + $0x1aec] ss:$16 sps:$4 sm:$0xff]   ;;  %v9491_v37 = vld [vmem:[%s9959_s7 + $0x1ae8] ss:$16 sps:$4 sm:$0xff]  }
 0x36c   : > { %6889 = vmatprep.subr.bf16.mxu1 %v9421_v54  ;;  %v9496_v52 = vld [vmem:[%s9959_s7 + $0x18cc] ss:$16 sps:$4 sm:$0xff]  }
 0x36d   : > { %v9499_v54 = vld [vmem:[%s9959_s7 + $0x1acc] ss:$16 sps:$4 sm:$0xff]  }
 0x36e   : > { %6849 = vmatpush1.bf16.msra.mxu0 %v9416_v36 }
 0x36f   : > { %6890 = vmatpush1.bf16.msra.mxu1 %v9419_v46  ;;  %6850 = vmatprep.subr.bf16.mxu0 %v9424_v27 }
 0x370   : > { %6891 = vmatprep.subr.bf16.mxu1 %v9427_v31  ;;  %v9494_v31 = vld [vmem:[%s9959_s7 + $0x18c8] ss:$16 sps:$4 sm:$0xff]  }
 0x372   : > { %6851 = vmatpush1.bf16.msra.mxu0 %v9422_v2  ;;  %v9497_v2 = vld [vmem:[%s9959_s7 + $0x1ac8] ss:$16 sps:$4 sm:$0xff]  }
 0x373   : > { %6892 = vmatpush1.bf16.msra.mxu1 %v9425_v63  ;;  %6852 = vmatprep.subr.bf16.mxu0 %v9430_v47 }
 0x374   : > { %6893 = vmatprep.subr.bf16.mxu1 %v9433_v14  ;;  %v9502_v14 = vld [vmem:[%s9959_s7 + $0x18ac] ss:$16 sps:$4 sm:$0xff]  }
 0x376   : > { %6853 = vmatpush1.bf16.msra.mxu0 %v9428_v42  ;;  %v9505_v42 = vld [vmem:[%s9959_s7 + $0x1aac] ss:$16 sps:$4 sm:$0xff]  }
 0x377   : > { %6894 = vmatpush1.bf16.msra.mxu1 %v9431_v43  ;;  %6854 = vmatprep.subr.bf16.mxu0 %v9436_v6 }
 0x378   : > { %6895 = vmatprep.subr.bf16.mxu1 %v9439_v57  ;;  %v9500_v57 = vld [vmem:[%s9959_s7 + $0x18a8] ss:$16 sps:$4 sm:$0xff]  }
 0x37a   : > { %6855 = vmatpush1.bf16.msra.mxu0 %v9434_v8  ;;  %v9503_v8 = vld [vmem:[%s9959_s7 + $0x1aa8] ss:$16 sps:$4 sm:$0xff]  }
 0x37b   : > { %6896 = vmatpush1.bf16.msra.mxu1 %v9437_v53  ;;  %6856 = vmatprep.subr.bf16.mxu0 %v9442_v13 }
 0x37c   : > { %6897 = vmatprep.subr.bf16.mxu1 %v9445_v21  ;;  %v9509_v21 = vld [vmem:[%s9959_s7 + $0x1a88] ss:$16 sps:$4 sm:$0xff]  }
 0x37e   : > { %6857 = vmatpush2.bf16.msra.mxu0 %v9440_v1  ;;  %v9514_v1 = vld [vmem:[%s9959_s7 + $0x186c] ss:$16 sps:$4 sm:$0xff]  }
 0x37f   : > { %6898 = vmatpush2.bf16.msra.mxu1 %v9443_v18  ;;  %6858 = vmatprep.subr.bf16.mxu0 %v9448_v24  ;;  %v9517_v18 = vld [vmem:[%s9959_s7 + $0x1a6c] ss:$16 sps:$4 sm:$0xff]   ;;  %v9512_v24 = vld [vmem:[%s9959_s7 + $0x1868] ss:$16 sps:$4 sm:$0xff]  }
 0x380   : > { %6899 = vmatprep.subr.bf16.mxu1 %v9451_v3  ;;  %v9515_v3 = vld [vmem:[%s9959_s7 + $0x1a68] ss:$16 sps:$4 sm:$0xff]  }
 0x382   : > { %6859 = vmatpush2.bf16.msra.mxu0 %v9446_v10  ;;  %v9520_v10 = vld [vmem:[%s9959_s7 + $0x184c] ss:$16 sps:$4 sm:$0xff]  }
 0x383   : > { %6900 = vmatpush2.bf16.msra.mxu1 %v9449_v20  ;;  %6860 = vmatprep.subr.bf16.mxu0 %v9454_v26  ;;  %v9523_v20 = vld [vmem:[%s9959_s7 + $0x1a4c] ss:$16 sps:$4 sm:$0xff]   ;;  %v9518_v26 = vld [vmem:[%s9959_s7 + $0x1848] ss:$16 sps:$4 sm:$0xff]  }
 0x384   : > { %6901 = vmatprep.subr.bf16.mxu1 %v9457_v11  ;;  %v9521_v11 = vld [vmem:[%s9959_s7 + $0x1a48] ss:$16 sps:$4 sm:$0xff]  }
 0x386   : > { %6861 = vmatpush2.bf16.msra.mxu0 %v9452_v12  ;;  %v9526_v12 = vld [vmem:[%s9959_s7 + $0x182c] ss:$16 sps:$4 sm:$0xff]  }
 0x387   : > { %6902 = vmatpush2.bf16.msra.mxu1 %v9455_v16  ;;  %6862 = vmatprep.subr.bf16.mxu0 %v9460_v17  ;;  %v9529_v16 = vld [vmem:[%s9959_s7 + $0x1a2c] ss:$16 sps:$4 sm:$0xff]   ;;  %v9524_v17 = vld [vmem:[%s9959_s7 + $0x1828] ss:$16 sps:$4 sm:$0xff]  }
 0x388   : > { %6903 = vmatprep.subr.bf16.mxu1 %v9463_v22  ;;  %v9527_v22 = vld [vmem:[%s9959_s7 + $0x1a28] ss:$16 sps:$4 sm:$0xff]  }
 0x38a   : > { %6863 = vmatpush2.bf16.msra.mxu0 %v9458_v25  ;;  %v9532_v25 = vld [vmem:[%s9959_s7 + $0x180c] ss:$16 sps:$4 sm:$0xff]  }
 0x38b   : > { %6904 = vmatpush2.bf16.msra.mxu1 %v9461_v28  ;;  %6864 = vmatprep.subr.bf16.mxu0 %v9466_v30  ;;  %v9535_v28 = vld [vmem:[%s9959_s7 + $0x1a0c] ss:$16 sps:$4 sm:$0xff]   ;;  %v9530_v30 = vld [vmem:[%s9959_s7 + $0x1808] ss:$16 sps:$4 sm:$0xff]  }
 0x38c   : > { %6905 = vmatprep.subr.bf16.mxu1 %v9469_v34  ;;  %v9533_v34 = vld [vmem:[%s9959_s7 + $0x1a08] ss:$16 sps:$4 sm:$0xff]  }
 0x38e   : > { %6865 = vmatpush2.bf16.msra.mxu0 %v9464_v35  ;;  %v9538_v35 = vld [vmem:[%s9959_s7 + $0x19ec] ss:$16 sps:$4 sm:$0xff]  }
 0x38f   : > { %6906 = vmatpush2.bf16.msra.mxu1 %v9467_v38  ;;  %6866 = vmatprep.subr.bf16.mxu0 %v9472_v40  ;;  %v9541_v38 = vld [vmem:[%s9959_s7 + $0x1bec] ss:$16 sps:$4 sm:$0xff]   ;;  %v9536_v40 = vld [vmem:[%s9959_s7 + $0x19e8] ss:$16 sps:$4 sm:$0xff]  }
 0x390   : > { %6907 = vmatprep.subr.bf16.mxu1 %v9475_v49  ;;  %v9539_v49 = vld [vmem:[%s9959_s7 + $0x1be8] ss:$16 sps:$4 sm:$0xff]  }
 0x392   : > { %6867 = vmatpush2.bf16.msra.mxu0 %v9470_v56  ;;  %v9544_v56 = vld [vmem:[%s9959_s7 + $0x19cc] ss:$16 sps:$4 sm:$0xff]  }
 0x393   : > { %6908 = vmatpush2.bf16.msra.mxu1 %v9473_v58  ;;  %6868 = vmatprep.subr.bf16.mxu0 %v9478_v62  ;;  %v9547_v58 = vld [vmem:[%s9959_s7 + $0x1bcc] ss:$16 sps:$4 sm:$0xff]   ;;  %v9542_v62 = vld [vmem:[%s9959_s7 + $0x19c8] ss:$16 sps:$4 sm:$0xff]  }
 0x394   : > { %6909 = vmatprep.subr.bf16.mxu1 %v9481_v4  ;;  %v9545_v4 = vld [vmem:[%s9959_s7 + $0x1bc8] ss:$16 sps:$4 sm:$0xff]  }
 0x396   : > { %6869 = vmatpush2.bf16.msra.mxu0 %v9476_v5  ;;  %v9550_v5 = vld [vmem:[%s9959_s7 + $0x19ac] ss:$16 sps:$4 sm:$0xff]  }
 0x397   : > { %6910 = vmatpush2.bf16.msra.mxu1 %v9479_v19  ;;  %6870 = vmatprep.subr.bf16.mxu0 %v9484_v39  ;;  %v9553_v19 = vld [vmem:[%s9959_s7 + $0x1bac] ss:$16 sps:$4 sm:$0xff]   ;;  %v9548_v39 = vld [vmem:[%s9959_s7 + $0x19a8] ss:$16 sps:$4 sm:$0xff]  }
 0x398   : > { %6911 = vmatprep.subr.bf16.mxu1 %v9487_v55  ;;  %v9551_v55 = vld [vmem:[%s9959_s7 + $0x1ba8] ss:$16 sps:$4 sm:$0xff]  }
 0x39a   : > { %6871 = vmatpush2.bf16.msra.mxu0 %v9482_v60  ;;  %v9556_v60 = vld [vmem:[%s9959_s7 + $0x198c] ss:$16 sps:$4 sm:$0xff]  }
 0x39b   : > { %6912 = vmatpush2.bf16.msra.mxu1 %v9485_v51  ;;  %6922 = vmatprep.subr.bf16.mxu0 %v9490_v15  ;;  %v9559_v51 = vld [vmem:[%s9959_s7 + $0x1b8c] ss:$16 sps:$4 sm:$0xff]   ;;  %v9554_v15 = vld [vmem:[%s9959_s7 + $0x1988] ss:$16 sps:$4 sm:$0xff]  }
 0x39c   : > { %6963 = vmatprep.subr.bf16.mxu1 %v9493_v23  ;;  %v9557_v23 = vld [vmem:[%s9959_s7 + $0x1b88] ss:$16 sps:$4 sm:$0xff]  }
 0x39d   : > { %v6628_v36 = vpop.f32.mrf.mxu0  ;;  %6873 = vmatmul.mubr.bf16.vlgmr.msra.gmra.mxu0 %v10532_v9 }
 0x39e   : > { %v6669_v46 = vpop.f32.mrf.mxu1  ;;  %6914 = vmatmul.mubr.bf16.vlgmr.msra.gmra.mxu1 %v10545_v59  ;;  %v6629_v27 = vadd.f32 %v6628_v36, %v11012_v45  ;;  %6923 = vmatpush1.bf16.msra.mxu0 %v9488_v61  ;;  %v9562_v61 = vld [vmem:[%s9959_s7 + $0x196c] ss:$16 sps:$4 sm:$0xff]  }
 0x39f   : > { %6964 = vmatpush1.bf16.msra.mxu1 %v9491_v37  ;;  %v6630_v63 = vpop.f32.mrf.mxu0  ;;  %6924 = vmatprep.subr.bf16.mxu0 %v9496_v52  ;;  %v9565_v37 = vld [vmem:[%s9959_s7 + $0x1b6c] ss:$16 sps:$4 sm:$0xff]   ;;  %v9560_v52 = vld [vmem:[%s9959_s7 + $0x1968] ss:$16 sps:$4 sm:$0xff]  }
 0x3a0   : > { %v6671_v47 = vpop.f32.mrf.mxu1  ;;  %6965 = vmatprep.subr.bf16.mxu1 %v9499_v54  ;;  %v11086_v43 = vadd.f32 %v6669_v46, %v6629_v27  ;;  %v6631_v9 = vadd.f32 %v6630_v63, %v11017_v48  ;;  %6954 = vmatprep.mubr.bf16.mxu0 %v10541_v41  ;;  %v9508_v41 = vld [vmem:[%s9959_s7 + $0x188c] ss:$16 sps:$4 sm:$0xff]   ;;  %v9506_v48 = vld [vmem:[%s9959_s7 + $0x1888] ss:$16 sps:$4 sm:$0xff]  }
 0x3a1   : > { %6995 = vmatprep.mubr.bf16.mxu1 %v10553_v32  ;;  %v6632_v59 = vpop.f32.mrf.mxu0  ;;  %v9511_v32 = vld [vmem:[%s9959_s7 + $0x1a8c] ss:$16 sps:$4 sm:$0xff]   ;;  %v9563_v54 = vld [vmem:[%s9959_s7 + $0x1b68] ss:$16 sps:$4 sm:$0xff]  }
 0x3a2   : > { %v6673_v45 = vpop.f32.mrf.mxu1  ;;  %v11091_v6 = vadd.f32 %v6671_v47, %v6631_v9  ;;  %6925 = vmatpush1.bf16.msra.mxu0 %v9494_v31  ;;  %v9568_v36 = vld [vmem:[%s9959_s7 + $0x194c] ss:$16 sps:$4 sm:$0xff]   ;;  %v9566_v27 = vld [vmem:[%s9959_s7 + $0x1948] ss:$16 sps:$4 sm:$0xff]  }
 0x3a3   : > { %6966 = vmatpush1.bf16.msra.mxu1 %v9497_v2  ;;  %v6633_v53 = vpop.f32.mrf.mxu0  ;;  %6926 = vmatprep.subr.bf16.mxu0 %v9502_v14  ;;  %v9571_v46 = vld [vmem:[%s9959_s7 + $0x1b4c] ss:$16 sps:$4 sm:$0xff]   ;;  %v9569_v31 = vld [vmem:[%s9959_s7 + $0x1b48] ss:$16 sps:$4 sm:$0xff]  }
 0x3a4   : > { %v6674_v13 = vpop.f32.mrf.mxu1  ;;  %6967 = vmatprep.subr.bf16.mxu1 %v9505_v42  ;;  %v9574_v2 = vld [vmem:[%s9959_s7 + $0x192c] ss:$16 sps:$4 sm:$0xff]   ;;  %v9572_v47 = vld [vmem:[%s9959_s7 + $0x1928] ss:$16 sps:$4 sm:$0xff]  }
 0x3a5   : > { %v9577_v63 = vld [vmem:[%s9959_s7 + $0x1b2c] ss:$16 sps:$4 sm:$0xff]   ;;  %v9575_v14 = vld [vmem:[%s9959_s7 + $0x1b28] ss:$16 sps:$4 sm:$0xff]  }
 0x3a6   : > { %6927 = vmatpush1.bf16.msra.mxu0 %v9500_v57  ;;  %v9580_v42 = vld [vmem:[%s9959_s7 + $0x190c] ss:$16 sps:$4 sm:$0xff]   ;;  %v9578_v59 = vld [vmem:[%s9959_s7 + $0x1908] ss:$16 sps:$4 sm:$0xff]  }
 0x3a7   : > { %6968 = vmatpush1.bf16.msra.mxu1 %v9503_v8  ;;  %6928 = vmatprep.subr.bf16.mxu0 %v9508_v41  ;;  %v9583_v9 = vld [vmem:[%s9959_s7 + $0x1b0c] ss:$16 sps:$4 sm:$0xff]   ;;  %v9581_v45 = vld [vmem:[%s9959_s7 + $0x1b08] ss:$16 sps:$4 sm:$0xff]  }
 0x3a8   : > { %6969 = vmatprep.subr.bf16.mxu1 %v9511_v32 }
 0x3aa   : > { %6929 = vmatpush1.bf16.msra.mxu0 %v9506_v48 }
 0x3ab   : > { %6970 = vmatpush1.bf16.msra.mxu1 %v9509_v21  ;;  %6930 = vmatprep.subr.bf16.mxu0 %v9514_v1 }
 0x3ac   : > { %6971 = vmatprep.subr.bf16.mxu1 %v9517_v18 }
 0x3ae   : > { %6931 = vmatpush1.bf16.msra.mxu0 %v9512_v24 }
 0x3af   : > { %6972 = vmatpush1.bf16.msra.mxu1 %v9515_v3  ;;  %6932 = vmatprep.subr.bf16.mxu0 %v9520_v10 }
 0x3b0   : > { %6973 = vmatprep.subr.bf16.mxu1 %v9523_v20 }
 0x3b2   : > { %6933 = vmatpush1.bf16.msra.mxu0 %v9518_v26 }
 0x3b3   : > { %6974 = vmatpush1.bf16.msra.mxu1 %v9521_v11  ;;  %6934 = vmatprep.subr.bf16.mxu0 %v9526_v12 }
 0x3b4   : > { %6975 = vmatprep.subr.bf16.mxu1 %v9529_v16 }
 0x3b6   : > { %6935 = vmatpush1.bf16.msra.mxu0 %v9524_v17 }
 0x3b7   : > { %6976 = vmatpush1.bf16.msra.mxu1 %v9527_v22  ;;  %6936 = vmatprep.subr.bf16.mxu0 %v9532_v25 }
 0x3b8   : > { %6977 = vmatprep.subr.bf16.mxu1 %v9535_v28 }
 0x3ba   : > { %6937 = vmatpush1.bf16.msra.mxu0 %v9530_v30 }
 0x3bb   : > { %6978 = vmatpush1.bf16.msra.mxu1 %v9533_v34  ;;  %6938 = vmatprep.subr.bf16.mxu0 %v9538_v35 }
 0x3bc   : > { %6979 = vmatprep.subr.bf16.mxu1 %v9541_v38 }
 0x3be   : > { %6939 = vmatpush2.bf16.msra.mxu0 %v9536_v40 }
 0x3bf   : > { %6980 = vmatpush2.bf16.msra.mxu1 %v9539_v49  ;;  %6940 = vmatprep.subr.bf16.mxu0 %v9544_v56 }
 0x3c0   : > { %6981 = vmatprep.subr.bf16.mxu1 %v9547_v58 }
 0x3c2   : > { %6941 = vmatpush2.bf16.msra.mxu0 %v9542_v62  ;;  %v9773_v62 = vmov 1983009808  }
 0x3c3   : > { %6982 = vmatpush2.bf16.msra.mxu1 %v9545_v4  ;;  %6942 = vmatprep.subr.bf16.mxu0 %v9550_v5  ;;  %v7011_v4 = vunpack.c.l.s4 %v9773_v62 }
 0x3c4   : > { %6983 = vmatprep.subr.bf16.mxu1 %v9553_v19 }
 0x3c6   : > { %6943 = vmatpush2.bf16.msra.mxu0 %v9548_v39 }
 0x3c7   : > { %6984 = vmatpush2.bf16.msra.mxu1 %v9551_v55  ;;  %6944 = vmatprep.subr.bf16.mxu0 %v9556_v60  ;;  %v7012_v55 = vunpack.c.0.s8 %v7011_v4 }
 0x3c8   : > { %6985 = vmatprep.subr.bf16.mxu1 %v9559_v51 }
 0x3ca   : > { %6945 = vmatpush2.bf16.msra.mxu0 %v9554_v15 }
 0x3cb   : > { %6986 = vmatpush2.bf16.msra.mxu1 %v9557_v23  ;;  %6946 = vmatprep.subr.bf16.mxu0 %v9562_v61 }
 0x3cc   : > { %6987 = vmatprep.subr.bf16.mxu1 %v9565_v37 }
 0x3ce   : > { %6947 = vmatpush2.bf16.msra.mxu0 %v9560_v52 }
 0x3cf   : > { %6988 = vmatpush2.bf16.msra.mxu1 %v9563_v54  ;;  %6948 = vmatprep.subr.bf16.mxu0 %v9568_v36  ;;  %v7015_v54 = vsub.s32 %v7012_v55, %v10025_v44 }
 0x3d0   : > { %6989 = vmatprep.subr.bf16.mxu1 %v9571_v46 }
 0x3d2   : > { %6949 = vmatpush2.bf16.msra.mxu0 %v9566_v27 }
 0x3d3   : > { %6990 = vmatpush2.bf16.msra.mxu1 %v9569_v31  ;;  %6950 = vmatprep.subr.bf16.mxu0 %v9574_v2 }
 0x3d4   : > { %6991 = vmatprep.subr.bf16.mxu1 %v9577_v63  ;;  %v7016_v63 = vrot.slane %v7008_v0, %v7015_v54 }
 0x3d6   : > { %6951 = vmatpush2.bf16.msra.mxu0 %v9572_v47 }
 0x3d7   : > { %6992 = vmatpush2.bf16.msra.mxu1 %v9575_v14  ;;  %6952 = vmatprep.subr.bf16.mxu0 %v9580_v42  ;;  %v272_v14 = vld [vmem:[#allocation2] sm:$0xff] }
 0x3d8   : > { %6993 = vmatprep.subr.bf16.mxu1 %v9583_v9 }
 0x3da   : > { %6953 = vmatpush2.bf16.msra.mxu0 %v9578_v59 }
 0x3db   : > { %6994 = vmatpush2.bf16.msra.mxu1 %v9581_v45 }
 0x3dd   : > { %v6710_v57 = vpop.f32.mrf.mxu0  ;;  %6955 = vmatmul.mubr.bf16.vlgmr.msra.gmra.mxu0 %v10621_v29 }
 0x3de   : > { %v6751_v8 = vpop.f32.mrf.mxu1  ;;  %6996 = vmatmul.mubr.bf16.vlgmr.msra.gmra.mxu1 %v10631_v7  ;;  %v6711_v53 = vadd.f32 %v6710_v57, %v11086_v43 }
 0x3df   : > { %v6712_v13 = vpop.f32.mrf.mxu0 }
 0x3e0   : > { %v6753_v41 = vpop.f32.mrf.mxu1  ;;  %v6752_v32 = vadd.f32 %v6751_v8, %v6711_v53  ;;  %v6713_v48 = vadd.f32 %v6712_v13, %v11091_v6 }
 0x3e1   : > { %v6714_v21 = vpop.f32.mrf.mxu0 }
 0x3e2   : > { %v6755_v1 = vpop.f32.mrf.mxu1  ;;  %v6754_v18 = vadd.f32 %v6753_v41, %v6713_v48 }
 0x3e3   : > { %v6715_v24 = vpop.f32.mrf.mxu0 }
 0x3e4   : > { %v6756_v3 = vpop.f32.mrf.mxu1 }
 0x41d   : > { %v6792_v10 = vpop.f32.mrf.mxu0 }
 0x41e   : > { %v6833_v20 = vpop.f32.mrf.mxu1  ;;  %v6793_v26 = vadd.f32 %v6792_v10, %v6752_v32 }
 0x41f   : > { %v6794_v11 = vpop.f32.mrf.mxu0 }
 0x420   : > { %v6835_v12 = vpop.f32.mrf.mxu1  ;;  %v6834_v29 = vadd.f32 %v6833_v20, %v6793_v26  ;;  %v6795_v16 = vadd.f32 %v6794_v11, %v6754_v18 }
 0x421   : > { %v6796_v7 = vpop.f32.mrf.mxu0 }
 0x422   : > { %v6837_v17 = vpop.f32.mrf.mxu1  ;;  %v6836_v43 = vadd.f32 %v6835_v12, %v6795_v16 }
 0x423   : > { %v6797_v22 = vpop.f32.mrf.mxu0 }
 0x424   : > { %v6838_v25 = vpop.f32.mrf.mxu1 }
 0x45d   : > { %v6874_v28 = vpop.f32.mrf.mxu0 }
 0x45e   : > { %v6915_v30 = vpop.f32.mrf.mxu1  ;;  %v6875_v6 = vadd.f32 %v6874_v28, %v6834_v29 }
 0x45f   : > { %v6876_v34 = vpop.f32.mrf.mxu0 }
 0x460   : > { %v6917_v35 = vpop.f32.mrf.mxu1  ;;  %v6916_v38 = vadd.f32 %v6915_v30, %v6875_v6  ;;  %v6877_v5 = vadd.f32 %v6876_v34, %v6836_v43 }
 0x461   : > { %v6878_v40 = vpop.f32.mrf.mxu0 }
 0x462   : > { %v6919_v49 = vpop.f32.mrf.mxu1  ;;  %v6918_v60 = vadd.f32 %v6917_v35, %v6877_v5 }
 0x463   : > { %v6879_v56 = vpop.f32.mrf.mxu0 }
 0x464   : > { %v6920_v58 = vpop.f32.mrf.mxu1 }
 0x49d   : > { %v6956_v19 = vpop.f32.mrf.mxu0 }
 0x49e   : > { %v6997_v39 = vpop.f32.mrf.mxu1  ;;  %v6957_v51 = vadd.f32 %v6956_v19, %v6916_v38 }
 0x49f   : > { %v6958_v15 = vpop.f32.mrf.mxu0 }
 0x4a0   : > { %v6999_v23 = vpop.f32.mrf.mxu1  ;;  %v6959_v61 = vadd.f32 %v6958_v15, %v6918_v60  ;;  %v6998_v36 = vadd.f32 %v6997_v39, %v6957_v51 }
 0x4a1   : > { %v6960_v37 = vpop.f32.mrf.mxu0 }
 0x4a2   : > { %v7001_v52 = vpop.f32.mrf.mxu1  ;;  %v7000_v46 = vadd.f32 %v6999_v23, %v6959_v61 }
 0x4a3   : > { %v6961_v27 = vpop.f32.mrf.mxu0 }
 0x4a4   : > { %v7002_v31 = vpop.f32.mrf.mxu1  ;;  %v7009_v2 = vcombine.low %v6998_v36, %v7000_v46 }
 0x4a6   : > { %v7023_v47 = vrot.slane %v7009_v2, %v7015_v54 }
 0x4a8   : > { %v7024_v42 = vcombine.low %v7016_v63, %v7023_v47  ;;  %7031 = sbr.rel (%p8113_p10) target bundleno = 1210 (0x4ba), region = 48 }
 0x4aa   : > { %v7026_v9 = vadd.f32 %v7024_v42, %v272_v14 }
 0x4ac   : > { %7027 = vst [vmem:[#allocation2] sm:$0xff] %v7026_v9 }
 0x4ad   : > { %v7033_v59 = vld [vmem:[%s9970_s29] sm:$0xf]  ;;  %v7037_v45 = vsub.s32 0, %v10025_v44  ;;  %v7041_v57 = vsub.s32 1, %v10025_v44  ;;  %v7045_v8 = vsub.s32 2, %v10025_v44  ;;  %v7049_v33 = vsub.s32 3, %v10025_v44 }
 0x4af   : > { %v7038_v50 = vrot.slane %v7033_v59, %v7037_v45  ;;  %v7042_v0 = vrot.slane %v7033_v59, %v7041_v57  ;;  %v7046_v53 = vrot.slane %v7033_v59, %v7045_v8  ;;  %v7050_v13 = vrot.slane %v7033_v59, %v7049_v33 }
 0x4b1   : > { %v7051_v41 = vcombine.low %v7038_v50, %v7042_v0  ;;  %v7052_v32 = vcombine.low %v7046_v53, %v7050_v13 }
 0x4b3   : > { %v7059_v48 = vrot.slane %v7051_v41, %v7015_v54  ;;  %v7066_v21 = vrot.slane %v7052_v32, %v7015_v54  ;;  %v7032_v1 = vld [vmem:[#allocation2] sm:$0xff] }
 0x4b5   : > { %v7067_v18 = vcombine.low %v7059_v48, %v7066_v21 }
 0x4b7   : > { %v7069_v24 = vadd.f32 %v7067_v18, %v7032_v1 }
 0x4b9   : > { %7070 = vst [vmem:[%s9983_s26] sm:$0xff] %v7069_v24 }
 0x4ba PF: > { %s11238_s18 = sld [smem:[#allocation12_spill]]  ;;  %s7086_s25 = sshll.u32 %s9983_s26, 4  ;;  %s7087_s25 = int_to_ptr.vmem [resolvable:$true] %s7086_s25 }
 0x4bb   : > { %s11239_s24 = sld [smem:[#allocation15_spill]]  ;;  %s7072_s4 = scalar_lea.sflag [#allocation5], %s9966_s1 }
 0x4bc   : > { %s9640_s29 = scalar_lea.vmem %s7087_s25, 128  ;;  %p11240_p3 = scmp.ne.s32.totalorder %s11234_s8, 0 }
 0x4bd   : > { %p9641_p11 = scmp.ne.s32.totalorder %s7087_s25, %s9640_s29  ;;  %s9774_s5 = smov [#allocation8]  }
 0x4be   : > { %s9644_s6 = sshll.u32 %s9774_s5, 4  ;;  %s9645_s6 = int_to_ptr.vmem [resolvable:$false] %s9644_s6 }
 0x4bf   : > { %p9642_p5 = pnand %p9641_p11, %p11240_p3  ;;  %s9646_s30 = scalar_lea.vmem %s9645_s6, 256 }
 0x4c0   : > { %s8121_s15 = sshll.u32 %s11238_s18, 7  ;;  %p9647_p12 = scmp.lt.s32.totalorder %s7087_s25, %s9645_s6 }
 0x4c1   : > { %s7084_s7 = scalar_lea.hbm %s11239_s24, %s8121_s15  ;;  %p9643_p9 = pneg %p9642_p5 }
 0x4c2   : > { %p9648_p2 = scmp.lt.s32.totalorder %s9646_s30, %s9640_s29 }
 0x4c4   : > { %p9649_p6 = por %p9648_p2, %p9647_p12 }
 0x4c6   : > { %p9650_p0 = pnand %p9649_p6, %p9643_p9 }
 0x4c8   : > { %9653 = shalt.err (!%p9650_p0)
}
 0x4c9   : > { %s9654_s10 = scalar_lea.hbm %s7084_s7, 128  ;;  %s9658_s26 = scalar_lea.hbm %s11239_s24, 256 }
 0x4ca   : > { %p9655_p13 = scmp.ne.s32.totalorder %s7084_s7, %s9654_s10  ;;  %p9659_p4 = scmp.lt.s32.totalorder %s7084_s7, %s11239_s24 }
 0x4cb   : > { %p9660_p7 = scmp.lt.s32.totalorder %s9658_s26, %s9654_s10 }
 0x4cc   : > { %p9656_p1 = pnand %p9655_p13, %p11240_p3 }
 0x4cd   : > { %p9661_p10 = por %p9660_p7, %p9659_p4 }
 0x4ce   : > { %p9657_p8 = pneg %p9656_p1 }
 0x4d0   : > { %p9662_p11 = pnand %p9661_p10, %p9657_p8 }
 0x4d2   : > { %9665 = shalt.err (!%p9662_p11)
}
 0x4d3   : > { %8128 = dma.vmem_to_hbm [thread:$0]  (%p11240_p3), %s7087_s25, 128, %s7084_s7, %s7072_s4  }
 0x4d4 PF: > { %p8142_p5 = scmp.ge.s32.totalorder %s9764_s22, 2  ;;  %s7098_s28 = sand.u32 1, %s9724_s12  }
 0x4d5   : > { %p11241_p9 = scmp.ne.s32.totalorder %s11236_s3, 0  ;;  %s7099_s19 = scalar_lea.sflag [#allocation5], %s7098_s28 }
 0x4d7   : > { %p8138_p12 = pnand %p8142_p5, %p11241_p9 }
 0x4d9   : > { %p8139_p2 = pneg %p8138_p12 }
 0x4db   : > { %9719 = dma.done.wait (%p8139_p2), %s7099_s19, 128  }
 0x4dc   : > { %9721 = vsyncadd (%p8139_p2), %s7099_s19, 4294967168  ;;  %s22_s22 = sadd.s32 1, %s9764_s22   ;;  %s11242_s8 = sld [smem:[#allocation13_spill]] }
 0x4dd   : > { %p19_p6 = scmp.ge.s32.totalorder %s22_s22, 16   ;;  %s11243_s12 = smov %s9728_s13 }
 0x4de   : > { %s11244_s13 = smov %s9732_s14  ;;  %s11245_s14 = smov %s9925_s9 }
 0x4df   : > { %s11246_s15 = smov %s9740_s16  ;;  %s11247_s16 = smov %s9744_s17 }
 0x4e0   : > { %s11248_s17 = smov %s9930_s11  ;;  %s11249_s18 = smov %s9756_s20 }
 0x4e1   : > { %s11250_s19 = smov %s9760_s21  ;;  %s11251_s20 = smov %s11254_s23 }
 0x4e2   : > { %s11252_s21 = smov %s11242_s8  ;;  %21 = sbr.rel (!%p19_p6) target bundleno = 14 (0xe), region = 101 }
 0x4e7   :  { %7104 = vsyncpa [#allocation4], 1 }
 0x4e8   :  { %7106 = vsyncpa [#allocation4 + $0x1], 1 }
 0x4e9   :  { %7107 = vsyncpa [#allocation7], 1 }
 0x4ea   :  { %7109 = vsyncpa [#allocation7 + $0x1], 1 }
 0x4eb   :  { %7110 = vsyncpa [#allocation5], 1 }
 0x4ec   :  { %7112 = vsyncpa [#allocation5 + $0x1], 1 }

</bundles_post_ra>
